<compile_context>
chip_gen: v5e
topology: v5e:2x2
jax: 0.10.0
libtpu: 0.0.40
codegen_flags: <defaults>
</compile_context>

<pallas_src>
import functools

import jax
import jax.numpy as jnp
from jax.experimental import pallas as pl
from jax.experimental.pallas import tpu as pltpu


_VMEM_LIMIT = 32 * 1024 * 1024   # fits all tile configs below on v5e/v6e/v7x


def _round_up(x, m):
    return ((x + m - 1) // m) * m


def _cdiv(a, b):
    return -(-a // b)


# ----------------------------------------------------------------------------
# Pallas kernels
# ----------------------------------------------------------------------------
def _mm_bias_kernel(a_ref, b_ref, bias_ref, o_ref, acc_ref, *, relu):
    """Tiled matmul with K-accumulation, fused bias add and optional ReLU."""
    k = pl.program_id(2)

    @pl.when(k == 0)
    def _():
        acc_ref[...] = jnp.zeros_like(acc_ref)

    acc_ref[...] += jnp.dot(a_ref[...], b_ref[...],
                            preferred_element_type=jnp.float32)

    @pl.when(k == pl.num_programs(2) - 1)
    def _():
        r = acc_ref[...] + bias_ref[...]          # bias (1, tn) broadcasts
        if relu:
            r = jnp.maximum(r, 0.0)
        o_ref[...] = r.astype(o_ref.dtype)


def _max4_kernel(a_ref, b_ref, c_ref, d_ref, o_ref):
    """Elementwise max of four NHWC tiles (2x2 max-pool windows)."""
    o_ref[...] = jnp.maximum(jnp.maximum(a_ref[...], b_ref[...]),
                             jnp.maximum(c_ref[...], d_ref[...]))


# ----------------------------------------------------------------------------
# Tile selection (shape-aware, avoids padding the big A operand)
# ----------------------------------------------------------------------------
def _choose_tk(K, max_tk):
    """Split K into nk blocks of size tk (tk mult of 128 when nk>1)."""
    if K <= max_tk:
        return 1, _round_up(K, 16)                # single full-K block
    best_nk, best_tk, best_pad = None, None, None
    nk0 = _cdiv(K, max_tk)
    for nk in range(nk0, nk0 + 8):
        tk = _round_up(_cdiv(K, nk), 128)
        pad = nk * tk - K
        if best_pad is None or pad < best_pad:
            best_nk, best_tk, best_pad = nk, tk, pad
            if pad == 0:
                break
    return best_nk, best_tk


def _choose_tm(M, tk):
    """Pick tm (mult of 16); prefer a divisor of M so A needs no row padding."""
    if tk >= 512:
        cap = 1024
    elif tk >= 128:
        cap = 2048
    else:
        cap = 4096
    Mp0 = _round_up(M, 16)
    if Mp0 <= cap:
        return Mp0, Mp0
    for tm in range(cap, 127, -16):
        if M % tm == 0:
            return tm, M
    return cap, _round_up(M, cap)


def _choose_tn(N, Mp, tm, cap):
    Np = _round_up(N, 128)
    tn = min(cap, Np)
    Np = _round_up(Np, tn)
    # Keep >=2 blocks on a parallel grid axis where possible (v7x dual-TC).
    if Np // tn == 1 and Mp // tm == 1 and tn > 128 and (tn // 2) % 128 == 0:
        tn //= 2
    return tn, Np


# ----------------------------------------------------------------------------
# Wrappers around the kernels
# ----------------------------------------------------------------------------
def matmul_bias(A, W, b, *, relu, out_dtype=jnp.bfloat16):
    """out = relu?(A @ W + b).  A:(M,K), W:(K,N), b:(N,).  bf16 MXU, f32 acc."""
    M, K = A.shape
    K2, N = W.shape
    assert K == K2

    max_tk = 4096 if M <= 128 else 2048            # batch-1 head: huge K tiles
    nk, tk = _choose_tk(K, max_tk)
    Kp = nk * tk
    tm, Mp = _choose_tm(M, tk)
    cap_tn = 1024 if M <= 128 else 512
    tn, Np = _choose_tn(N, Mp, tm, cap_tn)

    A = A.astype(jnp.bfloat16)
    W = W.astype(jnp.bfloat16)
    if (Mp, Kp) != (M, K):
        A = jnp.pad(A, ((0, Mp - M), (0, Kp - K)))
    if (Kp, Np) != (K, N):
        W = jnp.pad(W, ((0, Kp - K), (0, Np - N)))
    bias = jnp.pad(b.astype(jnp.float32), (0, Np - N)).reshape(1, Np)

    grid = (Mp // tm, Np // tn, nk)
    out_itemsize = jnp.dtype(out_dtype).itemsize
    cost = pl.CostEstimate(
        flops=2 * Mp * Kp * Np,
        transcendentals=0,
        bytes_accessed=Mp * Kp * 2 + Kp * Np * 2 + Np * 4 + Mp * Np * out_itemsize,
    )

    out = pl.pallas_call(
        functools.partial(_mm_bias_kernel, relu=relu),
        out_shape=jax.ShapeDtypeStruct((Mp, Np), out_dtype),
        grid_spec=pltpu.PrefetchScalarGridSpec(
            num_scalar_prefetch=0,
            grid=grid,
            in_specs=[
                pl.BlockSpec((tm, tk), lambda i, j, k: (i, k)),
                pl.BlockSpec((tk, tn), lambda i, j, k: (k, j)),
                pl.BlockSpec((1, tn), lambda i, j, k: (0, j)),
            ],
            out_specs=pl.BlockSpec((tm, tn), lambda i, j, k: (i, j)),
            scratch_shapes=[pltpu.VMEM((tm, tn), jnp.float32)],
        ),
        compiler_params=pltpu.CompilerParams(
            dimension_semantics=("parallel", "parallel", "arbitrary"),
            vmem_limit_bytes=_VMEM_LIMIT),
        cost_estimate=cost,
    )(A, W, bias)

    if (Mp, Np) != (M, N):
        out = out[:M, :N]
    return out


def conv2d(x, w, b, kernel, padding, *, relu, out_dtype=jnp.bfloat16):
    """NHWC conv, stride 1.  x:(N,H,W,Cin), w:(k,k,Cin,Cout), b:(Cout,)."""
    N, H, W, Cin = x.shape
    k = kernel
    Cout = w.shape[-1]
    if padding > 0:
        x = jnp.pad(x, ((0, 0), (padding, padding), (padding, padding), (0, 0)))
    Ho = H + 2 * padding - k + 1
    Wo = W + 2 * padding - k + 1
    if k == 1:
        patches = x
    elif Ho == 1 and Wo == 1:
        # Kernel covers the whole (padded) spatial extent: im2col == reshape.
        patches = x.reshape(N, 1, 1, k * k * Cin)
    else:
        # im2col glue: patch channel ordering is (dy, dx, cin), matching
        # w.reshape(k*k*Cin, Cout) for HWIO weights.
        patches = jnp.concatenate(
            [x[:, dy:dy + Ho, dx:dx + Wo, :] for dy in range(k) for dx in range(k)],
            axis=-1)
    A = patches.reshape(N * Ho * Wo, k * k * Cin)
    W2 = w.reshape(k * k * Cin, Cout)
    out = matmul_bias(A, W2, b, relu=relu, out_dtype=out_dtype)
    return out.reshape(N, Ho, Wo, Cout)


def maxpool_2x2(x):
    """nn.MaxPool2d(2, 2) on NHWC input with even H, W."""
    N, H, W, C = x.shape
    Ho, Wo = H // 2, W // 2
    a = x[:, 0::2, 0::2, :].reshape(N * Ho, Wo, C)
    b = x[:, 0::2, 1::2, :].reshape(N * Ho, Wo, C)
    c = x[:, 1::2, 0::2, :].reshape(N * Ho, Wo, C)
    d = x[:, 1::2, 1::2, :].reshape(N * Ho, Wo, C)

    rows = N * Ho
    row_bytes = Wo * C * x.dtype.itemsize
    cap = max(1, (1 * 1024 * 1024) // row_bytes)   # ~1 MB per operand block
    th = 1
    for t in range(1, rows + 1):
        if rows % t == 0 and t <= cap:
            th = t

    out = pl.pallas_call(
        _max4_kernel,
        out_shape=jax.ShapeDtypeStruct((rows, Wo, C), x.dtype),
        grid_spec=pltpu.PrefetchScalarGridSpec(
            num_scalar_prefetch=0,
            grid=(rows // th,),
            in_specs=[pl.BlockSpec((th, Wo, C), lambda i: (i, 0, 0))] * 4,
            out_specs=pl.BlockSpec((th, Wo, C), lambda i: (i, 0, 0)),
        ),
        compiler_params=pltpu.CompilerParams(
            dimension_semantics=("parallel",),
            vmem_limit_bytes=_VMEM_LIMIT),
    )(a, b, c, d)
    return out.reshape(N, Ho, Wo, C)


# ----------------------------------------------------------------------------
# Model definition (VGG version 'A')
# ----------------------------------------------------------------------------
CFG_CHANNELS_A = [64, 'M', 128, 'M', 256, 256, 'M', 512, 512, 'M', 512, 512, 'M']
CFG_KERNEL_A = [3, 2, 3, 2, 3, 3, 2, 3, 3, 2, 3, 3, 2]


def _init_conv(key, k, cin, cout):
    # Deterministic synthetic init (fan-in scaled normal), bias zero.
    std = (1.0 / (k * k * cin)) ** 0.5
    w = (std * jax.random.normal(key, (k, k, cin, cout), dtype=jnp.float32))
    w = w.astype(jnp.bfloat16)                     # bf16 weight stream (MXU path)
    b = jnp.zeros((cout,), dtype=jnp.float32)
    return w, b


def build_params(key, num_classes):
    params = {"features": [], "head": []}
    in_ch = 3
    keys = jax.random.split(key, 32)
    ki = 0
    for out_ch, kern in zip(CFG_CHANNELS_A, CFG_KERNEL_A):
        if out_ch == 'M':
            params["features"].append(("maxpool",))
        else:
            w, b = _init_conv(keys[ki], kern, in_ch, out_ch)
            ki += 1
            params["features"].append(("conv", w, b, kern, 1))   # padding=1
            in_ch = out_ch
    # output_layer: Conv(512->4096, 7), ReLU, Dropout, Conv(4096->4096, 1),
    #               ReLU, Dropout, Conv(4096->num_classes, 1)
    w1, b1 = _init_conv(keys[ki], 7, 512, 4096); ki += 1
    w2, b2 = _init_conv(keys[ki], 1, 4096, 4096); ki += 1
    w3, b3 = _init_conv(keys[ki], 1, 4096, num_classes); ki += 1
    params["head"] = [(w1, b1), (w2, b2), (w3, b3)]
    return params


def model_vgg_forward(x_nchw, params):
    # PyTorch input is NCHW; compute in NHWC.
    x = jnp.transpose(x_nchw.astype(jnp.float32), (0, 2, 3, 1))

    # feature_extractor
    for layer in params["features"]:
        if layer[0] == "conv":
            _, w, b, kern, pad = layer
            x = conv2d(x, w, b, kern, pad, relu=True)   # Conv2d + ReLU
        else:
            x = maxpool_2x2(x)                          # MaxPool2d(2, 2)

    # output_layer
    (w1, b1), (w2, b2), (w3, b3) = params["head"]
    x = conv2d(x, w1, b1, 7, 0, relu=True)              # Conv2d(512,4096,7)+ReLU
    # Dropout2d -> identity (eval semantics)
    x = conv2d(x, w2, b2, 1, 0, relu=True)              # Conv2d(4096,4096,1)+ReLU
    # Dropout2d -> identity (eval semantics)
    x = conv2d(x, w3, b3, 1, 0, relu=False,
               out_dtype=jnp.float32)                   # Conv2d(4096,num_classes,1)

    # AdaptiveAvgPool2d((1,1)) + flatten(start_dim=1)
    x = jnp.mean(x.astype(jnp.float32), axis=(1, 2))    # (N, num_classes)
    return x


# ----------------------------------------------------------------------------
if __name__ == "__main__":
    num_classes = 10
    batch = 1
    # 224x224 is the smallest spatial size consistent with this module:
    # five 2x2/stride-2 pools followed by a 7x7 valid conv need 7*2^5 = 224.
    key = jax.random.PRNGKey(0)
    k_in, k_par = jax.random.split(key)
    x = jax.random.normal(k_in, (batch, 3, 224, 224), dtype=jnp.float32)

    params = build_params(k_par, num_classes)

    out = model_vgg_forward(x, params)
    out = jax.block_until_ready(out)
    assert out.shape == (batch, num_classes)
    assert bool(jnp.all(jnp.isfinite(out)))
    print("KERNEL_OK")
</pallas_src>

<mosaic_0001>
module attributes {stable_mosaic.version = 11 : i64} {
  func.func @_mm_bias_kernel(%arg0: i32, %arg1: i32, %arg2: i32, %arg3: memref<3584x32xbf16, #tpu.memory_space<vmem>>, %arg4: memref<32x128xbf16, #tpu.memory_space<vmem>>, %arg5: memref<1x128xf32, #tpu.memory_space<vmem>>, %arg6: memref<3584x128xbf16, #tpu.memory_space<vmem>>, %arg7: memref<3584x128xf32, #tpu.memory_space<vmem>>) attributes {dimension_semantics = [#tpu.dimension_semantics<parallel>, #tpu.dimension_semantics<parallel>, #tpu.dimension_semantics<arbitrary>], iteration_bounds = array<i64: 14, 1, 1>, scalar_prefetch = 0 : i64, scratch_operands = 1 : i64, tpu.core_type = #tpu.core_type<tc>, window_params = [{transform_indices = @transform_0, window_bounds = array<i64: 3584, 32>}, {transform_indices = @transform_1, window_bounds = array<i64: 32, 128>}, {transform_indices = @transform_2, window_bounds = array<i64: 1, 128>}, {transform_indices = @transform_3, window_bounds = array<i64: 3584, 128>}]} {
    %c0_i32 = arith.constant 0 : i32
    %0 = arith.cmpi eq, %arg2, %c0_i32 : i32
    %1 = arith.extui %0 : i1 to i32
    %c0_i32_0 = arith.constant 0 : i32
    %2 = arith.cmpi ne, %1, %c0_i32_0 : i32
    scf.if %2 {
      %cst_10 = arith.constant 0.000000e+00 : f32
      %12 = vector.broadcast %cst_10 : f32 to vector<3584x128xf32>
      %c0_11 = arith.constant 0 : index
      %c0_12 = arith.constant 0 : index
      %13 = vector.load %arg7[%c0_11, %c0_12] : memref<3584x128xf32, #tpu.memory_space<vmem>>, vector<3584x128xf32>
      tpu.vector_store %arg7[%c0_11, %c0_12], %12 {strides = array<i32>} : memref<3584x128xf32, #tpu.memory_space<vmem>>, vector<3584x128xf32>,
    } else {
    }
    %c0 = arith.constant 0 : index
    %c0_1 = arith.constant 0 : index
    %3 = vector.load %arg7[%c0, %c0_1] : memref<3584x128xf32, #tpu.memory_space<vmem>>, vector<3584x128xf32>
    %c0_2 = arith.constant 0 : index
    %c0_3 = arith.constant 0 : index
    %4 = vector.load %arg3[%c0_2, %c0_3] : memref<3584x32xbf16, #tpu.memory_space<vmem>>, vector<3584x32xbf16>
    %c0_4 = arith.constant 0 : index
    %c0_5 = arith.constant 0 : index
    %5 = vector.load %arg4[%c0_4, %c0_5] : memref<32x128xbf16, #tpu.memory_space<vmem>>, vector<32x128xbf16>
    %cst = arith.constant dense<0.000000e+00> : vector<3584x128xf32>
    %6 = tpu.matmul %4, %5, %cst {dimension_numbers = #tpu.dot_dimension_numbers<[1], [0], [0], [1], [0, 0, 1, 1], [], []>} : vector<3584x32xbf16>, vector<32x128xbf16>, vector<3584x128xf32> -> vector<3584x128xf32>
    %7 = arith.addf %3, %6 : vector<3584x128xf32>
    %c0_6 = arith.constant 0 : index
    %c0_7 = arith.constant 0 : index
    %8 = vector.load %arg7[%c0_6, %c0_7] : memref<3584x128xf32, #tpu.memory_space<vmem>>, vector<3584x128xf32>
    tpu.vector_store %arg7[%c0_6, %c0_7], %7 {strides = array<i32>} : memref<3584x128xf32, #tpu.memory_space<vmem>>, vector<3584x128xf32>,
    %c0_i32_8 = arith.constant 0 : i32
    %9 = arith.cmpi eq, %arg2, %c0_i32_8 : i32
    %10 = arith.extui %9 : i1 to i32
    %c0_i32_9 = arith.constant 0 : i32
    %11 = arith.cmpi ne, %10, %c0_i32_9 : i32
    scf.if %11 {
      %c0_10 = arith.constant 0 : index
      %c0_11 = arith.constant 0 : index
      %12 = vector.load %arg7[%c0_10, %c0_11] : memref<3584x128xf32, #tpu.memory_space<vmem>>, vector<3584x128xf32>
      %c0_12 = arith.constant 0 : index
      %c0_13 = arith.constant 0 : index
      %13 = vector.load %arg5[%c0_12, %c0_13] : memref<1x128xf32, #tpu.memory_space<vmem>>, vector<1x128xf32>
      %14 = vector.broadcast %13 : vector<1x128xf32> to vector<3584x128xf32>
      %15 = arith.addf %12, %14 : vector<3584x128xf32>
      %cst_14 = arith.constant 0.000000e+00 : f32
      %16 = vector.broadcast %cst_14 : f32 to vector<3584x128xf32>
      %17 = arith.maximumf %15, %16 : vector<3584x128xf32>
      %18 = arith.truncf %17 : vector<3584x128xf32> to vector<3584x128xbf16>
      %c0_15 = arith.constant 0 : index
      %c0_16 = arith.constant 0 : index
      %19 = vector.load %arg6[%c0_15, %c0_16] : memref<3584x128xbf16, #tpu.memory_space<vmem>>, vector<3584x128xbf16>
      tpu.vector_store %arg6[%c0_15, %c0_16], %18 {strides = array<i32>} : memref<3584x128xbf16, #tpu.memory_space<vmem>>, vector<3584x128xbf16>,
    } else {
    }
    return
  }
  func.func @transform_0(%arg0: i32, %arg1: i32, %arg2: i32) -> (i32, i32) {
    %c0_i32 = arith.constant 0 : i32
    return %arg0, %arg2 : i32, i32
  }
  func.func @transform_1(%arg0: i32, %arg1: i32, %arg2: i32) -> (i32, i32) {
    %c0_i32 = arith.constant 0 : i32
    return %arg2, %arg1 : i32, i32
  }
  func.func @transform_2(%arg0: i32, %arg1: i32, %arg2: i32) -> (i32, i32) {
    %c0_i32 = arith.constant 0 : i32
    %c0_i32_0 = arith.constant 0 : i32
    return %c0_i32, %arg1 : i32, i32
  }
  func.func @transform_3(%arg0: i32, %arg1: i32, %arg2: i32) -> (i32, i32) {
    %c0_i32 = arith.constant 0 : i32
    return %arg0, %arg1 : i32, i32
  }
}

</mosaic_0001>

<bundles_post_ra>
// kernel: tpu_custom_call.1
= control target key start
LH: loop header
LB: loop body
LE: loop exit
PB: predicated region body
PF: predicated region fallthrough
CT: control target
= control target key end

     0   :  { %8 = vsyncpa [#allocation4], 0  ;;  %s11942_s0 = inlined_call_operand.vmem [shape: bf16[50176,32], index: 0, kind: input, shape index: {}]   ;;  %s11943_s1 = inlined_call_operand.vmem [shape: bf16[32,128], index: 1, kind: input, shape index: {}]   ;;  %s11944_s2 = inlined_call_operand.vmem [shape: f32[1,128], index: 2, kind: input, shape index: {}]   ;;  %s11945_s3 = inlined_call_operand.hbm [shape: bf16[50176,128], index: 3, kind: output, shape index: {}]  }
   0x1   :  { %10 = vsyncpa [#allocation4 + $0x1], 0  ;;  %s10686_s12 = smov 0   ;;  %s10688_s13 = smov 0  }
   0x2   :  { %s10690_s14 = smov 0   ;;  %s10692_s15 = smov 0  }
   0x3   :  { %s10694_s16 = smov 0   ;;  %s10696_s17 = smov 0  }
   0x4 LB: > { %s7806_s18 = sadd.s32 4294967295, %s10662_s17   ;;  %s7807_s19 = sadd.s32 4294967294, %s10662_s17   ;;  %s10662_s17 = sphi %s10696_s17, %s16_s17   ;;  %s10658_s16 = sphi %s10694_s16, %s11952_s16   ;;  %s10654_s15 = sphi %s10692_s15, %s11951_s15   ;;  %s10650_s14 = sphi %s10690_s14, %s11950_s14   ;;  %s10646_s13 = sphi %s10688_s13, %s11949_s13   ;;  %s10642_s12 = sphi %s10686_s12, %s11948_s12  }
   0x5   : > { %s35_s20 = sadd.s32 1, %s10658_s16  ;;  %s126_s21 = sadd.s32 1, %s10650_s14 }
   0x6   : > { %p37_p0 = scmp.ge.s32.totalorder %s35_s20, 14  ;;  %p136_p1 = scmp.ne.s32.totalorder %s10650_s14, %s10646_s13 }
   0x7   : > { %p137_p2 = scmp.eq.s32.totalorder %s7806_s18, 13  ;;  %p142_p3 = scmp.ne.s32.totalorder %s10646_s13, %s10642_s12 }
   0x8   : > { %s11954_s20 = smov (%p37_p0, %s35_s20), 0  ;;  %p143_p5 = scmp.eq.s32.totalorder %s7807_s19, 13 }
   0x9   : > { %p10726_p4 = por %p137_p2, %p136_p1  ;;  %s121_s23 = ssub.s32 %s10658_s16, %s11954_s20 }
   0xa   : > { %p7812_p6 = scmp.ge.s32.totalorder %s10662_s17, 1  ;;  %p124_p7 = scmp.eq.s32.totalorder %s121_s23, 0 }
   0xb   : > { %p10733_p8 = por %p143_p5, %p142_p3  ;;  %p191_p9 = scmp.lt.s32.totalorder %s10662_s17, 15 }
   0xc   : > { %s10739_s25 = scalar_select %p124_p7, %s10650_s14, %s126_s21  }
   0xd   : > { %p192_p10 = pnand %p7812_p6, %p191_p9 }
   0xe   : > { %s229_s28 = smul.u32 (!%p192_p10), 448, %s10654_s15  ;;  %s226_s10 = sand.u32 (!%p192_p10), 1, %s10646_s13  }
   0xf   : > { %195 = sbr.rel (%p192_p10) target bundleno = 1060 (0x424), region = 32  ;;  %s7682_s9 = scalar_lea.sflag (!%p192_p10), [#allocation4], %s226_s10 }
  0x10   : > { %p230_p11 = scmp.lt.s32.totalorder (!%p192_p10), %s229_s28, 6271  ;;  %s10521_s11 = smul.u32 (!%p192_p10), 1792, %s226_s10 }
  0x11   : > { %s10604_s26 = scalar_lea.hbm (!%p192_p10), %s11945_s3, 25088 }
  0x12   : > { %s10839_s18 = scalar_lea.vmem (!%p192_p10), [#allocation3], %s10521_s11 }
  0x14   : > { %v9170_v0 = vld [vmem:[%s11943_s1 + $0x8] sm:$0xff]  ;;  %v9169_v1 = vld [vmem:[%s11943_s1] sm:$0xff]  ;;  %s11956_s28 = smov (!%p230_p11, %s229_s28), 6271  ;;  %vm2736_vm0 = vcmask 261120  }
  0x15   : > { %3415 = vmatpush.bf16.msra.mxu0 %v9170_v0  ;;  %10515 = vmatpush.bf16.msra.mxu1 %v9170_v0  ;;  %s7813_s4 = sshll.u32 %s11956_s28, 2  ;;  %v10824_v40 = vld [vmem:[%s11944_s2] ss:$0 sm:$0xff] }
  0x16   : > { %10516 = vmatpush.bf16.msra.mxu2 %v9170_v0  ;;  %10517 = vmatpush.bf16.msra.mxu3 %v9170_v0  ;;  %s10751_s7 = scalar_lea.vmem %s11942_s0, %s7813_s4  ;;  %s9171_s4 = smul.u32 1792, %s10654_s15 }
  0x17   : > { %v8945_v2 = vld [vmem:[%s10751_s7] sm:$0xff]  ;;  %v8946_v6 = vld [vmem:[%s10751_s7 + $0x8] sm:$0xff]  ;;  %v8947_v10 = vld [vmem:[%s10751_s7 + $0x10] sm:$0xff]  ;;  %s7695_s15 = sshll.u32 %s10839_s18, 4  ;;  %s7696_s15 = int_to_ptr.vmem [resolvable:$true] %s7695_s15 }
  0x18   : > { %v9001_v3 = vld [vmem:[%s10751_s7 + $0x1c0] sm:$0xff]  ;;  %v9002_v7 = vld [vmem:[%s10751_s7 + $0x1c8] sm:$0xff]  ;;  %v9003_v11 = vld [vmem:[%s10751_s7 + $0x1d0] sm:$0xff] }
  0x19   : > { %3416 = vmatpush.bf16.msra.mxu0 %v9169_v1  ;;  %10518 = vmatpush.bf16.msra.mxu1 %v9169_v1  ;;  %v9057_v4 = vld [vmem:[%s10751_s7 + $0x380] sm:$0xff]  ;;  %v9058_v8 = vld [vmem:[%s10751_s7 + $0x388] sm:$0xff]  ;;  %v9059_v12 = vld [vmem:[%s10751_s7 + $0x390] sm:$0xff] }
  0x1a   : > { %10519 = vmatpush.bf16.msra.mxu2 %v9169_v1  ;;  %10520 = vmatpush.bf16.msra.mxu3 %v9169_v1  ;;  %v9113_v5 = vld [vmem:[%s10751_s7 + $0x540] sm:$0xff]  ;;  %v9114_v9 = vld [vmem:[%s10751_s7 + $0x548] sm:$0xff]  ;;  %v9115_v13 = vld [vmem:[%s10751_s7 + $0x550] sm:$0xff] }
  0x1b   : > { %v8948_v14 = vld [vmem:[%s10751_s7 + $0x18] sm:$0xff]  ;;  %v8949_v18 = vld [vmem:[%s10751_s7 + $0x20] sm:$0xff]  ;;  %v8950_v22 = vld [vmem:[%s10751_s7 + $0x28] sm:$0xff] }
  0x1c   : > { %8718 = vmatmul.msk.bf16.vlgmr.msra.gmra.mxu0 %vm2736_vm0, %v8945_v2  ;;  %8774 = vmatmul.msk.bf16.vlgmr.msra.gmra.mxu1 %vm2736_vm0, %v9001_v3  ;;  %v9004_v15 = vld [vmem:[%s10751_s7 + $0x1d8] sm:$0xff]  ;;  %v9005_v19 = vld [vmem:[%s10751_s7 + $0x1e0] sm:$0xff]  ;;  %v9006_v23 = vld [vmem:[%s10751_s7 + $0x1e8] sm:$0xff] }
  0x1d   : > { %8830 = vmatmul.msk.bf16.vlgmr.msra.gmra.mxu2 %vm2736_vm0, %v9057_v4  ;;  %8886 = vmatmul.msk.bf16.vlgmr.msra.gmra.mxu3 %vm2736_vm0, %v9113_v5  ;;  %v9060_v16 = vld [vmem:[%s10751_s7 + $0x398] sm:$0xff]  ;;  %v9061_v20 = vld [vmem:[%s10751_s7 + $0x3a0] sm:$0xff]  ;;  %v9062_v24 = vld [vmem:[%s10751_s7 + $0x3a8] sm:$0xff] }
  0x1e   : > { %v9116_v17 = vld [vmem:[%s10751_s7 + $0x558] sm:$0xff]  ;;  %v9117_v21 = vld [vmem:[%s10751_s7 + $0x560] sm:$0xff]  ;;  %v9118_v25 = vld [vmem:[%s10751_s7 + $0x568] sm:$0xff] }
  0x1f   : > { %v8951_v26 = vld [vmem:[%s10751_s7 + $0x30] sm:$0xff]  ;;  %v8952_v30 = vld [vmem:[%s10751_s7 + $0x38] sm:$0xff]  ;;  %v8953_v34 = vld [vmem:[%s10751_s7 + $0x40] sm:$0xff] }
  0x20   : > { %v9007_v27 = vld [vmem:[%s10751_s7 + $0x1f0] sm:$0xff]  ;;  %v9008_v31 = vld [vmem:[%s10751_s7 + $0x1f8] sm:$0xff]  ;;  %v9009_v35 = vld [vmem:[%s10751_s7 + $0x200] sm:$0xff] }
  0x21   : > { %v9063_v28 = vld [vmem:[%s10751_s7 + $0x3b0] sm:$0xff]  ;;  %v9064_v32 = vld [vmem:[%s10751_s7 + $0x3b8] sm:$0xff]  ;;  %v9065_v38 = vld [vmem:[%s10751_s7 + $0x3c0] sm:$0xff] }
  0x22   : > { %v9119_v29 = vld [vmem:[%s10751_s7 + $0x570] sm:$0xff]  ;;  %v9120_v33 = vld [vmem:[%s10751_s7 + $0x578] sm:$0xff]  ;;  %v9121_v39 = vld [vmem:[%s10751_s7 + $0x580] sm:$0xff] }
  0x23   : > { %v8954_v59 = vld [vmem:[%s10751_s7 + $0x48] sm:$0xff] }
  0x24   : > { %v9010_v60 = vld [vmem:[%s10751_s7 + $0x208] sm:$0xff] }
  0x25   : > { %v9066_v1 = vld [vmem:[%s10751_s7 + $0x3c8] sm:$0xff] }
  0x26   : > { %v9122_v2 = vld [vmem:[%s10751_s7 + $0x588] sm:$0xff] }
  0x2c   : > { %8719 = vmatmul.msk.bf16.gmra.mxu0 %vm2736_vm0, %v8946_v6  ;;  %8775 = vmatmul.msk.bf16.gmra.mxu1 %vm2736_vm0, %v9002_v7 }
  0x2d   : > { %8831 = vmatmul.msk.bf16.gmra.mxu2 %vm2736_vm0, %v9058_v8  ;;  %8887 = vmatmul.msk.bf16.gmra.mxu3 %vm2736_vm0, %v9114_v9 }
  0x3c   : > { %8720 = vmatmul.msk.bf16.gmra.mxu0 %vm2736_vm0, %v8947_v10  ;;  %8776 = vmatmul.msk.bf16.gmra.mxu1 %vm2736_vm0, %v9003_v11 }
  0x3d   : > { %8832 = vmatmul.msk.bf16.gmra.mxu2 %vm2736_vm0, %v9059_v12  ;;  %8888 = vmatmul.msk.bf16.gmra.mxu3 %vm2736_vm0, %v9115_v13 }
  0x4c   : > { %8721 = vmatmul.msk.bf16.gmra.mxu0 %vm2736_vm0, %v8948_v14  ;;  %8777 = vmatmul.msk.bf16.gmra.mxu1 %vm2736_vm0, %v9004_v15 }
  0x4d   : > { %8833 = vmatmul.msk.bf16.gmra.mxu2 %vm2736_vm0, %v9060_v16  ;;  %8889 = vmatmul.msk.bf16.gmra.mxu3 %vm2736_vm0, %v9116_v17 }
  0x5c   : > { %8722 = vmatmul.msk.bf16.gmra.mxu0 %vm2736_vm0, %v8949_v18  ;;  %8778 = vmatmul.msk.bf16.gmra.mxu1 %vm2736_vm0, %v9005_v19 }
  0x5d   : > { %8834 = vmatmul.msk.bf16.gmra.mxu2 %vm2736_vm0, %v9061_v20  ;;  %8890 = vmatmul.msk.bf16.gmra.mxu3 %vm2736_vm0, %v9117_v21 }
  0x6c   : > { %8723 = vmatmul.msk.bf16.gmra.mxu0 %vm2736_vm0, %v8950_v22  ;;  %8779 = vmatmul.msk.bf16.gmra.mxu1 %vm2736_vm0, %v9006_v23 }
  0x6d   : > { %8835 = vmatmul.msk.bf16.gmra.mxu2 %vm2736_vm0, %v9062_v24  ;;  %8891 = vmatmul.msk.bf16.gmra.mxu3 %vm2736_vm0, %v9118_v25 }
  0x7c   : > { %8724 = vmatmul.msk.bf16.gmra.mxu0 %vm2736_vm0, %v8951_v26  ;;  %8780 = vmatmul.msk.bf16.gmra.mxu1 %vm2736_vm0, %v9007_v27  ;;  %v8955_v27 = vld [vmem:[%s10751_s7 + $0x50] sm:$0xff] }
  0x7d   : > { %8836 = vmatmul.msk.bf16.gmra.mxu2 %vm2736_vm0, %v9063_v28  ;;  %8892 = vmatmul.msk.bf16.gmra.mxu3 %vm2736_vm0, %v9119_v29  ;;  %v9011_v28 = vld [vmem:[%s10751_s7 + $0x210] sm:$0xff] }
  0x8c   : > { %8725 = vmatmul.msk.bf16.gmra.mxu0 %vm2736_vm0, %v8952_v30  ;;  %8781 = vmatmul.msk.bf16.gmra.mxu1 %vm2736_vm0, %v9008_v31 }
  0x8d   : > { %8837 = vmatmul.msk.bf16.gmra.mxu2 %vm2736_vm0, %v9064_v32  ;;  %8893 = vmatmul.msk.bf16.gmra.mxu3 %vm2736_vm0, %v9120_v33  ;;  %v9067_v33 = vld [vmem:[%s10751_s7 + $0x3d0] sm:$0xff] }
  0x99   : > { %v3418_v36 = vpop.f32.mrf.mxu0  ;;  %v3698_v37 = vpop.f32.mrf.mxu1 }
  0x9a   : > { %v5889_v41 = vadd.f32 %v10824_v40, %v3418_v36  ;;  %v6001_v42 = vadd.f32 %v10824_v40, %v3698_v37 }
  0x9c   : > { %8726 = vmatmul.msk.bf16.gmra.mxu0 %vm2736_vm0, %v8953_v34  ;;  %8782 = vmatmul.msk.bf16.gmra.mxu1 %vm2736_vm0, %v9009_v35  ;;  %v6337_v49 = vmax.f32 %v5889_v41, 0.0  ;;  %v6449_v50 = vmax.f32 %v6001_v42, 0.0  ;;  %v9123_v34 = vld [vmem:[%s10751_s7 + $0x590] sm:$0xff] }
  0x9d   : > { %8838 = vmatmul.msk.bf16.gmra.mxu2 %vm2736_vm0, %v9065_v38  ;;  %8894 = vmatmul.msk.bf16.gmra.mxu3 %vm2736_vm0, %v9121_v39 }
  0xa0   : > { %v3978_v43 = vpop.f32.mrf.mxu2  ;;  %v4258_v44 = vpop.f32.mrf.mxu3 }
  0xa1   : > { %v3420_v45 = vpop.f32.mrf.mxu0  ;;  %v3700_v46 = vpop.f32.mrf.mxu1  ;;  %v6113_v55 = vadd.f32 %v10824_v40, %v3978_v43  ;;  %v6225_v56 = vadd.f32 %v10824_v40, %v4258_v44 }
  0xa2   : > { %v5890_v47 = vadd.f32 %v10824_v40, %v3420_v45  ;;  %v6002_v48 = vadd.f32 %v10824_v40, %v3700_v46 }
  0xa3   : > { %v6561_v3 = vmax.f32 %v6113_v55, 0.0  ;;  %v6673_v4 = vmax.f32 %v6225_v56, 0.0 }
  0xa4   : > { %v6338_v51 = vmax.f32 %v5890_v47, 0.0  ;;  %v6450_v52 = vmax.f32 %v6002_v48, 0.0 }
  0xa6   : > { %v9175_v53 = vpack.c.bf16 %v6338_v51, %v6337_v49  ;;  %v9455_v54 = vpack.c.bf16 %v6450_v52, %v6449_v50 }
  0xa8   : > { %9176 = vst [vmem:[%s10839_s18] sm:$0xff] %v9175_v53   ;;  %v3980_v57 = vpop.f32.mrf.mxu2  ;;  %v4260_v58 = vpop.f32.mrf.mxu3 }
  0xa9   : > { %10347 = vst [vmem:[%s10839_s18 + $0x1c0] sm:$0xff] %v9455_v54   ;;  %v6114_v61 = vadd.f32 %v10824_v40, %v3980_v57  ;;  %v6226_v62 = vadd.f32 %v10824_v40, %v4260_v58  ;;  %v3423_v63 = vpop.f32.mrf.mxu0  ;;  %v3703_v0 = vpop.f32.mrf.mxu1 }
  0xaa   : > { %v5891_v9 = vadd.f32 %v10824_v40, %v3423_v63  ;;  %v6003_v10 = vadd.f32 %v10824_v40, %v3703_v0 }
  0xab   : > { %v6562_v5 = vmax.f32 %v6114_v61, 0.0  ;;  %v6674_v6 = vmax.f32 %v6226_v62, 0.0  ;;  %v9012_v61 = vld [vmem:[%s10751_s7 + $0x218] sm:$0xff] }
  0xac   : > { %8727 = vmatmul.msk.bf16.gmra.mxu0 %vm2736_vm0, %v8954_v59  ;;  %8783 = vmatmul.msk.bf16.gmra.mxu1 %vm2736_vm0, %v9010_v60  ;;  %v6339_v17 = vmax.f32 %v5891_v9, 0.0  ;;  %v6451_v18 = vmax.f32 %v6003_v10, 0.0  ;;  %v8956_v60 = vld [vmem:[%s10751_s7 + $0x58] sm:$0xff] }
  0xad   : > { %v9735_v7 = vpack.c.bf16 %v6562_v5, %v6561_v3  ;;  %v10015_v8 = vpack.c.bf16 %v6674_v6, %v6673_v4  ;;  %8839 = vmatmul.msk.bf16.gmra.mxu2 %vm2736_vm0, %v9066_v1  ;;  %8895 = vmatmul.msk.bf16.gmra.mxu3 %vm2736_vm0, %v9122_v2  ;;  %v9068_v2 = vld [vmem:[%s10751_s7 + $0x3d8] sm:$0xff] }
  0xae   : > { %v9124_v3 = vld [vmem:[%s10751_s7 + $0x598] sm:$0xff] }
  0xaf   : > { %10403 = vst [vmem:[%s10839_s18 + $0x380] sm:$0xff] %v9735_v7  }
  0xb0   : > { %10459 = vst [vmem:[%s10839_s18 + $0x540] sm:$0xff] %v10015_v8   ;;  %v3983_v11 = vpop.f32.mrf.mxu2  ;;  %v4263_v12 = vpop.f32.mrf.mxu3 }
  0xb1   : > { %v3425_v13 = vpop.f32.mrf.mxu0  ;;  %v3705_v14 = vpop.f32.mrf.mxu1  ;;  %v6115_v23 = vadd.f32 %v10824_v40, %v3983_v11  ;;  %v6227_v24 = vadd.f32 %v10824_v40, %v4263_v12 }
  0xb2   : > { %v5892_v15 = vadd.f32 %v10824_v40, %v3425_v13  ;;  %v6004_v16 = vadd.f32 %v10824_v40, %v3705_v14 }
  0xb3   : > { %v6563_v35 = vmax.f32 %v6115_v23, 0.0  ;;  %v6675_v36 = vmax.f32 %v6227_v24, 0.0 }
  0xb4   : > { %v6340_v19 = vmax.f32 %v5892_v15, 0.0  ;;  %v6452_v20 = vmax.f32 %v6004_v16, 0.0 }
  0xb6   : > { %v9180_v21 = vpack.c.bf16 %v6340_v19, %v6339_v17  ;;  %v9460_v22 = vpack.c.bf16 %v6452_v20, %v6451_v18 }
  0xb8   : > { %10292 = vst [vmem:[%s10839_s18 + $0x8] sm:$0xff] %v9180_v21   ;;  %v3985_v25 = vpop.f32.mrf.mxu2  ;;  %v4265_v26 = vpop.f32.mrf.mxu3 }
  0xb9   : > { %10348 = vst [vmem:[%s10839_s18 + $0x1c8] sm:$0xff] %v9460_v22   ;;  %v6116_v29 = vadd.f32 %v10824_v40, %v3985_v25  ;;  %v6228_v30 = vadd.f32 %v10824_v40, %v4265_v26  ;;  %v3428_v31 = vpop.f32.mrf.mxu0  ;;  %v3708_v32 = vpop.f32.mrf.mxu1 }
  0xba   : > { %v5893_v42 = vadd.f32 %v10824_v40, %v3428_v31  ;;  %v6005_v43 = vadd.f32 %v10824_v40, %v3708_v32 }
  0xbb   : > { %v6564_v37 = vmax.f32 %v6116_v29, 0.0  ;;  %v6676_v38 = vmax.f32 %v6228_v30, 0.0  ;;  %v9013_v29 = vld [vmem:[%s10751_s7 + $0x220] sm:$0xff] }
  0xbc   : > { %8728 = vmatmul.msk.bf16.gmra.mxu0 %vm2736_vm0, %v8955_v27  ;;  %8784 = vmatmul.msk.bf16.gmra.mxu1 %vm2736_vm0, %v9011_v28  ;;  %v6341_v50 = vmax.f32 %v5893_v42, 0.0  ;;  %v6453_v51 = vmax.f32 %v6005_v43, 0.0  ;;  %v8957_v28 = vld [vmem:[%s10751_s7 + $0x60] sm:$0xff] }
  0xbd   : > { %v9740_v39 = vpack.c.bf16 %v6564_v37, %v6563_v35  ;;  %v10020_v41 = vpack.c.bf16 %v6676_v38, %v6675_v36  ;;  %8840 = vmatmul.msk.bf16.gmra.mxu2 %vm2736_vm0, %v9067_v33  ;;  %8896 = vmatmul.msk.bf16.gmra.mxu3 %vm2736_vm0, %v9123_v34  ;;  %v9069_v34 = vld [vmem:[%s10751_s7 + $0x3e0] sm:$0xff] }
  0xbe   : > { %v9125_v35 = vld [vmem:[%s10751_s7 + $0x5a0] sm:$0xff] }
  0xbf   : > { %10404 = vst [vmem:[%s10839_s18 + $0x388] sm:$0xff] %v9740_v39  }
  0xc0   : > { %10460 = vst [vmem:[%s10839_s18 + $0x548] sm:$0xff] %v10020_v41   ;;  %v3988_v44 = vpop.f32.mrf.mxu2  ;;  %v4268_v45 = vpop.f32.mrf.mxu3 }
  0xc1   : > { %v3430_v46 = vpop.f32.mrf.mxu0  ;;  %v3710_v47 = vpop.f32.mrf.mxu1  ;;  %v6117_v56 = vadd.f32 %v10824_v40, %v3988_v44  ;;  %v6229_v57 = vadd.f32 %v10824_v40, %v4268_v45 }
  0xc2   : > { %v5894_v48 = vadd.f32 %v10824_v40, %v3430_v46  ;;  %v6006_v49 = vadd.f32 %v10824_v40, %v3710_v47 }
  0xc3   : > { %v6565_v4 = vmax.f32 %v6117_v56, 0.0  ;;  %v6677_v5 = vmax.f32 %v6229_v57, 0.0 }
  0xc4   : > { %v6342_v52 = vmax.f32 %v5894_v48, 0.0  ;;  %v6454_v53 = vmax.f32 %v6006_v49, 0.0 }
  0xc6   : > { %v9185_v54 = vpack.c.bf16 %v6342_v52, %v6341_v50  ;;  %v9465_v55 = vpack.c.bf16 %v6454_v53, %v6453_v51 }
  0xc8   : > { %10293 = vst [vmem:[%s10839_s18 + $0x10] sm:$0xff] %v9185_v54   ;;  %v3990_v58 = vpop.f32.mrf.mxu2  ;;  %v4270_v59 = vpop.f32.mrf.mxu3 }
  0xc9   : > { %10349 = vst [vmem:[%s10839_s18 + $0x1d0] sm:$0xff] %v9465_v55   ;;  %v6118_v62 = vadd.f32 %v10824_v40, %v3990_v58  ;;  %v6230_v63 = vadd.f32 %v10824_v40, %v4270_v59  ;;  %v3433_v0 = vpop.f32.mrf.mxu0  ;;  %v3713_v1 = vpop.f32.mrf.mxu1 }
  0xca   : > { %v5895_v10 = vadd.f32 %v10824_v40, %v3433_v0  ;;  %v6007_v11 = vadd.f32 %v10824_v40, %v3713_v1 }
  0xcb   : > { %v6566_v6 = vmax.f32 %v6118_v62, 0.0  ;;  %v6678_v7 = vmax.f32 %v6230_v63, 0.0  ;;  %v9014_v62 = vld [vmem:[%s10751_s7 + $0x228] sm:$0xff] }
  0xcc   : > { %8729 = vmatmul.msk.bf16.gmra.mxu0 %vm2736_vm0, %v8956_v60  ;;  %8785 = vmatmul.msk.bf16.gmra.mxu1 %vm2736_vm0, %v9012_v61  ;;  %v6343_v18 = vmax.f32 %v5895_v10, 0.0  ;;  %v6455_v19 = vmax.f32 %v6007_v11, 0.0  ;;  %v8958_v61 = vld [vmem:[%s10751_s7 + $0x68] sm:$0xff] }
  0xcd   : > { %v9745_v8 = vpack.c.bf16 %v6566_v6, %v6565_v4  ;;  %v10025_v9 = vpack.c.bf16 %v6678_v7, %v6677_v5  ;;  %8841 = vmatmul.msk.bf16.gmra.mxu2 %vm2736_vm0, %v9068_v2  ;;  %8897 = vmatmul.msk.bf16.gmra.mxu3 %vm2736_vm0, %v9124_v3  ;;  %v9070_v3 = vld [vmem:[%s10751_s7 + $0x3e8] sm:$0xff] }
  0xce   : > { %v9126_v4 = vld [vmem:[%s10751_s7 + $0x5a8] sm:$0xff] }
  0xcf   : > { %10405 = vst [vmem:[%s10839_s18 + $0x390] sm:$0xff] %v9745_v8  }
  0xd0   : > { %10461 = vst [vmem:[%s10839_s18 + $0x550] sm:$0xff] %v10025_v9   ;;  %v3993_v12 = vpop.f32.mrf.mxu2  ;;  %v4273_v13 = vpop.f32.mrf.mxu3 }
  0xd1   : > { %v3435_v14 = vpop.f32.mrf.mxu0  ;;  %v3715_v15 = vpop.f32.mrf.mxu1  ;;  %v6119_v24 = vadd.f32 %v10824_v40, %v3993_v12  ;;  %v6231_v25 = vadd.f32 %v10824_v40, %v4273_v13 }
  0xd2   : > { %v5896_v16 = vadd.f32 %v10824_v40, %v3435_v14  ;;  %v6008_v17 = vadd.f32 %v10824_v40, %v3715_v15 }
  0xd3   : > { %v6567_v36 = vmax.f32 %v6119_v24, 0.0  ;;  %v6679_v37 = vmax.f32 %v6231_v25, 0.0 }
  0xd4   : > { %v6344_v20 = vmax.f32 %v5896_v16, 0.0  ;;  %v6456_v21 = vmax.f32 %v6008_v17, 0.0 }
  0xd6   : > { %v9190_v22 = vpack.c.bf16 %v6344_v20, %v6343_v18  ;;  %v9470_v23 = vpack.c.bf16 %v6456_v21, %v6455_v19 }
  0xd8   : > { %10294 = vst [vmem:[%s10839_s18 + $0x18] sm:$0xff] %v9190_v22   ;;  %v3995_v26 = vpop.f32.mrf.mxu2  ;;  %v4275_v27 = vpop.f32.mrf.mxu3 }
  0xd9   : > { %10350 = vst [vmem:[%s10839_s18 + $0x1d8] sm:$0xff] %v9470_v23   ;;  %v6120_v30 = vadd.f32 %v10824_v40, %v3995_v26  ;;  %v6232_v31 = vadd.f32 %v10824_v40, %v4275_v27  ;;  %v3438_v32 = vpop.f32.mrf.mxu0  ;;  %v3718_v33 = vpop.f32.mrf.mxu1 }
  0xda   : > { %v5897_v43 = vadd.f32 %v10824_v40, %v3438_v32  ;;  %v6009_v44 = vadd.f32 %v10824_v40, %v3718_v33 }
  0xdb   : > { %v6568_v38 = vmax.f32 %v6120_v30, 0.0  ;;  %v6680_v39 = vmax.f32 %v6232_v31, 0.0  ;;  %v9015_v30 = vld [vmem:[%s10751_s7 + $0x230] sm:$0xff] }
  0xdc   : > { %8730 = vmatmul.msk.bf16.gmra.mxu0 %vm2736_vm0, %v8957_v28  ;;  %8786 = vmatmul.msk.bf16.gmra.mxu1 %vm2736_vm0, %v9013_v29  ;;  %v6345_v51 = vmax.f32 %v5897_v43, 0.0  ;;  %v6457_v52 = vmax.f32 %v6009_v44, 0.0  ;;  %v8959_v29 = vld [vmem:[%s10751_s7 + $0x70] sm:$0xff] }
  0xdd   : > { %v9750_v41 = vpack.c.bf16 %v6568_v38, %v6567_v36  ;;  %v10030_v42 = vpack.c.bf16 %v6680_v39, %v6679_v37  ;;  %8842 = vmatmul.msk.bf16.gmra.mxu2 %vm2736_vm0, %v9069_v34  ;;  %8898 = vmatmul.msk.bf16.gmra.mxu3 %vm2736_vm0, %v9125_v35  ;;  %v9071_v35 = vld [vmem:[%s10751_s7 + $0x3f0] sm:$0xff] }
  0xde   : > { %v9127_v36 = vld [vmem:[%s10751_s7 + $0x5b0] sm:$0xff] }
  0xdf   : > { %10406 = vst [vmem:[%s10839_s18 + $0x398] sm:$0xff] %v9750_v41  }
  0xe0   : > { %10462 = vst [vmem:[%s10839_s18 + $0x558] sm:$0xff] %v10030_v42   ;;  %v3998_v45 = vpop.f32.mrf.mxu2  ;;  %v4278_v46 = vpop.f32.mrf.mxu3 }
  0xe1   : > { %v3440_v47 = vpop.f32.mrf.mxu0  ;;  %v3720_v48 = vpop.f32.mrf.mxu1  ;;  %v6121_v57 = vadd.f32 %v10824_v40, %v3998_v45  ;;  %v6233_v58 = vadd.f32 %v10824_v40, %v4278_v46 }
  0xe2   : > { %v5898_v49 = vadd.f32 %v10824_v40, %v3440_v47  ;;  %v6010_v50 = vadd.f32 %v10824_v40, %v3720_v48 }
  0xe3   : > { %v6569_v5 = vmax.f32 %v6121_v57, 0.0  ;;  %v6681_v6 = vmax.f32 %v6233_v58, 0.0 }
  0xe4   : > { %v6346_v53 = vmax.f32 %v5898_v49, 0.0  ;;  %v6458_v54 = vmax.f32 %v6010_v50, 0.0 }
  0xe6   : > { %v9195_v55 = vpack.c.bf16 %v6346_v53, %v6345_v51  ;;  %v9475_v56 = vpack.c.bf16 %v6458_v54, %v6457_v52 }
  0xe8   : > { %10295 = vst [vmem:[%s10839_s18 + $0x20] sm:$0xff] %v9195_v55   ;;  %v4000_v59 = vpop.f32.mrf.mxu2  ;;  %v4280_v60 = vpop.f32.mrf.mxu3 }
  0xe9   : > { %10351 = vst [vmem:[%s10839_s18 + $0x1e0] sm:$0xff] %v9475_v56   ;;  %v6122_v63 = vadd.f32 %v10824_v40, %v4000_v59  ;;  %v6234_v0 = vadd.f32 %v10824_v40, %v4280_v60  ;;  %v3443_v1 = vpop.f32.mrf.mxu0  ;;  %v3723_v2 = vpop.f32.mrf.mxu1 }
  0xea   : > { %v5899_v11 = vadd.f32 %v10824_v40, %v3443_v1  ;;  %v6011_v12 = vadd.f32 %v10824_v40, %v3723_v2 }
  0xeb   : > { %v6570_v7 = vmax.f32 %v6122_v63, 0.0  ;;  %v6682_v8 = vmax.f32 %v6234_v0, 0.0  ;;  %v9016_v63 = vld [vmem:[%s10751_s7 + $0x238] sm:$0xff] }
  0xec   : > { %8731 = vmatmul.msk.bf16.gmra.mxu0 %vm2736_vm0, %v8958_v61  ;;  %8787 = vmatmul.msk.bf16.gmra.mxu1 %vm2736_vm0, %v9014_v62  ;;  %v6347_v19 = vmax.f32 %v5899_v11, 0.0  ;;  %v6459_v20 = vmax.f32 %v6011_v12, 0.0  ;;  %v8960_v62 = vld [vmem:[%s10751_s7 + $0x78] sm:$0xff] }
  0xed   : > { %v9755_v9 = vpack.c.bf16 %v6570_v7, %v6569_v5  ;;  %v10035_v10 = vpack.c.bf16 %v6682_v8, %v6681_v6  ;;  %8843 = vmatmul.msk.bf16.gmra.mxu2 %vm2736_vm0, %v9070_v3  ;;  %8899 = vmatmul.msk.bf16.gmra.mxu3 %vm2736_vm0, %v9126_v4  ;;  %v9072_v4 = vld [vmem:[%s10751_s7 + $0x3f8] sm:$0xff] }
  0xee   : > { %v9128_v5 = vld [vmem:[%s10751_s7 + $0x5b8] sm:$0xff] }
  0xef   : > { %10407 = vst [vmem:[%s10839_s18 + $0x3a0] sm:$0xff] %v9755_v9  }
  0xf0   : > { %10463 = vst [vmem:[%s10839_s18 + $0x560] sm:$0xff] %v10035_v10   ;;  %v4003_v13 = vpop.f32.mrf.mxu2  ;;  %v4283_v14 = vpop.f32.mrf.mxu3 }
  0xf1   : > { %v3445_v15 = vpop.f32.mrf.mxu0  ;;  %v3725_v16 = vpop.f32.mrf.mxu1  ;;  %v6123_v25 = vadd.f32 %v10824_v40, %v4003_v13  ;;  %v6235_v26 = vadd.f32 %v10824_v40, %v4283_v14 }
  0xf2   : > { %v5900_v17 = vadd.f32 %v10824_v40, %v3445_v15  ;;  %v6012_v18 = vadd.f32 %v10824_v40, %v3725_v16 }
  0xf3   : > { %v6571_v37 = vmax.f32 %v6123_v25, 0.0  ;;  %v6683_v38 = vmax.f32 %v6235_v26, 0.0 }
  0xf4   : > { %v6348_v21 = vmax.f32 %v5900_v17, 0.0  ;;  %v6460_v22 = vmax.f32 %v6012_v18, 0.0 }
  0xf6   : > { %v9200_v23 = vpack.c.bf16 %v6348_v21, %v6347_v19  ;;  %v9480_v24 = vpack.c.bf16 %v6460_v22, %v6459_v20 }
  0xf8   : > { %10296 = vst [vmem:[%s10839_s18 + $0x28] sm:$0xff] %v9200_v23   ;;  %v4005_v27 = vpop.f32.mrf.mxu2  ;;  %v4285_v28 = vpop.f32.mrf.mxu3 }
  0xf9   : > { %10352 = vst [vmem:[%s10839_s18 + $0x1e8] sm:$0xff] %v9480_v24   ;;  %v6124_v31 = vadd.f32 %v10824_v40, %v4005_v27  ;;  %v6236_v32 = vadd.f32 %v10824_v40, %v4285_v28  ;;  %v3448_v33 = vpop.f32.mrf.mxu0  ;;  %v3728_v34 = vpop.f32.mrf.mxu1 }
  0xfa   : > { %v5901_v44 = vadd.f32 %v10824_v40, %v3448_v33  ;;  %v6013_v45 = vadd.f32 %v10824_v40, %v3728_v34 }
  0xfb   : > { %v6572_v39 = vmax.f32 %v6124_v31, 0.0  ;;  %v6684_v41 = vmax.f32 %v6236_v32, 0.0  ;;  %v9017_v31 = vld [vmem:[%s10751_s7 + $0x240] sm:$0xff] }
  0xfc   : > { %8732 = vmatmul.msk.bf16.gmra.mxu0 %vm2736_vm0, %v8959_v29  ;;  %8788 = vmatmul.msk.bf16.gmra.mxu1 %vm2736_vm0, %v9015_v30  ;;  %v6349_v52 = vmax.f32 %v5901_v44, 0.0  ;;  %v6461_v53 = vmax.f32 %v6013_v45, 0.0  ;;  %v8961_v30 = vld [vmem:[%s10751_s7 + $0x80] sm:$0xff] }
  0xfd   : > { %v9760_v42 = vpack.c.bf16 %v6572_v39, %v6571_v37  ;;  %v10040_v43 = vpack.c.bf16 %v6684_v41, %v6683_v38  ;;  %8844 = vmatmul.msk.bf16.gmra.mxu2 %vm2736_vm0, %v9071_v35  ;;  %8900 = vmatmul.msk.bf16.gmra.mxu3 %vm2736_vm0, %v9127_v36  ;;  %v9073_v36 = vld [vmem:[%s10751_s7 + $0x400] sm:$0xff] }
  0xfe   : > { %v9129_v37 = vld [vmem:[%s10751_s7 + $0x5c0] sm:$0xff] }
  0xff   : > { %10408 = vst [vmem:[%s10839_s18 + $0x3a8] sm:$0xff] %v9760_v42  }
 0x100   : > { %10464 = vst [vmem:[%s10839_s18 + $0x568] sm:$0xff] %v10040_v43   ;;  %v4008_v46 = vpop.f32.mrf.mxu2  ;;  %v4288_v47 = vpop.f32.mrf.mxu3 }
 0x101   : > { %v3450_v48 = vpop.f32.mrf.mxu0  ;;  %v3730_v49 = vpop.f32.mrf.mxu1  ;;  %v6125_v58 = vadd.f32 %v10824_v40, %v4008_v46  ;;  %v6237_v59 = vadd.f32 %v10824_v40, %v4288_v47 }
 0x102   : > { %v5902_v50 = vadd.f32 %v10824_v40, %v3450_v48  ;;  %v6014_v51 = vadd.f32 %v10824_v40, %v3730_v49 }
 0x103   : > { %v6573_v6 = vmax.f32 %v6125_v58, 0.0  ;;  %v6685_v7 = vmax.f32 %v6237_v59, 0.0 }
 0x104   : > { %v6350_v54 = vmax.f32 %v5902_v50, 0.0  ;;  %v6462_v55 = vmax.f32 %v6014_v51, 0.0 }
 0x106   : > { %v9205_v56 = vpack.c.bf16 %v6350_v54, %v6349_v52  ;;  %v9485_v57 = vpack.c.bf16 %v6462_v55, %v6461_v53 }
 0x108   : > { %10297 = vst [vmem:[%s10839_s18 + $0x30] sm:$0xff] %v9205_v56   ;;  %v4010_v60 = vpop.f32.mrf.mxu2  ;;  %v4290_v61 = vpop.f32.mrf.mxu3 }
 0x109   : > { %10353 = vst [vmem:[%s10839_s18 + $0x1f0] sm:$0xff] %v9485_v57   ;;  %v6126_v0 = vadd.f32 %v10824_v40, %v4010_v60  ;;  %v6238_v1 = vadd.f32 %v10824_v40, %v4290_v61  ;;  %v3453_v2 = vpop.f32.mrf.mxu0  ;;  %v3733_v3 = vpop.f32.mrf.mxu1 }
 0x10a   : > { %v5903_v12 = vadd.f32 %v10824_v40, %v3453_v2  ;;  %v6015_v13 = vadd.f32 %v10824_v40, %v3733_v3 }
 0x10b   : > { %v6574_v8 = vmax.f32 %v6126_v0, 0.0  ;;  %v6686_v9 = vmax.f32 %v6238_v1, 0.0  ;;  %v9018_v0 = vld [vmem:[%s10751_s7 + $0x248] sm:$0xff] }
 0x10c   : > { %8733 = vmatmul.msk.bf16.gmra.mxu0 %vm2736_vm0, %v8960_v62  ;;  %8789 = vmatmul.msk.bf16.gmra.mxu1 %vm2736_vm0, %v9016_v63  ;;  %v6351_v20 = vmax.f32 %v5903_v12, 0.0  ;;  %v6463_v21 = vmax.f32 %v6015_v13, 0.0  ;;  %v8962_v63 = vld [vmem:[%s10751_s7 + $0x88] sm:$0xff] }
 0x10d   : > { %v9765_v10 = vpack.c.bf16 %v6574_v8, %v6573_v6  ;;  %v10045_v11 = vpack.c.bf16 %v6686_v9, %v6685_v7  ;;  %8845 = vmatmul.msk.bf16.gmra.mxu2 %vm2736_vm0, %v9072_v4  ;;  %8901 = vmatmul.msk.bf16.gmra.mxu3 %vm2736_vm0, %v9128_v5  ;;  %v9074_v5 = vld [vmem:[%s10751_s7 + $0x408] sm:$0xff] }
 0x10e   : > { %v9130_v6 = vld [vmem:[%s10751_s7 + $0x5c8] sm:$0xff] }
 0x10f   : > { %10409 = vst [vmem:[%s10839_s18 + $0x3b0] sm:$0xff] %v9765_v10  }
 0x110   : > { %10465 = vst [vmem:[%s10839_s18 + $0x570] sm:$0xff] %v10045_v11   ;;  %v4013_v14 = vpop.f32.mrf.mxu2  ;;  %v4293_v15 = vpop.f32.mrf.mxu3 }
 0x111   : > { %v3455_v16 = vpop.f32.mrf.mxu0  ;;  %v3735_v17 = vpop.f32.mrf.mxu1  ;;  %v6127_v26 = vadd.f32 %v10824_v40, %v4013_v14  ;;  %v6239_v27 = vadd.f32 %v10824_v40, %v4293_v15 }
 0x112   : > { %v5904_v18 = vadd.f32 %v10824_v40, %v3455_v16  ;;  %v6016_v19 = vadd.f32 %v10824_v40, %v3735_v17 }
 0x113   : > { %v6575_v38 = vmax.f32 %v6127_v26, 0.0  ;;  %v6687_v39 = vmax.f32 %v6239_v27, 0.0 }
 0x114   : > { %v6352_v22 = vmax.f32 %v5904_v18, 0.0  ;;  %v6464_v23 = vmax.f32 %v6016_v19, 0.0 }
 0x116   : > { %v9210_v24 = vpack.c.bf16 %v6352_v22, %v6351_v20  ;;  %v9490_v25 = vpack.c.bf16 %v6464_v23, %v6463_v21 }
 0x118   : > { %10298 = vst [vmem:[%s10839_s18 + $0x38] sm:$0xff] %v9210_v24   ;;  %v4015_v28 = vpop.f32.mrf.mxu2  ;;  %v4295_v29 = vpop.f32.mrf.mxu3 }
 0x119   : > { %10354 = vst [vmem:[%s10839_s18 + $0x1f8] sm:$0xff] %v9490_v25   ;;  %v6128_v32 = vadd.f32 %v10824_v40, %v4015_v28  ;;  %v6240_v33 = vadd.f32 %v10824_v40, %v4295_v29  ;;  %v3458_v34 = vpop.f32.mrf.mxu0  ;;  %v3738_v35 = vpop.f32.mrf.mxu1 }
 0x11a   : > { %v5905_v45 = vadd.f32 %v10824_v40, %v3458_v34  ;;  %v6017_v46 = vadd.f32 %v10824_v40, %v3738_v35 }
 0x11b   : > { %v6576_v41 = vmax.f32 %v6128_v32, 0.0  ;;  %v6688_v42 = vmax.f32 %v6240_v33, 0.0  ;;  %v9019_v32 = vld [vmem:[%s10751_s7 + $0x250] sm:$0xff] }
 0x11c   : > { %8734 = vmatmul.msk.bf16.gmra.mxu0 %vm2736_vm0, %v8961_v30  ;;  %8790 = vmatmul.msk.bf16.gmra.mxu1 %vm2736_vm0, %v9017_v31  ;;  %v6353_v53 = vmax.f32 %v5905_v45, 0.0  ;;  %v6465_v54 = vmax.f32 %v6017_v46, 0.0  ;;  %v8963_v31 = vld [vmem:[%s10751_s7 + $0x90] sm:$0xff] }
 0x11d   : > { %v9770_v43 = vpack.c.bf16 %v6576_v41, %v6575_v38  ;;  %v10050_v44 = vpack.c.bf16 %v6688_v42, %v6687_v39  ;;  %8846 = vmatmul.msk.bf16.gmra.mxu2 %vm2736_vm0, %v9073_v36  ;;  %8902 = vmatmul.msk.bf16.gmra.mxu3 %vm2736_vm0, %v9129_v37  ;;  %v9075_v37 = vld [vmem:[%s10751_s7 + $0x410] sm:$0xff] }
 0x11e   : > { %v9131_v38 = vld [vmem:[%s10751_s7 + $0x5d0] sm:$0xff] }
 0x11f   : > { %10410 = vst [vmem:[%s10839_s18 + $0x3b8] sm:$0xff] %v9770_v43  }
 0x120   : > { %10466 = vst [vmem:[%s10839_s18 + $0x578] sm:$0xff] %v10050_v44   ;;  %v4018_v47 = vpop.f32.mrf.mxu2  ;;  %v4298_v48 = vpop.f32.mrf.mxu3 }
 0x121   : > { %v3460_v49 = vpop.f32.mrf.mxu0  ;;  %v3740_v50 = vpop.f32.mrf.mxu1  ;;  %v6129_v59 = vadd.f32 %v10824_v40, %v4018_v47  ;;  %v6241_v60 = vadd.f32 %v10824_v40, %v4298_v48 }
 0x122   : > { %v5906_v51 = vadd.f32 %v10824_v40, %v3460_v49  ;;  %v6018_v52 = vadd.f32 %v10824_v40, %v3740_v50 }
 0x123   : > { %v6577_v7 = vmax.f32 %v6129_v59, 0.0  ;;  %v6689_v8 = vmax.f32 %v6241_v60, 0.0 }
 0x124   : > { %v6354_v55 = vmax.f32 %v5906_v51, 0.0  ;;  %v6466_v56 = vmax.f32 %v6018_v52, 0.0 }
 0x126   : > { %v9215_v57 = vpack.c.bf16 %v6354_v55, %v6353_v53  ;;  %v9495_v58 = vpack.c.bf16 %v6466_v56, %v6465_v54 }
 0x128   : > { %10299 = vst [vmem:[%s10839_s18 + $0x40] sm:$0xff] %v9215_v57   ;;  %v4020_v61 = vpop.f32.mrf.mxu2  ;;  %v4300_v62 = vpop.f32.mrf.mxu3 }
 0x129   : > { %10355 = vst [vmem:[%s10839_s18 + $0x200] sm:$0xff] %v9495_v58   ;;  %v6130_v1 = vadd.f32 %v10824_v40, %v4020_v61  ;;  %v6242_v2 = vadd.f32 %v10824_v40, %v4300_v62  ;;  %v3463_v3 = vpop.f32.mrf.mxu0  ;;  %v3743_v4 = vpop.f32.mrf.mxu1 }
 0x12a   : > { %v5907_v13 = vadd.f32 %v10824_v40, %v3463_v3  ;;  %v6019_v14 = vadd.f32 %v10824_v40, %v3743_v4 }
 0x12b   : > { %v6578_v9 = vmax.f32 %v6130_v1, 0.0  ;;  %v6690_v10 = vmax.f32 %v6242_v2, 0.0  ;;  %v9020_v1 = vld [vmem:[%s10751_s7 + $0x258] sm:$0xff] }
 0x12c   : > { %8735 = vmatmul.msk.bf16.gmra.mxu0 %vm2736_vm0, %v8962_v63  ;;  %8791 = vmatmul.msk.bf16.gmra.mxu1 %vm2736_vm0, %v9018_v0  ;;  %v6355_v21 = vmax.f32 %v5907_v13, 0.0  ;;  %v6467_v22 = vmax.f32 %v6019_v14, 0.0  ;;  %v8964_v0 = vld [vmem:[%s10751_s7 + $0x98] sm:$0xff] }
 0x12d   : > { %v9775_v11 = vpack.c.bf16 %v6578_v9, %v6577_v7  ;;  %v10055_v12 = vpack.c.bf16 %v6690_v10, %v6689_v8  ;;  %8847 = vmatmul.msk.bf16.gmra.mxu2 %vm2736_vm0, %v9074_v5  ;;  %8903 = vmatmul.msk.bf16.gmra.mxu3 %vm2736_vm0, %v9130_v6  ;;  %v9076_v6 = vld [vmem:[%s10751_s7 + $0x418] sm:$0xff] }
 0x12e   : > { %v9132_v7 = vld [vmem:[%s10751_s7 + $0x5d8] sm:$0xff] }
 0x12f   : > { %10411 = vst [vmem:[%s10839_s18 + $0x3c0] sm:$0xff] %v9775_v11  }
 0x130   : > { %10467 = vst [vmem:[%s10839_s18 + $0x580] sm:$0xff] %v10055_v12   ;;  %v4023_v15 = vpop.f32.mrf.mxu2  ;;  %v4303_v16 = vpop.f32.mrf.mxu3 }
 0x131   : > { %v3465_v17 = vpop.f32.mrf.mxu0  ;;  %v3745_v18 = vpop.f32.mrf.mxu1  ;;  %v6131_v27 = vadd.f32 %v10824_v40, %v4023_v15  ;;  %v6243_v28 = vadd.f32 %v10824_v40, %v4303_v16 }
 0x132   : > { %v5908_v19 = vadd.f32 %v10824_v40, %v3465_v17  ;;  %v6020_v20 = vadd.f32 %v10824_v40, %v3745_v18 }
 0x133   : > { %v6579_v39 = vmax.f32 %v6131_v27, 0.0  ;;  %v6691_v41 = vmax.f32 %v6243_v28, 0.0 }
 0x134   : > { %v6356_v23 = vmax.f32 %v5908_v19, 0.0  ;;  %v6468_v24 = vmax.f32 %v6020_v20, 0.0 }
 0x136   : > { %v9220_v25 = vpack.c.bf16 %v6356_v23, %v6355_v21  ;;  %v9500_v26 = vpack.c.bf16 %v6468_v24, %v6467_v22 }
 0x138   : > { %10300 = vst [vmem:[%s10839_s18 + $0x48] sm:$0xff] %v9220_v25   ;;  %v4025_v29 = vpop.f32.mrf.mxu2  ;;  %v4305_v30 = vpop.f32.mrf.mxu3 }
 0x139   : > { %10356 = vst [vmem:[%s10839_s18 + $0x208] sm:$0xff] %v9500_v26   ;;  %v6132_v33 = vadd.f32 %v10824_v40, %v4025_v29  ;;  %v6244_v34 = vadd.f32 %v10824_v40, %v4305_v30  ;;  %v3468_v35 = vpop.f32.mrf.mxu0  ;;  %v3748_v36 = vpop.f32.mrf.mxu1 }
 0x13a   : > { %v5909_v46 = vadd.f32 %v10824_v40, %v3468_v35  ;;  %v6021_v47 = vadd.f32 %v10824_v40, %v3748_v36 }
 0x13b   : > { %v6580_v42 = vmax.f32 %v6132_v33, 0.0  ;;  %v6692_v43 = vmax.f32 %v6244_v34, 0.0  ;;  %v9021_v33 = vld [vmem:[%s10751_s7 + $0x260] sm:$0xff] }
 0x13c   : > { %8736 = vmatmul.msk.bf16.gmra.mxu0 %vm2736_vm0, %v8963_v31  ;;  %8792 = vmatmul.msk.bf16.gmra.mxu1 %vm2736_vm0, %v9019_v32  ;;  %v6357_v54 = vmax.f32 %v5909_v46, 0.0  ;;  %v6469_v55 = vmax.f32 %v6021_v47, 0.0  ;;  %v8965_v32 = vld [vmem:[%s10751_s7 + $0xa0] sm:$0xff] }
 0x13d   : > { %v9780_v44 = vpack.c.bf16 %v6580_v42, %v6579_v39  ;;  %v10060_v45 = vpack.c.bf16 %v6692_v43, %v6691_v41  ;;  %8848 = vmatmul.msk.bf16.gmra.mxu2 %vm2736_vm0, %v9075_v37  ;;  %8904 = vmatmul.msk.bf16.gmra.mxu3 %vm2736_vm0, %v9131_v38  ;;  %v9077_v38 = vld [vmem:[%s10751_s7 + $0x420] sm:$0xff] }
 0x13e   : > { %v9133_v39 = vld [vmem:[%s10751_s7 + $0x5e0] sm:$0xff] }
 0x13f   : > { %10412 = vst [vmem:[%s10839_s18 + $0x3c8] sm:$0xff] %v9780_v44  }
 0x140   : > { %10468 = vst [vmem:[%s10839_s18 + $0x588] sm:$0xff] %v10060_v45   ;;  %v4028_v48 = vpop.f32.mrf.mxu2  ;;  %v4308_v49 = vpop.f32.mrf.mxu3 }
 0x141   : > { %v3470_v50 = vpop.f32.mrf.mxu0  ;;  %v3750_v51 = vpop.f32.mrf.mxu1  ;;  %v6133_v60 = vadd.f32 %v10824_v40, %v4028_v48  ;;  %v6245_v61 = vadd.f32 %v10824_v40, %v4308_v49 }
 0x142   : > { %v5910_v52 = vadd.f32 %v10824_v40, %v3470_v50  ;;  %v6022_v53 = vadd.f32 %v10824_v40, %v3750_v51 }
 0x143   : > { %v6581_v8 = vmax.f32 %v6133_v60, 0.0  ;;  %v6693_v9 = vmax.f32 %v6245_v61, 0.0 }
 0x144   : > { %v6358_v56 = vmax.f32 %v5910_v52, 0.0  ;;  %v6470_v57 = vmax.f32 %v6022_v53, 0.0 }
 0x146   : > { %v9225_v58 = vpack.c.bf16 %v6358_v56, %v6357_v54  ;;  %v9505_v59 = vpack.c.bf16 %v6470_v57, %v6469_v55 }
 0x148   : > { %10301 = vst [vmem:[%s10839_s18 + $0x50] sm:$0xff] %v9225_v58   ;;  %v4030_v62 = vpop.f32.mrf.mxu2  ;;  %v4310_v63 = vpop.f32.mrf.mxu3 }
 0x149   : > { %10357 = vst [vmem:[%s10839_s18 + $0x210] sm:$0xff] %v9505_v59   ;;  %v6134_v2 = vadd.f32 %v10824_v40, %v4030_v62  ;;  %v6246_v3 = vadd.f32 %v10824_v40, %v4310_v63  ;;  %v3473_v4 = vpop.f32.mrf.mxu0  ;;  %v3753_v5 = vpop.f32.mrf.mxu1 }
 0x14a   : > { %v5911_v14 = vadd.f32 %v10824_v40, %v3473_v4  ;;  %v6023_v15 = vadd.f32 %v10824_v40, %v3753_v5 }
 0x14b   : > { %v6582_v10 = vmax.f32 %v6134_v2, 0.0  ;;  %v6694_v11 = vmax.f32 %v6246_v3, 0.0  ;;  %v9022_v2 = vld [vmem:[%s10751_s7 + $0x268] sm:$0xff] }
 0x14c   : > { %8737 = vmatmul.msk.bf16.gmra.mxu0 %vm2736_vm0, %v8964_v0  ;;  %8793 = vmatmul.msk.bf16.gmra.mxu1 %vm2736_vm0, %v9020_v1  ;;  %v6359_v22 = vmax.f32 %v5911_v14, 0.0  ;;  %v6471_v23 = vmax.f32 %v6023_v15, 0.0  ;;  %v8966_v1 = vld [vmem:[%s10751_s7 + $0xa8] sm:$0xff] }
 0x14d   : > { %v9785_v12 = vpack.c.bf16 %v6582_v10, %v6581_v8  ;;  %v10065_v13 = vpack.c.bf16 %v6694_v11, %v6693_v9  ;;  %8849 = vmatmul.msk.bf16.gmra.mxu2 %vm2736_vm0, %v9076_v6  ;;  %8905 = vmatmul.msk.bf16.gmra.mxu3 %vm2736_vm0, %v9132_v7  ;;  %v9078_v7 = vld [vmem:[%s10751_s7 + $0x428] sm:$0xff] }
 0x14e   : > { %v9134_v8 = vld [vmem:[%s10751_s7 + $0x5e8] sm:$0xff] }
 0x14f   : > { %10413 = vst [vmem:[%s10839_s18 + $0x3d0] sm:$0xff] %v9785_v12  }
 0x150   : > { %10469 = vst [vmem:[%s10839_s18 + $0x590] sm:$0xff] %v10065_v13   ;;  %v4033_v16 = vpop.f32.mrf.mxu2  ;;  %v4313_v17 = vpop.f32.mrf.mxu3 }
 0x151   : > { %v3475_v18 = vpop.f32.mrf.mxu0  ;;  %v3755_v19 = vpop.f32.mrf.mxu1  ;;  %v6135_v28 = vadd.f32 %v10824_v40, %v4033_v16  ;;  %v6247_v29 = vadd.f32 %v10824_v40, %v4313_v17 }
 0x152   : > { %v5912_v20 = vadd.f32 %v10824_v40, %v3475_v18  ;;  %v6024_v21 = vadd.f32 %v10824_v40, %v3755_v19 }
 0x153   : > { %v6583_v41 = vmax.f32 %v6135_v28, 0.0  ;;  %v6695_v42 = vmax.f32 %v6247_v29, 0.0 }
 0x154   : > { %v6360_v24 = vmax.f32 %v5912_v20, 0.0  ;;  %v6472_v25 = vmax.f32 %v6024_v21, 0.0 }
 0x156   : > { %v9230_v26 = vpack.c.bf16 %v6360_v24, %v6359_v22  ;;  %v9510_v27 = vpack.c.bf16 %v6472_v25, %v6471_v23 }
 0x158   : > { %10302 = vst [vmem:[%s10839_s18 + $0x58] sm:$0xff] %v9230_v26   ;;  %v4035_v30 = vpop.f32.mrf.mxu2  ;;  %v4315_v31 = vpop.f32.mrf.mxu3 }
 0x159   : > { %10358 = vst [vmem:[%s10839_s18 + $0x218] sm:$0xff] %v9510_v27   ;;  %v6136_v34 = vadd.f32 %v10824_v40, %v4035_v30  ;;  %v6248_v35 = vadd.f32 %v10824_v40, %v4315_v31  ;;  %v3478_v36 = vpop.f32.mrf.mxu0  ;;  %v3758_v37 = vpop.f32.mrf.mxu1 }
 0x15a   : > { %v5913_v47 = vadd.f32 %v10824_v40, %v3478_v36  ;;  %v6025_v48 = vadd.f32 %v10824_v40, %v3758_v37 }
 0x15b   : > { %v6584_v43 = vmax.f32 %v6136_v34, 0.0  ;;  %v6696_v44 = vmax.f32 %v6248_v35, 0.0  ;;  %v9023_v34 = vld [vmem:[%s10751_s7 + $0x270] sm:$0xff] }
 0x15c   : > { %8738 = vmatmul.msk.bf16.gmra.mxu0 %vm2736_vm0, %v8965_v32  ;;  %8794 = vmatmul.msk.bf16.gmra.mxu1 %vm2736_vm0, %v9021_v33  ;;  %v6361_v55 = vmax.f32 %v5913_v47, 0.0  ;;  %v6473_v56 = vmax.f32 %v6025_v48, 0.0  ;;  %v8967_v33 = vld [vmem:[%s10751_s7 + $0xb0] sm:$0xff] }
 0x15d   : > { %v9790_v45 = vpack.c.bf16 %v6584_v43, %v6583_v41  ;;  %v10070_v46 = vpack.c.bf16 %v6696_v44, %v6695_v42  ;;  %8850 = vmatmul.msk.bf16.gmra.mxu2 %vm2736_vm0, %v9077_v38  ;;  %8906 = vmatmul.msk.bf16.gmra.mxu3 %vm2736_vm0, %v9133_v39  ;;  %v9079_v39 = vld [vmem:[%s10751_s7 + $0x430] sm:$0xff] }
 0x15e   : > { %v9135_v41 = vld [vmem:[%s10751_s7 + $0x5f0] sm:$0xff] }
 0x15f   : > { %10414 = vst [vmem:[%s10839_s18 + $0x3d8] sm:$0xff] %v9790_v45  }
 0x160   : > { %10470 = vst [vmem:[%s10839_s18 + $0x598] sm:$0xff] %v10070_v46   ;;  %v4038_v49 = vpop.f32.mrf.mxu2  ;;  %v4318_v50 = vpop.f32.mrf.mxu3 }
 0x161   : > { %v3480_v51 = vpop.f32.mrf.mxu0  ;;  %v3760_v52 = vpop.f32.mrf.mxu1  ;;  %v6137_v61 = vadd.f32 %v10824_v40, %v4038_v49  ;;  %v6249_v62 = vadd.f32 %v10824_v40, %v4318_v50 }
 0x162   : > { %v5914_v53 = vadd.f32 %v10824_v40, %v3480_v51  ;;  %v6026_v54 = vadd.f32 %v10824_v40, %v3760_v52 }
 0x163   : > { %v6585_v9 = vmax.f32 %v6137_v61, 0.0  ;;  %v6697_v10 = vmax.f32 %v6249_v62, 0.0 }
 0x164   : > { %v6362_v57 = vmax.f32 %v5914_v53, 0.0  ;;  %v6474_v58 = vmax.f32 %v6026_v54, 0.0 }
 0x166   : > { %v9235_v59 = vpack.c.bf16 %v6362_v57, %v6361_v55  ;;  %v9515_v60 = vpack.c.bf16 %v6474_v58, %v6473_v56 }
 0x168   : > { %10303 = vst [vmem:[%s10839_s18 + $0x60] sm:$0xff] %v9235_v59   ;;  %v4040_v63 = vpop.f32.mrf.mxu2  ;;  %v4320_v0 = vpop.f32.mrf.mxu3 }
 0x169   : > { %10359 = vst [vmem:[%s10839_s18 + $0x220] sm:$0xff] %v9515_v60   ;;  %v6138_v3 = vadd.f32 %v10824_v40, %v4040_v63  ;;  %v6250_v4 = vadd.f32 %v10824_v40, %v4320_v0  ;;  %v3483_v5 = vpop.f32.mrf.mxu0  ;;  %v3763_v6 = vpop.f32.mrf.mxu1  ;;  %v11098_v40 = vld [vmem:[%s11944_s2] ss:$0 sm:$0xff] }
 0x16a   : > { %v5915_v15 = vadd.f32 %v11098_v40, %v3483_v5  ;;  %v6027_v16 = vadd.f32 %v11098_v40, %v3763_v6 }
 0x16b   : > { %v6586_v11 = vmax.f32 %v6138_v3, 0.0  ;;  %v6698_v12 = vmax.f32 %v6250_v4, 0.0  ;;  %v9024_v3 = vld [vmem:[%s10751_s7 + $0x278] sm:$0xff] }
 0x16c   : > { %8739 = vmatmul.msk.bf16.gmra.mxu0 %vm2736_vm0, %v8966_v1  ;;  %8795 = vmatmul.msk.bf16.gmra.mxu1 %vm2736_vm0, %v9022_v2  ;;  %v6363_v23 = vmax.f32 %v5915_v15, 0.0  ;;  %v6475_v24 = vmax.f32 %v6027_v16, 0.0  ;;  %v8968_v2 = vld [vmem:[%s10751_s7 + $0xb8] sm:$0xff] }
 0x16d   : > { %v9795_v13 = vpack.c.bf16 %v6586_v11, %v6585_v9  ;;  %v10075_v14 = vpack.c.bf16 %v6698_v12, %v6697_v10  ;;  %8851 = vmatmul.msk.bf16.gmra.mxu2 %vm2736_vm0, %v9078_v7  ;;  %8907 = vmatmul.msk.bf16.gmra.mxu3 %vm2736_vm0, %v9134_v8  ;;  %v9080_v8 = vld [vmem:[%s10751_s7 + $0x438] sm:$0xff] }
 0x16e   : > { %v9136_v9 = vld [vmem:[%s10751_s7 + $0x5f8] sm:$0xff] }
 0x16f   : > { %10415 = vst [vmem:[%s10839_s18 + $0x3e0] sm:$0xff] %v9795_v13  }
 0x170   : > { %10471 = vst [vmem:[%s10839_s18 + $0x5a0] sm:$0xff] %v10075_v14   ;;  %v4043_v17 = vpop.f32.mrf.mxu2  ;;  %v4323_v18 = vpop.f32.mrf.mxu3 }
 0x171   : > { %v3485_v19 = vpop.f32.mrf.mxu0  ;;  %v3765_v20 = vpop.f32.mrf.mxu1  ;;  %v6139_v29 = vadd.f32 %v11098_v40, %v4043_v17  ;;  %v6251_v30 = vadd.f32 %v11098_v40, %v4323_v18 }
 0x172   : > { %v5916_v21 = vadd.f32 %v11098_v40, %v3485_v19  ;;  %v6028_v22 = vadd.f32 %v11098_v40, %v3765_v20 }
 0x173   : > { %v6587_v42 = vmax.f32 %v6139_v29, 0.0  ;;  %v6699_v43 = vmax.f32 %v6251_v30, 0.0 }
 0x174   : > { %v6364_v25 = vmax.f32 %v5916_v21, 0.0  ;;  %v6476_v26 = vmax.f32 %v6028_v22, 0.0 }
 0x176   : > { %v9240_v27 = vpack.c.bf16 %v6364_v25, %v6363_v23  ;;  %v9520_v28 = vpack.c.bf16 %v6476_v26, %v6475_v24 }
 0x178   : > { %10304 = vst [vmem:[%s10839_s18 + $0x68] sm:$0xff] %v9240_v27   ;;  %v4045_v31 = vpop.f32.mrf.mxu2  ;;  %v4325_v32 = vpop.f32.mrf.mxu3 }
 0x179   : > { %10360 = vst [vmem:[%s10839_s18 + $0x228] sm:$0xff] %v9520_v28   ;;  %v6140_v35 = vadd.f32 %v11098_v40, %v4045_v31  ;;  %v6252_v36 = vadd.f32 %v11098_v40, %v4325_v32  ;;  %v3488_v37 = vpop.f32.mrf.mxu0  ;;  %v3768_v38 = vpop.f32.mrf.mxu1 }
 0x17a   : > { %v5917_v48 = vadd.f32 %v11098_v40, %v3488_v37  ;;  %v6029_v49 = vadd.f32 %v11098_v40, %v3768_v38 }
 0x17b   : > { %v6588_v44 = vmax.f32 %v6140_v35, 0.0  ;;  %v6700_v45 = vmax.f32 %v6252_v36, 0.0  ;;  %v9025_v35 = vld [vmem:[%s10751_s7 + $0x280] sm:$0xff] }
 0x17c   : > { %8740 = vmatmul.msk.bf16.gmra.mxu0 %vm2736_vm0, %v8967_v33  ;;  %8796 = vmatmul.msk.bf16.gmra.mxu1 %vm2736_vm0, %v9023_v34  ;;  %v6365_v56 = vmax.f32 %v5917_v48, 0.0  ;;  %v6477_v57 = vmax.f32 %v6029_v49, 0.0  ;;  %v8969_v34 = vld [vmem:[%s10751_s7 + $0xc0] sm:$0xff] }
 0x17d   : > { %v9800_v46 = vpack.c.bf16 %v6588_v44, %v6587_v42  ;;  %v10080_v47 = vpack.c.bf16 %v6700_v45, %v6699_v43  ;;  %8852 = vmatmul.msk.bf16.gmra.mxu2 %vm2736_vm0, %v9079_v39  ;;  %8908 = vmatmul.msk.bf16.gmra.mxu3 %vm2736_vm0, %v9135_v41  ;;  %v9081_v41 = vld [vmem:[%s10751_s7 + $0x440] sm:$0xff] }
 0x17e   : > { %v9137_v42 = vld [vmem:[%s10751_s7 + $0x600] sm:$0xff] }
 0x17f   : > { %10416 = vst [vmem:[%s10839_s18 + $0x3e8] sm:$0xff] %v9800_v46  }
 0x180   : > { %10472 = vst [vmem:[%s10839_s18 + $0x5a8] sm:$0xff] %v10080_v47   ;;  %v4048_v50 = vpop.f32.mrf.mxu2  ;;  %v4328_v51 = vpop.f32.mrf.mxu3 }
 0x181   : > { %v3490_v52 = vpop.f32.mrf.mxu0  ;;  %v3770_v53 = vpop.f32.mrf.mxu1  ;;  %v6141_v62 = vadd.f32 %v11098_v40, %v4048_v50  ;;  %v6253_v63 = vadd.f32 %v11098_v40, %v4328_v51 }
 0x182   : > { %v5918_v54 = vadd.f32 %v11098_v40, %v3490_v52  ;;  %v6030_v55 = vadd.f32 %v11098_v40, %v3770_v53 }
 0x183   : > { %v6589_v10 = vmax.f32 %v6141_v62, 0.0  ;;  %v6701_v11 = vmax.f32 %v6253_v63, 0.0 }
 0x184   : > { %v6366_v58 = vmax.f32 %v5918_v54, 0.0  ;;  %v6478_v59 = vmax.f32 %v6030_v55, 0.0 }
 0x186   : > { %v9245_v60 = vpack.c.bf16 %v6366_v58, %v6365_v56  ;;  %v9525_v61 = vpack.c.bf16 %v6478_v59, %v6477_v57 }
 0x188   : > { %10305 = vst [vmem:[%s10839_s18 + $0x70] sm:$0xff] %v9245_v60   ;;  %v4050_v0 = vpop.f32.mrf.mxu2  ;;  %v4330_v1 = vpop.f32.mrf.mxu3 }
 0x189   : > { %10361 = vst [vmem:[%s10839_s18 + $0x230] sm:$0xff] %v9525_v61   ;;  %v6142_v4 = vadd.f32 %v11098_v40, %v4050_v0  ;;  %v6254_v5 = vadd.f32 %v11098_v40, %v4330_v1  ;;  %v3493_v6 = vpop.f32.mrf.mxu0  ;;  %v3773_v7 = vpop.f32.mrf.mxu1 }
 0x18a   : > { %v5919_v16 = vadd.f32 %v11098_v40, %v3493_v6  ;;  %v6031_v17 = vadd.f32 %v11098_v40, %v3773_v7 }
 0x18b   : > { %v6590_v12 = vmax.f32 %v6142_v4, 0.0  ;;  %v6702_v13 = vmax.f32 %v6254_v5, 0.0  ;;  %v9026_v4 = vld [vmem:[%s10751_s7 + $0x288] sm:$0xff] }
 0x18c   : > { %8741 = vmatmul.msk.bf16.gmra.mxu0 %vm2736_vm0, %v8968_v2  ;;  %8797 = vmatmul.msk.bf16.gmra.mxu1 %vm2736_vm0, %v9024_v3  ;;  %v6367_v24 = vmax.f32 %v5919_v16, 0.0  ;;  %v6479_v25 = vmax.f32 %v6031_v17, 0.0  ;;  %v8970_v3 = vld [vmem:[%s10751_s7 + $0xc8] sm:$0xff] }
 0x18d   : > { %v9805_v14 = vpack.c.bf16 %v6590_v12, %v6589_v10  ;;  %v10085_v15 = vpack.c.bf16 %v6702_v13, %v6701_v11  ;;  %8853 = vmatmul.msk.bf16.gmra.mxu2 %vm2736_vm0, %v9080_v8  ;;  %8909 = vmatmul.msk.bf16.gmra.mxu3 %vm2736_vm0, %v9136_v9  ;;  %v9082_v9 = vld [vmem:[%s10751_s7 + $0x448] sm:$0xff] }
 0x18e   : > { %v9138_v10 = vld [vmem:[%s10751_s7 + $0x608] sm:$0xff] }
 0x18f   : > { %10417 = vst [vmem:[%s10839_s18 + $0x3f0] sm:$0xff] %v9805_v14  }
 0x190   : > { %10473 = vst [vmem:[%s10839_s18 + $0x5b0] sm:$0xff] %v10085_v15   ;;  %v4053_v18 = vpop.f32.mrf.mxu2  ;;  %v4333_v19 = vpop.f32.mrf.mxu3 }
 0x191   : > { %v3495_v20 = vpop.f32.mrf.mxu0  ;;  %v3775_v21 = vpop.f32.mrf.mxu1  ;;  %v6143_v30 = vadd.f32 %v11098_v40, %v4053_v18  ;;  %v6255_v31 = vadd.f32 %v11098_v40, %v4333_v19 }
 0x192   : > { %v5920_v22 = vadd.f32 %v11098_v40, %v3495_v20  ;;  %v6032_v23 = vadd.f32 %v11098_v40, %v3775_v21 }
 0x193   : > { %v6591_v43 = vmax.f32 %v6143_v30, 0.0  ;;  %v6703_v44 = vmax.f32 %v6255_v31, 0.0 }
 0x194   : > { %v6368_v26 = vmax.f32 %v5920_v22, 0.0  ;;  %v6480_v27 = vmax.f32 %v6032_v23, 0.0 }
 0x196   : > { %v9250_v28 = vpack.c.bf16 %v6368_v26, %v6367_v24  ;;  %v9530_v29 = vpack.c.bf16 %v6480_v27, %v6479_v25 }
 0x198   : > { %10306 = vst [vmem:[%s10839_s18 + $0x78] sm:$0xff] %v9250_v28   ;;  %v4055_v32 = vpop.f32.mrf.mxu2  ;;  %v4335_v33 = vpop.f32.mrf.mxu3 }
 0x199   : > { %10362 = vst [vmem:[%s10839_s18 + $0x238] sm:$0xff] %v9530_v29   ;;  %v6144_v36 = vadd.f32 %v11098_v40, %v4055_v32  ;;  %v6256_v37 = vadd.f32 %v11098_v40, %v4335_v33  ;;  %v3498_v38 = vpop.f32.mrf.mxu0  ;;  %v3778_v39 = vpop.f32.mrf.mxu1 }
 0x19a   : > { %v5921_v49 = vadd.f32 %v11098_v40, %v3498_v38  ;;  %v6033_v50 = vadd.f32 %v11098_v40, %v3778_v39 }
 0x19b   : > { %v6592_v45 = vmax.f32 %v6144_v36, 0.0  ;;  %v6704_v46 = vmax.f32 %v6256_v37, 0.0  ;;  %v9027_v36 = vld [vmem:[%s10751_s7 + $0x290] sm:$0xff] }
 0x19c   : > { %8742 = vmatmul.msk.bf16.gmra.mxu0 %vm2736_vm0, %v8969_v34  ;;  %8798 = vmatmul.msk.bf16.gmra.mxu1 %vm2736_vm0, %v9025_v35  ;;  %v6369_v57 = vmax.f32 %v5921_v49, 0.0  ;;  %v6481_v58 = vmax.f32 %v6033_v50, 0.0  ;;  %v8971_v35 = vld [vmem:[%s10751_s7 + $0xd0] sm:$0xff] }
 0x19d   : > { %v9810_v47 = vpack.c.bf16 %v6592_v45, %v6591_v43  ;;  %v10090_v48 = vpack.c.bf16 %v6704_v46, %v6703_v44  ;;  %8854 = vmatmul.msk.bf16.gmra.mxu2 %vm2736_vm0, %v9081_v41  ;;  %8910 = vmatmul.msk.bf16.gmra.mxu3 %vm2736_vm0, %v9137_v42  ;;  %v9083_v42 = vld [vmem:[%s10751_s7 + $0x450] sm:$0xff] }
 0x19e   : > { %v9139_v43 = vld [vmem:[%s10751_s7 + $0x610] sm:$0xff] }
 0x19f   : > { %10418 = vst [vmem:[%s10839_s18 + $0x3f8] sm:$0xff] %v9810_v47  }
 0x1a0   : > { %10474 = vst [vmem:[%s10839_s18 + $0x5b8] sm:$0xff] %v10090_v48   ;;  %v4058_v51 = vpop.f32.mrf.mxu2  ;;  %v4338_v52 = vpop.f32.mrf.mxu3 }
 0x1a1   : > { %v3500_v53 = vpop.f32.mrf.mxu0  ;;  %v3780_v54 = vpop.f32.mrf.mxu1  ;;  %v6145_v63 = vadd.f32 %v11098_v40, %v4058_v51  ;;  %v6257_v0 = vadd.f32 %v11098_v40, %v4338_v52 }
 0x1a2   : > { %v5922_v55 = vadd.f32 %v11098_v40, %v3500_v53  ;;  %v6034_v56 = vadd.f32 %v11098_v40, %v3780_v54 }
 0x1a3   : > { %v6593_v11 = vmax.f32 %v6145_v63, 0.0  ;;  %v6705_v12 = vmax.f32 %v6257_v0, 0.0 }
 0x1a4   : > { %v6370_v59 = vmax.f32 %v5922_v55, 0.0  ;;  %v6482_v60 = vmax.f32 %v6034_v56, 0.0 }
 0x1a6   : > { %v9255_v61 = vpack.c.bf16 %v6370_v59, %v6369_v57  ;;  %v9535_v62 = vpack.c.bf16 %v6482_v60, %v6481_v58 }
 0x1a8   : > { %10307 = vst [vmem:[%s10839_s18 + $0x80] sm:$0xff] %v9255_v61   ;;  %v4060_v1 = vpop.f32.mrf.mxu2  ;;  %v4340_v2 = vpop.f32.mrf.mxu3 }
 0x1a9   : > { %10363 = vst [vmem:[%s10839_s18 + $0x240] sm:$0xff] %v9535_v62   ;;  %v6146_v5 = vadd.f32 %v11098_v40, %v4060_v1  ;;  %v6258_v6 = vadd.f32 %v11098_v40, %v4340_v2  ;;  %v3503_v7 = vpop.f32.mrf.mxu0  ;;  %v3783_v8 = vpop.f32.mrf.mxu1 }
 0x1aa   : > { %v5923_v17 = vadd.f32 %v11098_v40, %v3503_v7  ;;  %v6035_v18 = vadd.f32 %v11098_v40, %v3783_v8 }
 0x1ab   : > { %v6594_v13 = vmax.f32 %v6146_v5, 0.0  ;;  %v6706_v14 = vmax.f32 %v6258_v6, 0.0  ;;  %v9028_v5 = vld [vmem:[%s10751_s7 + $0x298] sm:$0xff] }
 0x1ac   : > { %8743 = vmatmul.msk.bf16.gmra.mxu0 %vm2736_vm0, %v8970_v3  ;;  %8799 = vmatmul.msk.bf16.gmra.mxu1 %vm2736_vm0, %v9026_v4  ;;  %v6371_v25 = vmax.f32 %v5923_v17, 0.0  ;;  %v6483_v26 = vmax.f32 %v6035_v18, 0.0  ;;  %v8972_v4 = vld [vmem:[%s10751_s7 + $0xd8] sm:$0xff] }
 0x1ad   : > { %v9815_v15 = vpack.c.bf16 %v6594_v13, %v6593_v11  ;;  %v10095_v16 = vpack.c.bf16 %v6706_v14, %v6705_v12  ;;  %8855 = vmatmul.msk.bf16.gmra.mxu2 %vm2736_vm0, %v9082_v9  ;;  %8911 = vmatmul.msk.bf16.gmra.mxu3 %vm2736_vm0, %v9138_v10  ;;  %v9084_v10 = vld [vmem:[%s10751_s7 + $0x458] sm:$0xff] }
 0x1ae   : > { %v9140_v11 = vld [vmem:[%s10751_s7 + $0x618] sm:$0xff] }
 0x1af   : > { %10419 = vst [vmem:[%s10839_s18 + $0x400] sm:$0xff] %v9815_v15  }
 0x1b0   : > { %10475 = vst [vmem:[%s10839_s18 + $0x5c0] sm:$0xff] %v10095_v16   ;;  %v4063_v19 = vpop.f32.mrf.mxu2  ;;  %v4343_v20 = vpop.f32.mrf.mxu3 }
 0x1b1   : > { %v3505_v21 = vpop.f32.mrf.mxu0  ;;  %v3785_v22 = vpop.f32.mrf.mxu1  ;;  %v6147_v31 = vadd.f32 %v11098_v40, %v4063_v19  ;;  %v6259_v32 = vadd.f32 %v11098_v40, %v4343_v20 }
 0x1b2   : > { %v5924_v23 = vadd.f32 %v11098_v40, %v3505_v21  ;;  %v6036_v24 = vadd.f32 %v11098_v40, %v3785_v22 }
 0x1b3   : > { %v6595_v44 = vmax.f32 %v6147_v31, 0.0  ;;  %v6707_v45 = vmax.f32 %v6259_v32, 0.0 }
 0x1b4   : > { %v6372_v27 = vmax.f32 %v5924_v23, 0.0  ;;  %v6484_v28 = vmax.f32 %v6036_v24, 0.0 }
 0x1b6   : > { %v9260_v29 = vpack.c.bf16 %v6372_v27, %v6371_v25  ;;  %v9540_v30 = vpack.c.bf16 %v6484_v28, %v6483_v26 }
 0x1b8   : > { %10308 = vst [vmem:[%s10839_s18 + $0x88] sm:$0xff] %v9260_v29   ;;  %v4065_v33 = vpop.f32.mrf.mxu2  ;;  %v4345_v34 = vpop.f32.mrf.mxu3 }
 0x1b9   : > { %10364 = vst [vmem:[%s10839_s18 + $0x248] sm:$0xff] %v9540_v30   ;;  %v6148_v37 = vadd.f32 %v11098_v40, %v4065_v33  ;;  %v6260_v38 = vadd.f32 %v11098_v40, %v4345_v34  ;;  %v3508_v39 = vpop.f32.mrf.mxu0  ;;  %v3788_v41 = vpop.f32.mrf.mxu1 }
 0x1ba   : > { %v5925_v50 = vadd.f32 %v11098_v40, %v3508_v39  ;;  %v6037_v51 = vadd.f32 %v11098_v40, %v3788_v41 }
 0x1bb   : > { %v6596_v46 = vmax.f32 %v6148_v37, 0.0  ;;  %v6708_v47 = vmax.f32 %v6260_v38, 0.0  ;;  %v9029_v37 = vld [vmem:[%s10751_s7 + $0x2a0] sm:$0xff] }
 0x1bc   : > { %8744 = vmatmul.msk.bf16.gmra.mxu0 %vm2736_vm0, %v8971_v35  ;;  %8800 = vmatmul.msk.bf16.gmra.mxu1 %vm2736_vm0, %v9027_v36  ;;  %v6373_v58 = vmax.f32 %v5925_v50, 0.0  ;;  %v6485_v59 = vmax.f32 %v6037_v51, 0.0  ;;  %v8973_v36 = vld [vmem:[%s10751_s7 + $0xe0] sm:$0xff] }
 0x1bd   : > { %v9820_v48 = vpack.c.bf16 %v6596_v46, %v6595_v44  ;;  %v10100_v49 = vpack.c.bf16 %v6708_v47, %v6707_v45  ;;  %8856 = vmatmul.msk.bf16.gmra.mxu2 %vm2736_vm0, %v9083_v42  ;;  %8912 = vmatmul.msk.bf16.gmra.mxu3 %vm2736_vm0, %v9139_v43  ;;  %v9085_v43 = vld [vmem:[%s10751_s7 + $0x460] sm:$0xff] }
 0x1be   : > { %v9141_v44 = vld [vmem:[%s10751_s7 + $0x620] sm:$0xff] }
 0x1bf   : > { %10420 = vst [vmem:[%s10839_s18 + $0x408] sm:$0xff] %v9820_v48  }
 0x1c0   : > { %10476 = vst [vmem:[%s10839_s18 + $0x5c8] sm:$0xff] %v10100_v49   ;;  %v4068_v52 = vpop.f32.mrf.mxu2  ;;  %v4348_v53 = vpop.f32.mrf.mxu3 }
 0x1c1   : > { %v3510_v54 = vpop.f32.mrf.mxu0  ;;  %v3790_v55 = vpop.f32.mrf.mxu1  ;;  %v6149_v0 = vadd.f32 %v11098_v40, %v4068_v52  ;;  %v6261_v1 = vadd.f32 %v11098_v40, %v4348_v53 }
 0x1c2   : > { %v5926_v56 = vadd.f32 %v11098_v40, %v3510_v54  ;;  %v6038_v57 = vadd.f32 %v11098_v40, %v3790_v55 }
 0x1c3   : > { %v6597_v12 = vmax.f32 %v6149_v0, 0.0  ;;  %v6709_v13 = vmax.f32 %v6261_v1, 0.0 }
 0x1c4   : > { %v6374_v60 = vmax.f32 %v5926_v56, 0.0  ;;  %v6486_v61 = vmax.f32 %v6038_v57, 0.0 }
 0x1c6   : > { %v9265_v62 = vpack.c.bf16 %v6374_v60, %v6373_v58  ;;  %v9545_v63 = vpack.c.bf16 %v6486_v61, %v6485_v59 }
 0x1c8   : > { %10309 = vst [vmem:[%s10839_s18 + $0x90] sm:$0xff] %v9265_v62   ;;  %v4070_v2 = vpop.f32.mrf.mxu2  ;;  %v4350_v3 = vpop.f32.mrf.mxu3 }
 0x1c9   : > { %10365 = vst [vmem:[%s10839_s18 + $0x250] sm:$0xff] %v9545_v63   ;;  %v6150_v6 = vadd.f32 %v11098_v40, %v4070_v2  ;;  %v6262_v7 = vadd.f32 %v11098_v40, %v4350_v3  ;;  %v3513_v8 = vpop.f32.mrf.mxu0  ;;  %v3793_v9 = vpop.f32.mrf.mxu1 }
 0x1ca   : > { %v5927_v18 = vadd.f32 %v11098_v40, %v3513_v8  ;;  %v6039_v19 = vadd.f32 %v11098_v40, %v3793_v9 }
 0x1cb   : > { %v6598_v14 = vmax.f32 %v6150_v6, 0.0  ;;  %v6710_v15 = vmax.f32 %v6262_v7, 0.0  ;;  %v9030_v6 = vld [vmem:[%s10751_s7 + $0x2a8] sm:$0xff] }
 0x1cc   : > { %8745 = vmatmul.msk.bf16.gmra.mxu0 %vm2736_vm0, %v8972_v4  ;;  %8801 = vmatmul.msk.bf16.gmra.mxu1 %vm2736_vm0, %v9028_v5  ;;  %v6375_v26 = vmax.f32 %v5927_v18, 0.0  ;;  %v6487_v27 = vmax.f32 %v6039_v19, 0.0  ;;  %v8974_v5 = vld [vmem:[%s10751_s7 + $0xe8] sm:$0xff] }
 0x1cd   : > { %v9825_v16 = vpack.c.bf16 %v6598_v14, %v6597_v12  ;;  %v10105_v17 = vpack.c.bf16 %v6710_v15, %v6709_v13  ;;  %8857 = vmatmul.msk.bf16.gmra.mxu2 %vm2736_vm0, %v9084_v10  ;;  %8913 = vmatmul.msk.bf16.gmra.mxu3 %vm2736_vm0, %v9140_v11  ;;  %v9086_v11 = vld [vmem:[%s10751_s7 + $0x468] sm:$0xff] }
 0x1ce   : > { %v9142_v12 = vld [vmem:[%s10751_s7 + $0x628] sm:$0xff] }
 0x1cf   : > { %10421 = vst [vmem:[%s10839_s18 + $0x410] sm:$0xff] %v9825_v16  }
 0x1d0   : > { %10477 = vst [vmem:[%s10839_s18 + $0x5d0] sm:$0xff] %v10105_v17   ;;  %v4073_v20 = vpop.f32.mrf.mxu2  ;;  %v4353_v21 = vpop.f32.mrf.mxu3 }
 0x1d1   : > { %v3515_v22 = vpop.f32.mrf.mxu0  ;;  %v3795_v23 = vpop.f32.mrf.mxu1  ;;  %v6151_v32 = vadd.f32 %v11098_v40, %v4073_v20  ;;  %v6263_v33 = vadd.f32 %v11098_v40, %v4353_v21 }
 0x1d2   : > { %v5928_v24 = vadd.f32 %v11098_v40, %v3515_v22  ;;  %v6040_v25 = vadd.f32 %v11098_v40, %v3795_v23 }
 0x1d3   : > { %v6599_v45 = vmax.f32 %v6151_v32, 0.0  ;;  %v6711_v46 = vmax.f32 %v6263_v33, 0.0 }
 0x1d4   : > { %v6376_v28 = vmax.f32 %v5928_v24, 0.0  ;;  %v6488_v29 = vmax.f32 %v6040_v25, 0.0 }
 0x1d6   : > { %v9270_v30 = vpack.c.bf16 %v6376_v28, %v6375_v26  ;;  %v9550_v31 = vpack.c.bf16 %v6488_v29, %v6487_v27 }
 0x1d8   : > { %10310 = vst [vmem:[%s10839_s18 + $0x98] sm:$0xff] %v9270_v30   ;;  %v4075_v34 = vpop.f32.mrf.mxu2  ;;  %v4355_v35 = vpop.f32.mrf.mxu3 }
 0x1d9   : > { %10366 = vst [vmem:[%s10839_s18 + $0x258] sm:$0xff] %v9550_v31   ;;  %v6152_v38 = vadd.f32 %v11098_v40, %v4075_v34  ;;  %v6264_v39 = vadd.f32 %v11098_v40, %v4355_v35  ;;  %v3518_v41 = vpop.f32.mrf.mxu0  ;;  %v3798_v42 = vpop.f32.mrf.mxu1 }
 0x1da   : > { %v5929_v51 = vadd.f32 %v11098_v40, %v3518_v41  ;;  %v6041_v52 = vadd.f32 %v11098_v40, %v3798_v42 }
 0x1db   : > { %v6600_v47 = vmax.f32 %v6152_v38, 0.0  ;;  %v6712_v48 = vmax.f32 %v6264_v39, 0.0  ;;  %v9031_v38 = vld [vmem:[%s10751_s7 + $0x2b0] sm:$0xff] }
 0x1dc   : > { %8746 = vmatmul.msk.bf16.gmra.mxu0 %vm2736_vm0, %v8973_v36  ;;  %8802 = vmatmul.msk.bf16.gmra.mxu1 %vm2736_vm0, %v9029_v37  ;;  %v6377_v59 = vmax.f32 %v5929_v51, 0.0  ;;  %v6489_v60 = vmax.f32 %v6041_v52, 0.0  ;;  %v8975_v37 = vld [vmem:[%s10751_s7 + $0xf0] sm:$0xff] }
 0x1dd   : > { %v9830_v49 = vpack.c.bf16 %v6600_v47, %v6599_v45  ;;  %v10110_v50 = vpack.c.bf16 %v6712_v48, %v6711_v46  ;;  %8858 = vmatmul.msk.bf16.gmra.mxu2 %vm2736_vm0, %v9085_v43  ;;  %8914 = vmatmul.msk.bf16.gmra.mxu3 %vm2736_vm0, %v9141_v44  ;;  %v9087_v44 = vld [vmem:[%s10751_s7 + $0x470] sm:$0xff] }
 0x1de   : > { %v9143_v45 = vld [vmem:[%s10751_s7 + $0x630] sm:$0xff] }
 0x1df   : > { %10422 = vst [vmem:[%s10839_s18 + $0x418] sm:$0xff] %v9830_v49  }
 0x1e0   : > { %10478 = vst [vmem:[%s10839_s18 + $0x5d8] sm:$0xff] %v10110_v50   ;;  %v4078_v53 = vpop.f32.mrf.mxu2  ;;  %v4358_v54 = vpop.f32.mrf.mxu3 }
 0x1e1   : > { %v3520_v55 = vpop.f32.mrf.mxu0  ;;  %v3800_v56 = vpop.f32.mrf.mxu1  ;;  %v6153_v1 = vadd.f32 %v11098_v40, %v4078_v53  ;;  %v6265_v2 = vadd.f32 %v11098_v40, %v4358_v54 }
 0x1e2   : > { %v5930_v57 = vadd.f32 %v11098_v40, %v3520_v55  ;;  %v6042_v58 = vadd.f32 %v11098_v40, %v3800_v56 }
 0x1e3   : > { %v6601_v13 = vmax.f32 %v6153_v1, 0.0  ;;  %v6713_v14 = vmax.f32 %v6265_v2, 0.0 }
 0x1e4   : > { %v6378_v61 = vmax.f32 %v5930_v57, 0.0  ;;  %v6490_v62 = vmax.f32 %v6042_v58, 0.0 }
 0x1e6   : > { %v9275_v63 = vpack.c.bf16 %v6378_v61, %v6377_v59  ;;  %v9555_v0 = vpack.c.bf16 %v6490_v62, %v6489_v60 }
 0x1e8   : > { %10311 = vst [vmem:[%s10839_s18 + $0xa0] sm:$0xff] %v9275_v63   ;;  %v4080_v3 = vpop.f32.mrf.mxu2  ;;  %v4360_v4 = vpop.f32.mrf.mxu3 }
 0x1e9   : > { %10367 = vst [vmem:[%s10839_s18 + $0x260] sm:$0xff] %v9555_v0   ;;  %v6154_v7 = vadd.f32 %v11098_v40, %v4080_v3  ;;  %v6266_v8 = vadd.f32 %v11098_v40, %v4360_v4  ;;  %v3523_v9 = vpop.f32.mrf.mxu0  ;;  %v3803_v10 = vpop.f32.mrf.mxu1 }
 0x1ea   : > { %v5931_v19 = vadd.f32 %v11098_v40, %v3523_v9  ;;  %v6043_v20 = vadd.f32 %v11098_v40, %v3803_v10 }
 0x1eb   : > { %v6602_v15 = vmax.f32 %v6154_v7, 0.0  ;;  %v6714_v16 = vmax.f32 %v6266_v8, 0.0  ;;  %v9032_v7 = vld [vmem:[%s10751_s7 + $0x2b8] sm:$0xff] }
 0x1ec   : > { %8747 = vmatmul.msk.bf16.gmra.mxu0 %vm2736_vm0, %v8974_v5  ;;  %8803 = vmatmul.msk.bf16.gmra.mxu1 %vm2736_vm0, %v9030_v6  ;;  %v6379_v27 = vmax.f32 %v5931_v19, 0.0  ;;  %v6491_v28 = vmax.f32 %v6043_v20, 0.0  ;;  %v8976_v6 = vld [vmem:[%s10751_s7 + $0xf8] sm:$0xff] }
 0x1ed   : > { %v9835_v17 = vpack.c.bf16 %v6602_v15, %v6601_v13  ;;  %v10115_v18 = vpack.c.bf16 %v6714_v16, %v6713_v14  ;;  %8859 = vmatmul.msk.bf16.gmra.mxu2 %vm2736_vm0, %v9086_v11  ;;  %8915 = vmatmul.msk.bf16.gmra.mxu3 %vm2736_vm0, %v9142_v12  ;;  %v9088_v12 = vld [vmem:[%s10751_s7 + $0x478] sm:$0xff] }
 0x1ee   : > { %v9144_v13 = vld [vmem:[%s10751_s7 + $0x638] sm:$0xff] }
 0x1ef   : > { %10423 = vst [vmem:[%s10839_s18 + $0x420] sm:$0xff] %v9835_v17  }
 0x1f0   : > { %10479 = vst [vmem:[%s10839_s18 + $0x5e0] sm:$0xff] %v10115_v18   ;;  %v4083_v21 = vpop.f32.mrf.mxu2  ;;  %v4363_v22 = vpop.f32.mrf.mxu3 }
 0x1f1   : > { %v3525_v23 = vpop.f32.mrf.mxu0  ;;  %v3805_v24 = vpop.f32.mrf.mxu1  ;;  %v6155_v33 = vadd.f32 %v11098_v40, %v4083_v21  ;;  %v6267_v34 = vadd.f32 %v11098_v40, %v4363_v22 }
 0x1f2   : > { %v5932_v25 = vadd.f32 %v11098_v40, %v3525_v23  ;;  %v6044_v26 = vadd.f32 %v11098_v40, %v3805_v24 }
 0x1f3   : > { %v6603_v46 = vmax.f32 %v6155_v33, 0.0  ;;  %v6715_v47 = vmax.f32 %v6267_v34, 0.0 }
 0x1f4   : > { %v6380_v29 = vmax.f32 %v5932_v25, 0.0  ;;  %v6492_v30 = vmax.f32 %v6044_v26, 0.0 }
 0x1f6   : > { %v9280_v31 = vpack.c.bf16 %v6380_v29, %v6379_v27  ;;  %v9560_v32 = vpack.c.bf16 %v6492_v30, %v6491_v28 }
 0x1f8   : > { %10312 = vst [vmem:[%s10839_s18 + $0xa8] sm:$0xff] %v9280_v31   ;;  %v4085_v35 = vpop.f32.mrf.mxu2  ;;  %v4365_v36 = vpop.f32.mrf.mxu3 }
 0x1f9   : > { %10368 = vst [vmem:[%s10839_s18 + $0x268] sm:$0xff] %v9560_v32   ;;  %v6156_v39 = vadd.f32 %v11098_v40, %v4085_v35  ;;  %v6268_v41 = vadd.f32 %v11098_v40, %v4365_v36  ;;  %v3528_v42 = vpop.f32.mrf.mxu0  ;;  %v3808_v43 = vpop.f32.mrf.mxu1 }
 0x1fa   : > { %v5933_v52 = vadd.f32 %v11098_v40, %v3528_v42  ;;  %v6045_v53 = vadd.f32 %v11098_v40, %v3808_v43 }
 0x1fb   : > { %v6604_v48 = vmax.f32 %v6156_v39, 0.0  ;;  %v6716_v49 = vmax.f32 %v6268_v41, 0.0  ;;  %v9033_v39 = vld [vmem:[%s10751_s7 + $0x2c0] sm:$0xff] }
 0x1fc   : > { %8748 = vmatmul.msk.bf16.gmra.mxu0 %vm2736_vm0, %v8975_v37  ;;  %8804 = vmatmul.msk.bf16.gmra.mxu1 %vm2736_vm0, %v9031_v38  ;;  %v6381_v60 = vmax.f32 %v5933_v52, 0.0  ;;  %v6493_v61 = vmax.f32 %v6045_v53, 0.0  ;;  %v8977_v38 = vld [vmem:[%s10751_s7 + $0x100] sm:$0xff] }
 0x1fd   : > { %v9840_v50 = vpack.c.bf16 %v6604_v48, %v6603_v46  ;;  %v10120_v51 = vpack.c.bf16 %v6716_v49, %v6715_v47  ;;  %8860 = vmatmul.msk.bf16.gmra.mxu2 %vm2736_vm0, %v9087_v44  ;;  %8916 = vmatmul.msk.bf16.gmra.mxu3 %vm2736_vm0, %v9143_v45  ;;  %v9089_v45 = vld [vmem:[%s10751_s7 + $0x480] sm:$0xff] }
 0x1fe   : > { %v9145_v46 = vld [vmem:[%s10751_s7 + $0x640] sm:$0xff] }
 0x1ff   : > { %10424 = vst [vmem:[%s10839_s18 + $0x428] sm:$0xff] %v9840_v50  }
 0x200   : > { %10480 = vst [vmem:[%s10839_s18 + $0x5e8] sm:$0xff] %v10120_v51   ;;  %v4088_v54 = vpop.f32.mrf.mxu2  ;;  %v4368_v55 = vpop.f32.mrf.mxu3 }
 0x201   : > { %v3530_v56 = vpop.f32.mrf.mxu0  ;;  %v3810_v57 = vpop.f32.mrf.mxu1  ;;  %v6157_v2 = vadd.f32 %v11098_v40, %v4088_v54  ;;  %v6269_v3 = vadd.f32 %v11098_v40, %v4368_v55 }
 0x202   : > { %v5934_v58 = vadd.f32 %v11098_v40, %v3530_v56  ;;  %v6046_v59 = vadd.f32 %v11098_v40, %v3810_v57 }
 0x203   : > { %v6605_v14 = vmax.f32 %v6157_v2, 0.0  ;;  %v6717_v15 = vmax.f32 %v6269_v3, 0.0 }
 0x204   : > { %v6382_v62 = vmax.f32 %v5934_v58, 0.0  ;;  %v6494_v63 = vmax.f32 %v6046_v59, 0.0 }
 0x206   : > { %v9285_v0 = vpack.c.bf16 %v6382_v62, %v6381_v60  ;;  %v9565_v1 = vpack.c.bf16 %v6494_v63, %v6493_v61 }
 0x208   : > { %10313 = vst [vmem:[%s10839_s18 + $0xb0] sm:$0xff] %v9285_v0   ;;  %v4090_v4 = vpop.f32.mrf.mxu2  ;;  %v4370_v5 = vpop.f32.mrf.mxu3 }
 0x209   : > { %10369 = vst [vmem:[%s10839_s18 + $0x270] sm:$0xff] %v9565_v1   ;;  %v6158_v8 = vadd.f32 %v11098_v40, %v4090_v4  ;;  %v6270_v9 = vadd.f32 %v11098_v40, %v4370_v5  ;;  %v3533_v10 = vpop.f32.mrf.mxu0  ;;  %v3813_v11 = vpop.f32.mrf.mxu1 }
 0x20a   : > { %v5935_v20 = vadd.f32 %v11098_v40, %v3533_v10  ;;  %v6047_v21 = vadd.f32 %v11098_v40, %v3813_v11 }
 0x20b   : > { %v6606_v16 = vmax.f32 %v6158_v8, 0.0  ;;  %v6718_v17 = vmax.f32 %v6270_v9, 0.0  ;;  %v9034_v8 = vld [vmem:[%s10751_s7 + $0x2c8] sm:$0xff] }
 0x20c   : > { %8749 = vmatmul.msk.bf16.gmra.mxu0 %vm2736_vm0, %v8976_v6  ;;  %8805 = vmatmul.msk.bf16.gmra.mxu1 %vm2736_vm0, %v9032_v7  ;;  %v6383_v28 = vmax.f32 %v5935_v20, 0.0  ;;  %v6495_v29 = vmax.f32 %v6047_v21, 0.0  ;;  %v8978_v7 = vld [vmem:[%s10751_s7 + $0x108] sm:$0xff] }
 0x20d   : > { %v9845_v18 = vpack.c.bf16 %v6606_v16, %v6605_v14  ;;  %v10125_v19 = vpack.c.bf16 %v6718_v17, %v6717_v15  ;;  %8861 = vmatmul.msk.bf16.gmra.mxu2 %vm2736_vm0, %v9088_v12  ;;  %8917 = vmatmul.msk.bf16.gmra.mxu3 %vm2736_vm0, %v9144_v13  ;;  %v9090_v13 = vld [vmem:[%s10751_s7 + $0x488] sm:$0xff] }
 0x20e   : > { %v9146_v14 = vld [vmem:[%s10751_s7 + $0x648] sm:$0xff] }
 0x20f   : > { %10425 = vst [vmem:[%s10839_s18 + $0x430] sm:$0xff] %v9845_v18  }
 0x210   : > { %10481 = vst [vmem:[%s10839_s18 + $0x5f0] sm:$0xff] %v10125_v19   ;;  %v4093_v22 = vpop.f32.mrf.mxu2  ;;  %v4373_v23 = vpop.f32.mrf.mxu3 }
 0x211   : > { %v3535_v24 = vpop.f32.mrf.mxu0  ;;  %v3815_v25 = vpop.f32.mrf.mxu1  ;;  %v6159_v34 = vadd.f32 %v11098_v40, %v4093_v22  ;;  %v6271_v35 = vadd.f32 %v11098_v40, %v4373_v23 }
 0x212   : > { %v5936_v26 = vadd.f32 %v11098_v40, %v3535_v24  ;;  %v6048_v27 = vadd.f32 %v11098_v40, %v3815_v25 }
 0x213   : > { %v6607_v47 = vmax.f32 %v6159_v34, 0.0  ;;  %v6719_v48 = vmax.f32 %v6271_v35, 0.0 }
 0x214   : > { %v6384_v30 = vmax.f32 %v5936_v26, 0.0  ;;  %v6496_v31 = vmax.f32 %v6048_v27, 0.0 }
 0x216   : > { %v9290_v32 = vpack.c.bf16 %v6384_v30, %v6383_v28  ;;  %v9570_v33 = vpack.c.bf16 %v6496_v31, %v6495_v29 }
 0x218   : > { %10314 = vst [vmem:[%s10839_s18 + $0xb8] sm:$0xff] %v9290_v32   ;;  %v4095_v36 = vpop.f32.mrf.mxu2  ;;  %v4375_v37 = vpop.f32.mrf.mxu3 }
 0x219   : > { %10370 = vst [vmem:[%s10839_s18 + $0x278] sm:$0xff] %v9570_v33   ;;  %v6160_v41 = vadd.f32 %v11098_v40, %v4095_v36  ;;  %v6272_v42 = vadd.f32 %v11098_v40, %v4375_v37  ;;  %v3538_v43 = vpop.f32.mrf.mxu0  ;;  %v3818_v44 = vpop.f32.mrf.mxu1 }
 0x21a   : > { %v5937_v53 = vadd.f32 %v11098_v40, %v3538_v43  ;;  %v6049_v54 = vadd.f32 %v11098_v40, %v3818_v44 }
 0x21b   : > { %v6608_v49 = vmax.f32 %v6160_v41, 0.0  ;;  %v6720_v50 = vmax.f32 %v6272_v42, 0.0  ;;  %v9035_v41 = vld [vmem:[%s10751_s7 + $0x2d0] sm:$0xff] }
 0x21c   : > { %8750 = vmatmul.msk.bf16.gmra.mxu0 %vm2736_vm0, %v8977_v38  ;;  %8806 = vmatmul.msk.bf16.gmra.mxu1 %vm2736_vm0, %v9033_v39  ;;  %v6385_v61 = vmax.f32 %v5937_v53, 0.0  ;;  %v6497_v62 = vmax.f32 %v6049_v54, 0.0  ;;  %v8979_v39 = vld [vmem:[%s10751_s7 + $0x110] sm:$0xff] }
 0x21d   : > { %v9850_v51 = vpack.c.bf16 %v6608_v49, %v6607_v47  ;;  %v10130_v52 = vpack.c.bf16 %v6720_v50, %v6719_v48  ;;  %8862 = vmatmul.msk.bf16.gmra.mxu2 %vm2736_vm0, %v9089_v45  ;;  %8918 = vmatmul.msk.bf16.gmra.mxu3 %vm2736_vm0, %v9145_v46  ;;  %v9091_v46 = vld [vmem:[%s10751_s7 + $0x490] sm:$0xff] }
 0x21e   : > { %v9147_v47 = vld [vmem:[%s10751_s7 + $0x650] sm:$0xff] }
 0x21f   : > { %10426 = vst [vmem:[%s10839_s18 + $0x438] sm:$0xff] %v9850_v51  }
 0x220   : > { %10482 = vst [vmem:[%s10839_s18 + $0x5f8] sm:$0xff] %v10130_v52   ;;  %v4098_v55 = vpop.f32.mrf.mxu2  ;;  %v4378_v56 = vpop.f32.mrf.mxu3 }
 0x221   : > { %v3540_v57 = vpop.f32.mrf.mxu0  ;;  %v3820_v58 = vpop.f32.mrf.mxu1  ;;  %v6161_v3 = vadd.f32 %v11098_v40, %v4098_v55  ;;  %v6273_v4 = vadd.f32 %v11098_v40, %v4378_v56 }
 0x222   : > { %v5938_v59 = vadd.f32 %v11098_v40, %v3540_v57  ;;  %v6050_v60 = vadd.f32 %v11098_v40, %v3820_v58 }
 0x223   : > { %v6609_v15 = vmax.f32 %v6161_v3, 0.0  ;;  %v6721_v16 = vmax.f32 %v6273_v4, 0.0 }
 0x224   : > { %v6386_v63 = vmax.f32 %v5938_v59, 0.0  ;;  %v6498_v0 = vmax.f32 %v6050_v60, 0.0 }
 0x226   : > { %v9295_v1 = vpack.c.bf16 %v6386_v63, %v6385_v61  ;;  %v9575_v2 = vpack.c.bf16 %v6498_v0, %v6497_v62 }
 0x228   : > { %10315 = vst [vmem:[%s10839_s18 + $0xc0] sm:$0xff] %v9295_v1   ;;  %v4100_v5 = vpop.f32.mrf.mxu2  ;;  %v4380_v6 = vpop.f32.mrf.mxu3 }
 0x229   : > { %10371 = vst [vmem:[%s10839_s18 + $0x280] sm:$0xff] %v9575_v2   ;;  %v6162_v9 = vadd.f32 %v11098_v40, %v4100_v5  ;;  %v6274_v10 = vadd.f32 %v11098_v40, %v4380_v6  ;;  %v3543_v11 = vpop.f32.mrf.mxu0  ;;  %v3823_v12 = vpop.f32.mrf.mxu1 }
 0x22a   : > { %v5939_v21 = vadd.f32 %v11098_v40, %v3543_v11  ;;  %v6051_v22 = vadd.f32 %v11098_v40, %v3823_v12 }
 0x22b   : > { %v6610_v17 = vmax.f32 %v6162_v9, 0.0  ;;  %v6722_v18 = vmax.f32 %v6274_v10, 0.0  ;;  %v9036_v9 = vld [vmem:[%s10751_s7 + $0x2d8] sm:$0xff] }
 0x22c   : > { %8751 = vmatmul.msk.bf16.gmra.mxu0 %vm2736_vm0, %v8978_v7  ;;  %8807 = vmatmul.msk.bf16.gmra.mxu1 %vm2736_vm0, %v9034_v8  ;;  %v6387_v29 = vmax.f32 %v5939_v21, 0.0  ;;  %v6499_v30 = vmax.f32 %v6051_v22, 0.0  ;;  %v8980_v8 = vld [vmem:[%s10751_s7 + $0x118] sm:$0xff] }
 0x22d   : > { %v9855_v19 = vpack.c.bf16 %v6610_v17, %v6609_v15  ;;  %v10135_v20 = vpack.c.bf16 %v6722_v18, %v6721_v16  ;;  %8863 = vmatmul.msk.bf16.gmra.mxu2 %vm2736_vm0, %v9090_v13  ;;  %8919 = vmatmul.msk.bf16.gmra.mxu3 %vm2736_vm0, %v9146_v14  ;;  %v9092_v14 = vld [vmem:[%s10751_s7 + $0x498] sm:$0xff] }
 0x22e   : > { %v9148_v15 = vld [vmem:[%s10751_s7 + $0x658] sm:$0xff] }
 0x22f   : > { %10427 = vst [vmem:[%s10839_s18 + $0x440] sm:$0xff] %v9855_v19  }
 0x230   : > { %10483 = vst [vmem:[%s10839_s18 + $0x600] sm:$0xff] %v10135_v20   ;;  %v4103_v23 = vpop.f32.mrf.mxu2  ;;  %v4383_v24 = vpop.f32.mrf.mxu3 }
 0x231   : > { %v3545_v25 = vpop.f32.mrf.mxu0  ;;  %v3825_v26 = vpop.f32.mrf.mxu1  ;;  %v6163_v35 = vadd.f32 %v11098_v40, %v4103_v23  ;;  %v6275_v36 = vadd.f32 %v11098_v40, %v4383_v24 }
 0x232   : > { %v5940_v27 = vadd.f32 %v11098_v40, %v3545_v25  ;;  %v6052_v28 = vadd.f32 %v11098_v40, %v3825_v26 }
 0x233   : > { %v6611_v48 = vmax.f32 %v6163_v35, 0.0  ;;  %v6723_v49 = vmax.f32 %v6275_v36, 0.0 }
 0x234   : > { %v6388_v31 = vmax.f32 %v5940_v27, 0.0  ;;  %v6500_v32 = vmax.f32 %v6052_v28, 0.0 }
 0x236   : > { %v9300_v33 = vpack.c.bf16 %v6388_v31, %v6387_v29  ;;  %v9580_v34 = vpack.c.bf16 %v6500_v32, %v6499_v30 }
 0x238   : > { %10316 = vst [vmem:[%s10839_s18 + $0xc8] sm:$0xff] %v9300_v33   ;;  %v4105_v37 = vpop.f32.mrf.mxu2  ;;  %v4385_v38 = vpop.f32.mrf.mxu3 }
 0x239   : > { %10372 = vst [vmem:[%s10839_s18 + $0x288] sm:$0xff] %v9580_v34   ;;  %v6164_v42 = vadd.f32 %v11098_v40, %v4105_v37  ;;  %v6276_v43 = vadd.f32 %v11098_v40, %v4385_v38  ;;  %v3548_v44 = vpop.f32.mrf.mxu0  ;;  %v3828_v45 = vpop.f32.mrf.mxu1  ;;  %v11363_v40 = vld [vmem:[%s11944_s2] ss:$0 sm:$0xff] }
 0x23a   : > { %v5941_v54 = vadd.f32 %v11363_v40, %v3548_v44  ;;  %v6053_v55 = vadd.f32 %v11363_v40, %v3828_v45 }
 0x23b   : > { %v6612_v50 = vmax.f32 %v6164_v42, 0.0  ;;  %v6724_v51 = vmax.f32 %v6276_v43, 0.0  ;;  %v9037_v42 = vld [vmem:[%s10751_s7 + $0x2e0] sm:$0xff] }
 0x23c   : > { %8752 = vmatmul.msk.bf16.gmra.mxu0 %vm2736_vm0, %v8979_v39  ;;  %8808 = vmatmul.msk.bf16.gmra.mxu1 %vm2736_vm0, %v9035_v41  ;;  %v6389_v62 = vmax.f32 %v5941_v54, 0.0  ;;  %v6501_v63 = vmax.f32 %v6053_v55, 0.0  ;;  %v8981_v41 = vld [vmem:[%s10751_s7 + $0x120] sm:$0xff] }
 0x23d   : > { %v9860_v52 = vpack.c.bf16 %v6612_v50, %v6611_v48  ;;  %v10140_v53 = vpack.c.bf16 %v6724_v51, %v6723_v49  ;;  %8864 = vmatmul.msk.bf16.gmra.mxu2 %vm2736_vm0, %v9091_v46  ;;  %8920 = vmatmul.msk.bf16.gmra.mxu3 %vm2736_vm0, %v9147_v47  ;;  %v9093_v47 = vld [vmem:[%s10751_s7 + $0x4a0] sm:$0xff] }
 0x23e   : > { %v9149_v48 = vld [vmem:[%s10751_s7 + $0x660] sm:$0xff] }
 0x23f   : > { %10428 = vst [vmem:[%s10839_s18 + $0x448] sm:$0xff] %v9860_v52  }
 0x240   : > { %10484 = vst [vmem:[%s10839_s18 + $0x608] sm:$0xff] %v10140_v53   ;;  %v4108_v56 = vpop.f32.mrf.mxu2  ;;  %v4388_v57 = vpop.f32.mrf.mxu3 }
 0x241   : > { %v3550_v58 = vpop.f32.mrf.mxu0  ;;  %v3830_v59 = vpop.f32.mrf.mxu1  ;;  %v6165_v4 = vadd.f32 %v11363_v40, %v4108_v56  ;;  %v6277_v5 = vadd.f32 %v11363_v40, %v4388_v57 }
 0x242   : > { %v5942_v60 = vadd.f32 %v11363_v40, %v3550_v58  ;;  %v6054_v61 = vadd.f32 %v11363_v40, %v3830_v59 }
 0x243   : > { %v6613_v16 = vmax.f32 %v6165_v4, 0.0  ;;  %v6725_v17 = vmax.f32 %v6277_v5, 0.0 }
 0x244   : > { %v6390_v0 = vmax.f32 %v5942_v60, 0.0  ;;  %v6502_v1 = vmax.f32 %v6054_v61, 0.0 }
 0x246   : > { %v9305_v2 = vpack.c.bf16 %v6390_v0, %v6389_v62  ;;  %v9585_v3 = vpack.c.bf16 %v6502_v1, %v6501_v63 }
 0x248   : > { %10317 = vst [vmem:[%s10839_s18 + $0xd0] sm:$0xff] %v9305_v2   ;;  %v4110_v6 = vpop.f32.mrf.mxu2  ;;  %v4390_v7 = vpop.f32.mrf.mxu3 }
 0x249   : > { %10373 = vst [vmem:[%s10839_s18 + $0x290] sm:$0xff] %v9585_v3   ;;  %v6166_v10 = vadd.f32 %v11363_v40, %v4110_v6  ;;  %v6278_v11 = vadd.f32 %v11363_v40, %v4390_v7  ;;  %v3553_v12 = vpop.f32.mrf.mxu0  ;;  %v3833_v13 = vpop.f32.mrf.mxu1 }
 0x24a   : > { %v5943_v22 = vadd.f32 %v11363_v40, %v3553_v12  ;;  %v6055_v23 = vadd.f32 %v11363_v40, %v3833_v13 }
 0x24b   : > { %v6614_v18 = vmax.f32 %v6166_v10, 0.0  ;;  %v6726_v19 = vmax.f32 %v6278_v11, 0.0  ;;  %v9038_v10 = vld [vmem:[%s10751_s7 + $0x2e8] sm:$0xff] }
 0x24c   : > { %8753 = vmatmul.msk.bf16.gmra.mxu0 %vm2736_vm0, %v8980_v8  ;;  %8809 = vmatmul.msk.bf16.gmra.mxu1 %vm2736_vm0, %v9036_v9  ;;  %v6391_v30 = vmax.f32 %v5943_v22, 0.0  ;;  %v6503_v31 = vmax.f32 %v6055_v23, 0.0  ;;  %v8982_v9 = vld [vmem:[%s10751_s7 + $0x128] sm:$0xff] }
 0x24d   : > { %v9865_v20 = vpack.c.bf16 %v6614_v18, %v6613_v16  ;;  %v10145_v21 = vpack.c.bf16 %v6726_v19, %v6725_v17  ;;  %8865 = vmatmul.msk.bf16.gmra.mxu2 %vm2736_vm0, %v9092_v14  ;;  %8921 = vmatmul.msk.bf16.gmra.mxu3 %vm2736_vm0, %v9148_v15  ;;  %v9094_v15 = vld [vmem:[%s10751_s7 + $0x4a8] sm:$0xff] }
 0x24e   : > { %v9150_v16 = vld [vmem:[%s10751_s7 + $0x668] sm:$0xff] }
 0x24f   : > { %10429 = vst [vmem:[%s10839_s18 + $0x450] sm:$0xff] %v9865_v20  }
 0x250   : > { %10485 = vst [vmem:[%s10839_s18 + $0x610] sm:$0xff] %v10145_v21   ;;  %v4113_v24 = vpop.f32.mrf.mxu2  ;;  %v4393_v25 = vpop.f32.mrf.mxu3 }
 0x251   : > { %v3555_v26 = vpop.f32.mrf.mxu0  ;;  %v3835_v27 = vpop.f32.mrf.mxu1  ;;  %v6167_v36 = vadd.f32 %v11363_v40, %v4113_v24  ;;  %v6279_v37 = vadd.f32 %v11363_v40, %v4393_v25 }
 0x252   : > { %v5944_v28 = vadd.f32 %v11363_v40, %v3555_v26  ;;  %v6056_v29 = vadd.f32 %v11363_v40, %v3835_v27 }
 0x253   : > { %v6615_v49 = vmax.f32 %v6167_v36, 0.0  ;;  %v6727_v50 = vmax.f32 %v6279_v37, 0.0 }
 0x254   : > { %v6392_v32 = vmax.f32 %v5944_v28, 0.0  ;;  %v6504_v33 = vmax.f32 %v6056_v29, 0.0 }
 0x256   : > { %v9310_v34 = vpack.c.bf16 %v6392_v32, %v6391_v30  ;;  %v9590_v35 = vpack.c.bf16 %v6504_v33, %v6503_v31 }
 0x258   : > { %10318 = vst [vmem:[%s10839_s18 + $0xd8] sm:$0xff] %v9310_v34   ;;  %v4115_v38 = vpop.f32.mrf.mxu2  ;;  %v4395_v39 = vpop.f32.mrf.mxu3 }
 0x259   : > { %10374 = vst [vmem:[%s10839_s18 + $0x298] sm:$0xff] %v9590_v35   ;;  %v6168_v43 = vadd.f32 %v11363_v40, %v4115_v38  ;;  %v6280_v44 = vadd.f32 %v11363_v40, %v4395_v39  ;;  %v3558_v45 = vpop.f32.mrf.mxu0  ;;  %v3838_v46 = vpop.f32.mrf.mxu1 }
 0x25a   : > { %v5945_v55 = vadd.f32 %v11363_v40, %v3558_v45  ;;  %v6057_v56 = vadd.f32 %v11363_v40, %v3838_v46 }
 0x25b   : > { %v6616_v51 = vmax.f32 %v6168_v43, 0.0  ;;  %v6728_v52 = vmax.f32 %v6280_v44, 0.0  ;;  %v9039_v43 = vld [vmem:[%s10751_s7 + $0x2f0] sm:$0xff] }
 0x25c   : > { %8754 = vmatmul.msk.bf16.gmra.mxu0 %vm2736_vm0, %v8981_v41  ;;  %8810 = vmatmul.msk.bf16.gmra.mxu1 %vm2736_vm0, %v9037_v42  ;;  %v6393_v63 = vmax.f32 %v5945_v55, 0.0  ;;  %v6505_v0 = vmax.f32 %v6057_v56, 0.0  ;;  %v8983_v42 = vld [vmem:[%s10751_s7 + $0x130] sm:$0xff] }
 0x25d   : > { %v9870_v53 = vpack.c.bf16 %v6616_v51, %v6615_v49  ;;  %v10150_v54 = vpack.c.bf16 %v6728_v52, %v6727_v50  ;;  %8866 = vmatmul.msk.bf16.gmra.mxu2 %vm2736_vm0, %v9093_v47  ;;  %8922 = vmatmul.msk.bf16.gmra.mxu3 %vm2736_vm0, %v9149_v48  ;;  %v9095_v48 = vld [vmem:[%s10751_s7 + $0x4b0] sm:$0xff] }
 0x25e   : > { %v9151_v49 = vld [vmem:[%s10751_s7 + $0x670] sm:$0xff] }
 0x25f   : > { %10430 = vst [vmem:[%s10839_s18 + $0x458] sm:$0xff] %v9870_v53  }
 0x260   : > { %10486 = vst [vmem:[%s10839_s18 + $0x618] sm:$0xff] %v10150_v54   ;;  %v4118_v57 = vpop.f32.mrf.mxu2  ;;  %v4398_v58 = vpop.f32.mrf.mxu3 }
 0x261   : > { %v3560_v59 = vpop.f32.mrf.mxu0  ;;  %v3840_v60 = vpop.f32.mrf.mxu1  ;;  %v6169_v5 = vadd.f32 %v11363_v40, %v4118_v57  ;;  %v6281_v6 = vadd.f32 %v11363_v40, %v4398_v58 }
 0x262   : > { %v5946_v61 = vadd.f32 %v11363_v40, %v3560_v59  ;;  %v6058_v62 = vadd.f32 %v11363_v40, %v3840_v60 }
 0x263   : > { %v6617_v17 = vmax.f32 %v6169_v5, 0.0  ;;  %v6729_v18 = vmax.f32 %v6281_v6, 0.0 }
 0x264   : > { %v6394_v1 = vmax.f32 %v5946_v61, 0.0  ;;  %v6506_v2 = vmax.f32 %v6058_v62, 0.0 }
 0x266   : > { %v9315_v3 = vpack.c.bf16 %v6394_v1, %v6393_v63  ;;  %v9595_v4 = vpack.c.bf16 %v6506_v2, %v6505_v0 }
 0x268   : > { %10319 = vst [vmem:[%s10839_s18 + $0xe0] sm:$0xff] %v9315_v3   ;;  %v4120_v7 = vpop.f32.mrf.mxu2  ;;  %v4400_v8 = vpop.f32.mrf.mxu3 }
 0x269   : > { %10375 = vst [vmem:[%s10839_s18 + $0x2a0] sm:$0xff] %v9595_v4   ;;  %v6170_v11 = vadd.f32 %v11363_v40, %v4120_v7  ;;  %v6282_v12 = vadd.f32 %v11363_v40, %v4400_v8  ;;  %v3563_v13 = vpop.f32.mrf.mxu0  ;;  %v3843_v14 = vpop.f32.mrf.mxu1 }
 0x26a   : > { %v5947_v23 = vadd.f32 %v11363_v40, %v3563_v13  ;;  %v6059_v24 = vadd.f32 %v11363_v40, %v3843_v14 }
 0x26b   : > { %v6618_v19 = vmax.f32 %v6170_v11, 0.0  ;;  %v6730_v20 = vmax.f32 %v6282_v12, 0.0  ;;  %v9040_v11 = vld [vmem:[%s10751_s7 + $0x2f8] sm:$0xff] }
 0x26c   : > { %8755 = vmatmul.msk.bf16.gmra.mxu0 %vm2736_vm0, %v8982_v9  ;;  %8811 = vmatmul.msk.bf16.gmra.mxu1 %vm2736_vm0, %v9038_v10  ;;  %v6395_v31 = vmax.f32 %v5947_v23, 0.0  ;;  %v6507_v32 = vmax.f32 %v6059_v24, 0.0  ;;  %v8984_v10 = vld [vmem:[%s10751_s7 + $0x138] sm:$0xff] }
 0x26d   : > { %v9875_v21 = vpack.c.bf16 %v6618_v19, %v6617_v17  ;;  %v10155_v22 = vpack.c.bf16 %v6730_v20, %v6729_v18  ;;  %8867 = vmatmul.msk.bf16.gmra.mxu2 %vm2736_vm0, %v9094_v15  ;;  %8923 = vmatmul.msk.bf16.gmra.mxu3 %vm2736_vm0, %v9150_v16  ;;  %v9096_v16 = vld [vmem:[%s10751_s7 + $0x4b8] sm:$0xff] }
 0x26e   : > { %v9152_v17 = vld [vmem:[%s10751_s7 + $0x678] sm:$0xff] }
 0x26f   : > { %10431 = vst [vmem:[%s10839_s18 + $0x460] sm:$0xff] %v9875_v21  }
 0x270   : > { %10487 = vst [vmem:[%s10839_s18 + $0x620] sm:$0xff] %v10155_v22   ;;  %v4123_v25 = vpop.f32.mrf.mxu2  ;;  %v4403_v26 = vpop.f32.mrf.mxu3 }
 0x271   : > { %v3565_v27 = vpop.f32.mrf.mxu0  ;;  %v3845_v28 = vpop.f32.mrf.mxu1  ;;  %v6171_v37 = vadd.f32 %v11363_v40, %v4123_v25  ;;  %v6283_v38 = vadd.f32 %v11363_v40, %v4403_v26 }
 0x272   : > { %v5948_v29 = vadd.f32 %v11363_v40, %v3565_v27  ;;  %v6060_v30 = vadd.f32 %v11363_v40, %v3845_v28 }
 0x273   : > { %v6619_v50 = vmax.f32 %v6171_v37, 0.0  ;;  %v6731_v51 = vmax.f32 %v6283_v38, 0.0 }
 0x274   : > { %v6396_v33 = vmax.f32 %v5948_v29, 0.0  ;;  %v6508_v34 = vmax.f32 %v6060_v30, 0.0 }
 0x276   : > { %v9320_v35 = vpack.c.bf16 %v6396_v33, %v6395_v31  ;;  %v9600_v36 = vpack.c.bf16 %v6508_v34, %v6507_v32 }
 0x278   : > { %10320 = vst [vmem:[%s10839_s18 + $0xe8] sm:$0xff] %v9320_v35   ;;  %v4125_v39 = vpop.f32.mrf.mxu2  ;;  %v4405_v41 = vpop.f32.mrf.mxu3 }
 0x279   : > { %10376 = vst [vmem:[%s10839_s18 + $0x2a8] sm:$0xff] %v9600_v36   ;;  %v6172_v44 = vadd.f32 %v11363_v40, %v4125_v39  ;;  %v6284_v45 = vadd.f32 %v11363_v40, %v4405_v41  ;;  %v3568_v46 = vpop.f32.mrf.mxu0  ;;  %v3848_v47 = vpop.f32.mrf.mxu1 }
 0x27a   : > { %v5949_v56 = vadd.f32 %v11363_v40, %v3568_v46  ;;  %v6061_v57 = vadd.f32 %v11363_v40, %v3848_v47 }
 0x27b   : > { %v6620_v52 = vmax.f32 %v6172_v44, 0.0  ;;  %v6732_v53 = vmax.f32 %v6284_v45, 0.0  ;;  %v9041_v44 = vld [vmem:[%s10751_s7 + $0x300] sm:$0xff] }
 0x27c   : > { %8756 = vmatmul.msk.bf16.gmra.mxu0 %vm2736_vm0, %v8983_v42  ;;  %8812 = vmatmul.msk.bf16.gmra.mxu1 %vm2736_vm0, %v9039_v43  ;;  %v6397_v0 = vmax.f32 %v5949_v56, 0.0  ;;  %v6509_v1 = vmax.f32 %v6061_v57, 0.0  ;;  %v8985_v43 = vld [vmem:[%s10751_s7 + $0x140] sm:$0xff] }
 0x27d   : > { %v9880_v54 = vpack.c.bf16 %v6620_v52, %v6619_v50  ;;  %v10160_v55 = vpack.c.bf16 %v6732_v53, %v6731_v51  ;;  %8868 = vmatmul.msk.bf16.gmra.mxu2 %vm2736_vm0, %v9095_v48  ;;  %8924 = vmatmul.msk.bf16.gmra.mxu3 %vm2736_vm0, %v9151_v49  ;;  %v9097_v49 = vld [vmem:[%s10751_s7 + $0x4c0] sm:$0xff] }
 0x27e   : > { %v9153_v50 = vld [vmem:[%s10751_s7 + $0x680] sm:$0xff] }
 0x27f   : > { %10432 = vst [vmem:[%s10839_s18 + $0x468] sm:$0xff] %v9880_v54  }
 0x280   : > { %10488 = vst [vmem:[%s10839_s18 + $0x628] sm:$0xff] %v10160_v55   ;;  %v4128_v58 = vpop.f32.mrf.mxu2  ;;  %v4408_v59 = vpop.f32.mrf.mxu3 }
 0x281   : > { %v3570_v60 = vpop.f32.mrf.mxu0  ;;  %v3850_v61 = vpop.f32.mrf.mxu1  ;;  %v6173_v6 = vadd.f32 %v11363_v40, %v4128_v58  ;;  %v6285_v7 = vadd.f32 %v11363_v40, %v4408_v59 }
 0x282   : > { %v5950_v62 = vadd.f32 %v11363_v40, %v3570_v60  ;;  %v6062_v63 = vadd.f32 %v11363_v40, %v3850_v61 }
 0x283   : > { %v6621_v18 = vmax.f32 %v6173_v6, 0.0  ;;  %v6733_v19 = vmax.f32 %v6285_v7, 0.0 }
 0x284   : > { %v6398_v2 = vmax.f32 %v5950_v62, 0.0  ;;  %v6510_v3 = vmax.f32 %v6062_v63, 0.0 }
 0x286   : > { %v9325_v4 = vpack.c.bf16 %v6398_v2, %v6397_v0  ;;  %v9605_v5 = vpack.c.bf16 %v6510_v3, %v6509_v1 }
 0x288   : > { %10321 = vst [vmem:[%s10839_s18 + $0xf0] sm:$0xff] %v9325_v4   ;;  %v4130_v8 = vpop.f32.mrf.mxu2  ;;  %v4410_v9 = vpop.f32.mrf.mxu3 }
 0x289   : > { %10377 = vst [vmem:[%s10839_s18 + $0x2b0] sm:$0xff] %v9605_v5   ;;  %v6174_v12 = vadd.f32 %v11363_v40, %v4130_v8  ;;  %v6286_v13 = vadd.f32 %v11363_v40, %v4410_v9  ;;  %v3573_v14 = vpop.f32.mrf.mxu0  ;;  %v3853_v15 = vpop.f32.mrf.mxu1 }
 0x28a   : > { %v5951_v24 = vadd.f32 %v11363_v40, %v3573_v14  ;;  %v6063_v25 = vadd.f32 %v11363_v40, %v3853_v15 }
 0x28b   : > { %v6622_v20 = vmax.f32 %v6174_v12, 0.0  ;;  %v6734_v21 = vmax.f32 %v6286_v13, 0.0  ;;  %v9042_v12 = vld [vmem:[%s10751_s7 + $0x308] sm:$0xff] }
 0x28c   : > { %8757 = vmatmul.msk.bf16.gmra.mxu0 %vm2736_vm0, %v8984_v10  ;;  %8813 = vmatmul.msk.bf16.gmra.mxu1 %vm2736_vm0, %v9040_v11  ;;  %v6399_v32 = vmax.f32 %v5951_v24, 0.0  ;;  %v6511_v33 = vmax.f32 %v6063_v25, 0.0  ;;  %v8986_v11 = vld [vmem:[%s10751_s7 + $0x148] sm:$0xff] }
 0x28d   : > { %v9885_v22 = vpack.c.bf16 %v6622_v20, %v6621_v18  ;;  %v10165_v23 = vpack.c.bf16 %v6734_v21, %v6733_v19  ;;  %8869 = vmatmul.msk.bf16.gmra.mxu2 %vm2736_vm0, %v9096_v16  ;;  %8925 = vmatmul.msk.bf16.gmra.mxu3 %vm2736_vm0, %v9152_v17  ;;  %v9098_v17 = vld [vmem:[%s10751_s7 + $0x4c8] sm:$0xff] }
 0x28e   : > { %v9154_v18 = vld [vmem:[%s10751_s7 + $0x688] sm:$0xff] }
 0x28f   : > { %10433 = vst [vmem:[%s10839_s18 + $0x470] sm:$0xff] %v9885_v22  }
 0x290   : > { %10489 = vst [vmem:[%s10839_s18 + $0x630] sm:$0xff] %v10165_v23   ;;  %v4133_v26 = vpop.f32.mrf.mxu2  ;;  %v4413_v27 = vpop.f32.mrf.mxu3 }
 0x291   : > { %v3575_v28 = vpop.f32.mrf.mxu0  ;;  %v3855_v29 = vpop.f32.mrf.mxu1  ;;  %v6175_v38 = vadd.f32 %v11363_v40, %v4133_v26  ;;  %v6287_v39 = vadd.f32 %v11363_v40, %v4413_v27 }
 0x292   : > { %v5952_v30 = vadd.f32 %v11363_v40, %v3575_v28  ;;  %v6064_v31 = vadd.f32 %v11363_v40, %v3855_v29 }
 0x293   : > { %v6623_v51 = vmax.f32 %v6175_v38, 0.0  ;;  %v6735_v52 = vmax.f32 %v6287_v39, 0.0 }
 0x294   : > { %v6400_v34 = vmax.f32 %v5952_v30, 0.0  ;;  %v6512_v35 = vmax.f32 %v6064_v31, 0.0 }
 0x296   : > { %v9330_v36 = vpack.c.bf16 %v6400_v34, %v6399_v32  ;;  %v9610_v37 = vpack.c.bf16 %v6512_v35, %v6511_v33 }
 0x298   : > { %10322 = vst [vmem:[%s10839_s18 + $0xf8] sm:$0xff] %v9330_v36   ;;  %v4135_v41 = vpop.f32.mrf.mxu2  ;;  %v4415_v42 = vpop.f32.mrf.mxu3 }
 0x299   : > { %10378 = vst [vmem:[%s10839_s18 + $0x2b8] sm:$0xff] %v9610_v37   ;;  %v6176_v45 = vadd.f32 %v11363_v40, %v4135_v41  ;;  %v6288_v46 = vadd.f32 %v11363_v40, %v4415_v42  ;;  %v3578_v47 = vpop.f32.mrf.mxu0  ;;  %v3858_v48 = vpop.f32.mrf.mxu1 }
 0x29a   : > { %v5953_v57 = vadd.f32 %v11363_v40, %v3578_v47  ;;  %v6065_v58 = vadd.f32 %v11363_v40, %v3858_v48 }
 0x29b   : > { %v6624_v53 = vmax.f32 %v6176_v45, 0.0  ;;  %v6736_v54 = vmax.f32 %v6288_v46, 0.0  ;;  %v9043_v45 = vld [vmem:[%s10751_s7 + $0x310] sm:$0xff] }
 0x29c   : > { %8758 = vmatmul.msk.bf16.gmra.mxu0 %vm2736_vm0, %v8985_v43  ;;  %8814 = vmatmul.msk.bf16.gmra.mxu1 %vm2736_vm0, %v9041_v44  ;;  %v6401_v1 = vmax.f32 %v5953_v57, 0.0  ;;  %v6513_v2 = vmax.f32 %v6065_v58, 0.0  ;;  %v8987_v44 = vld [vmem:[%s10751_s7 + $0x150] sm:$0xff] }
 0x29d   : > { %v9890_v55 = vpack.c.bf16 %v6624_v53, %v6623_v51  ;;  %v10170_v56 = vpack.c.bf16 %v6736_v54, %v6735_v52  ;;  %8870 = vmatmul.msk.bf16.gmra.mxu2 %vm2736_vm0, %v9097_v49  ;;  %8926 = vmatmul.msk.bf16.gmra.mxu3 %vm2736_vm0, %v9153_v50  ;;  %v9099_v50 = vld [vmem:[%s10751_s7 + $0x4d0] sm:$0xff] }
 0x29e   : > { %v9155_v51 = vld [vmem:[%s10751_s7 + $0x690] sm:$0xff] }
 0x29f   : > { %10434 = vst [vmem:[%s10839_s18 + $0x478] sm:$0xff] %v9890_v55  }
 0x2a0   : > { %10490 = vst [vmem:[%s10839_s18 + $0x638] sm:$0xff] %v10170_v56   ;;  %v4138_v59 = vpop.f32.mrf.mxu2  ;;  %v4418_v60 = vpop.f32.mrf.mxu3 }
 0x2a1   : > { %v3580_v61 = vpop.f32.mrf.mxu0  ;;  %v3860_v62 = vpop.f32.mrf.mxu1  ;;  %v6177_v7 = vadd.f32 %v11363_v40, %v4138_v59  ;;  %v6289_v8 = vadd.f32 %v11363_v40, %v4418_v60 }
 0x2a2   : > { %v5954_v63 = vadd.f32 %v11363_v40, %v3580_v61  ;;  %v6066_v0 = vadd.f32 %v11363_v40, %v3860_v62 }
 0x2a3   : > { %v6625_v19 = vmax.f32 %v6177_v7, 0.0  ;;  %v6737_v20 = vmax.f32 %v6289_v8, 0.0 }
 0x2a4   : > { %v6402_v3 = vmax.f32 %v5954_v63, 0.0  ;;  %v6514_v4 = vmax.f32 %v6066_v0, 0.0 }
 0x2a6   : > { %v9335_v5 = vpack.c.bf16 %v6402_v3, %v6401_v1  ;;  %v9615_v6 = vpack.c.bf16 %v6514_v4, %v6513_v2 }
 0x2a8   : > { %10323 = vst [vmem:[%s10839_s18 + $0x100] sm:$0xff] %v9335_v5   ;;  %v4140_v9 = vpop.f32.mrf.mxu2  ;;  %v4420_v10 = vpop.f32.mrf.mxu3 }
 0x2a9   : > { %10379 = vst [vmem:[%s10839_s18 + $0x2c0] sm:$0xff] %v9615_v6   ;;  %v6178_v13 = vadd.f32 %v11363_v40, %v4140_v9  ;;  %v6290_v14 = vadd.f32 %v11363_v40, %v4420_v10  ;;  %v3583_v15 = vpop.f32.mrf.mxu0  ;;  %v3863_v16 = vpop.f32.mrf.mxu1 }
 0x2aa   : > { %v5955_v25 = vadd.f32 %v11363_v40, %v3583_v15  ;;  %v6067_v26 = vadd.f32 %v11363_v40, %v3863_v16 }
 0x2ab   : > { %v6626_v21 = vmax.f32 %v6178_v13, 0.0  ;;  %v6738_v22 = vmax.f32 %v6290_v14, 0.0  ;;  %v9044_v13 = vld [vmem:[%s10751_s7 + $0x318] sm:$0xff] }
 0x2ac   : > { %8759 = vmatmul.msk.bf16.gmra.mxu0 %vm2736_vm0, %v8986_v11  ;;  %8815 = vmatmul.msk.bf16.gmra.mxu1 %vm2736_vm0, %v9042_v12  ;;  %v6403_v33 = vmax.f32 %v5955_v25, 0.0  ;;  %v6515_v34 = vmax.f32 %v6067_v26, 0.0  ;;  %v8988_v12 = vld [vmem:[%s10751_s7 + $0x158] sm:$0xff] }
 0x2ad   : > { %v9895_v23 = vpack.c.bf16 %v6626_v21, %v6625_v19  ;;  %v10175_v24 = vpack.c.bf16 %v6738_v22, %v6737_v20  ;;  %8871 = vmatmul.msk.bf16.gmra.mxu2 %vm2736_vm0, %v9098_v17  ;;  %8927 = vmatmul.msk.bf16.gmra.mxu3 %vm2736_vm0, %v9154_v18  ;;  %v9100_v18 = vld [vmem:[%s10751_s7 + $0x4d8] sm:$0xff] }
 0x2ae   : > { %v9156_v19 = vld [vmem:[%s10751_s7 + $0x698] sm:$0xff] }
 0x2af   : > { %10435 = vst [vmem:[%s10839_s18 + $0x480] sm:$0xff] %v9895_v23  }
 0x2b0   : > { %10491 = vst [vmem:[%s10839_s18 + $0x640] sm:$0xff] %v10175_v24   ;;  %v4143_v27 = vpop.f32.mrf.mxu2  ;;  %v4423_v28 = vpop.f32.mrf.mxu3 }
 0x2b1   : > { %v3585_v29 = vpop.f32.mrf.mxu0  ;;  %v3865_v30 = vpop.f32.mrf.mxu1  ;;  %v6179_v39 = vadd.f32 %v11363_v40, %v4143_v27  ;;  %v6291_v41 = vadd.f32 %v11363_v40, %v4423_v28 }
 0x2b2   : > { %v5956_v31 = vadd.f32 %v11363_v40, %v3585_v29  ;;  %v6068_v32 = vadd.f32 %v11363_v40, %v3865_v30 }
 0x2b3   : > { %v6627_v52 = vmax.f32 %v6179_v39, 0.0  ;;  %v6739_v53 = vmax.f32 %v6291_v41, 0.0 }
 0x2b4   : > { %v6404_v35 = vmax.f32 %v5956_v31, 0.0  ;;  %v6516_v36 = vmax.f32 %v6068_v32, 0.0 }
 0x2b6   : > { %v9340_v37 = vpack.c.bf16 %v6404_v35, %v6403_v33  ;;  %v9620_v38 = vpack.c.bf16 %v6516_v36, %v6515_v34 }
 0x2b8   : > { %10324 = vst [vmem:[%s10839_s18 + $0x108] sm:$0xff] %v9340_v37   ;;  %v4145_v42 = vpop.f32.mrf.mxu2  ;;  %v4425_v43 = vpop.f32.mrf.mxu3 }
 0x2b9   : > { %10380 = vst [vmem:[%s10839_s18 + $0x2c8] sm:$0xff] %v9620_v38   ;;  %v6180_v46 = vadd.f32 %v11363_v40, %v4145_v42  ;;  %v6292_v47 = vadd.f32 %v11363_v40, %v4425_v43  ;;  %v3588_v48 = vpop.f32.mrf.mxu0  ;;  %v3868_v49 = vpop.f32.mrf.mxu1 }
 0x2ba   : > { %v5957_v58 = vadd.f32 %v11363_v40, %v3588_v48  ;;  %v6069_v59 = vadd.f32 %v11363_v40, %v3868_v49 }
 0x2bb   : > { %v6628_v54 = vmax.f32 %v6180_v46, 0.0  ;;  %v6740_v55 = vmax.f32 %v6292_v47, 0.0  ;;  %v9045_v46 = vld [vmem:[%s10751_s7 + $0x320] sm:$0xff] }
 0x2bc   : > { %8760 = vmatmul.msk.bf16.gmra.mxu0 %vm2736_vm0, %v8987_v44  ;;  %8816 = vmatmul.msk.bf16.gmra.mxu1 %vm2736_vm0, %v9043_v45  ;;  %v6405_v2 = vmax.f32 %v5957_v58, 0.0  ;;  %v6517_v3 = vmax.f32 %v6069_v59, 0.0  ;;  %v8989_v45 = vld [vmem:[%s10751_s7 + $0x160] sm:$0xff] }
 0x2bd   : > { %v9900_v56 = vpack.c.bf16 %v6628_v54, %v6627_v52  ;;  %v10180_v57 = vpack.c.bf16 %v6740_v55, %v6739_v53  ;;  %8872 = vmatmul.msk.bf16.gmra.mxu2 %vm2736_vm0, %v9099_v50  ;;  %8928 = vmatmul.msk.bf16.gmra.mxu3 %vm2736_vm0, %v9155_v51  ;;  %v9101_v51 = vld [vmem:[%s10751_s7 + $0x4e0] sm:$0xff] }
 0x2be   : > { %v9157_v52 = vld [vmem:[%s10751_s7 + $0x6a0] sm:$0xff] }
 0x2bf   : > { %10436 = vst [vmem:[%s10839_s18 + $0x488] sm:$0xff] %v9900_v56  }
 0x2c0   : > { %10492 = vst [vmem:[%s10839_s18 + $0x648] sm:$0xff] %v10180_v57   ;;  %v4148_v60 = vpop.f32.mrf.mxu2  ;;  %v4428_v61 = vpop.f32.mrf.mxu3 }
 0x2c1   : > { %v3590_v62 = vpop.f32.mrf.mxu0  ;;  %v3870_v63 = vpop.f32.mrf.mxu1  ;;  %v6181_v8 = vadd.f32 %v11363_v40, %v4148_v60  ;;  %v6293_v9 = vadd.f32 %v11363_v40, %v4428_v61 }
 0x2c2   : > { %v5958_v0 = vadd.f32 %v11363_v40, %v3590_v62  ;;  %v6070_v1 = vadd.f32 %v11363_v40, %v3870_v63 }
 0x2c3   : > { %v6629_v20 = vmax.f32 %v6181_v8, 0.0  ;;  %v6741_v21 = vmax.f32 %v6293_v9, 0.0 }
 0x2c4   : > { %v6406_v4 = vmax.f32 %v5958_v0, 0.0  ;;  %v6518_v5 = vmax.f32 %v6070_v1, 0.0 }
 0x2c6   : > { %v9345_v6 = vpack.c.bf16 %v6406_v4, %v6405_v2  ;;  %v9625_v7 = vpack.c.bf16 %v6518_v5, %v6517_v3 }
 0x2c8   : > { %10325 = vst [vmem:[%s10839_s18 + $0x110] sm:$0xff] %v9345_v6   ;;  %v4150_v10 = vpop.f32.mrf.mxu2  ;;  %v4430_v11 = vpop.f32.mrf.mxu3 }
 0x2c9   : > { %10381 = vst [vmem:[%s10839_s18 + $0x2d0] sm:$0xff] %v9625_v7   ;;  %v6182_v14 = vadd.f32 %v11363_v40, %v4150_v10  ;;  %v6294_v15 = vadd.f32 %v11363_v40, %v4430_v11  ;;  %v3593_v16 = vpop.f32.mrf.mxu0  ;;  %v3873_v17 = vpop.f32.mrf.mxu1 }
 0x2ca   : > { %v5959_v26 = vadd.f32 %v11363_v40, %v3593_v16  ;;  %v6071_v27 = vadd.f32 %v11363_v40, %v3873_v17 }
 0x2cb   : > { %v6630_v22 = vmax.f32 %v6182_v14, 0.0  ;;  %v6742_v23 = vmax.f32 %v6294_v15, 0.0  ;;  %v9046_v14 = vld [vmem:[%s10751_s7 + $0x328] sm:$0xff] }
 0x2cc   : > { %8761 = vmatmul.msk.bf16.gmra.mxu0 %vm2736_vm0, %v8988_v12  ;;  %8817 = vmatmul.msk.bf16.gmra.mxu1 %vm2736_vm0, %v9044_v13  ;;  %v6407_v34 = vmax.f32 %v5959_v26, 0.0  ;;  %v6519_v35 = vmax.f32 %v6071_v27, 0.0  ;;  %v8990_v13 = vld [vmem:[%s10751_s7 + $0x168] sm:$0xff] }
 0x2cd   : > { %v9905_v24 = vpack.c.bf16 %v6630_v22, %v6629_v20  ;;  %v10185_v25 = vpack.c.bf16 %v6742_v23, %v6741_v21  ;;  %8873 = vmatmul.msk.bf16.gmra.mxu2 %vm2736_vm0, %v9100_v18  ;;  %8929 = vmatmul.msk.bf16.gmra.mxu3 %vm2736_vm0, %v9156_v19  ;;  %v9102_v19 = vld [vmem:[%s10751_s7 + $0x4e8] sm:$0xff] }
 0x2ce   : > { %v9158_v20 = vld [vmem:[%s10751_s7 + $0x6a8] sm:$0xff] }
 0x2cf   : > { %10437 = vst [vmem:[%s10839_s18 + $0x490] sm:$0xff] %v9905_v24  }
 0x2d0   : > { %10493 = vst [vmem:[%s10839_s18 + $0x650] sm:$0xff] %v10185_v25   ;;  %v4153_v28 = vpop.f32.mrf.mxu2  ;;  %v4433_v29 = vpop.f32.mrf.mxu3 }
 0x2d1   : > { %v3595_v30 = vpop.f32.mrf.mxu0  ;;  %v3875_v31 = vpop.f32.mrf.mxu1  ;;  %v6183_v41 = vadd.f32 %v11363_v40, %v4153_v28  ;;  %v6295_v42 = vadd.f32 %v11363_v40, %v4433_v29 }
 0x2d2   : > { %v5960_v32 = vadd.f32 %v11363_v40, %v3595_v30  ;;  %v6072_v33 = vadd.f32 %v11363_v40, %v3875_v31 }
 0x2d3   : > { %v6631_v53 = vmax.f32 %v6183_v41, 0.0  ;;  %v6743_v54 = vmax.f32 %v6295_v42, 0.0 }
 0x2d4   : > { %v6408_v36 = vmax.f32 %v5960_v32, 0.0  ;;  %v6520_v37 = vmax.f32 %v6072_v33, 0.0 }
 0x2d6   : > { %v9350_v38 = vpack.c.bf16 %v6408_v36, %v6407_v34  ;;  %v9630_v39 = vpack.c.bf16 %v6520_v37, %v6519_v35 }
 0x2d8   : > { %10326 = vst [vmem:[%s10839_s18 + $0x118] sm:$0xff] %v9350_v38   ;;  %v4155_v43 = vpop.f32.mrf.mxu2  ;;  %v4435_v44 = vpop.f32.mrf.mxu3 }
 0x2d9   : > { %10382 = vst [vmem:[%s10839_s18 + $0x2d8] sm:$0xff] %v9630_v39   ;;  %v6184_v47 = vadd.f32 %v11363_v40, %v4155_v43  ;;  %v6296_v48 = vadd.f32 %v11363_v40, %v4435_v44  ;;  %v3598_v49 = vpop.f32.mrf.mxu0  ;;  %v3878_v50 = vpop.f32.mrf.mxu1 }
 0x2da   : > { %v5961_v59 = vadd.f32 %v11363_v40, %v3598_v49  ;;  %v6073_v60 = vadd.f32 %v11363_v40, %v3878_v50 }
 0x2db   : > { %v6632_v55 = vmax.f32 %v6184_v47, 0.0  ;;  %v6744_v56 = vmax.f32 %v6296_v48, 0.0  ;;  %v9047_v47 = vld [vmem:[%s10751_s7 + $0x330] sm:$0xff] }
 0x2dc   : > { %8762 = vmatmul.msk.bf16.gmra.mxu0 %vm2736_vm0, %v8989_v45  ;;  %8818 = vmatmul.msk.bf16.gmra.mxu1 %vm2736_vm0, %v9045_v46  ;;  %v6409_v3 = vmax.f32 %v5961_v59, 0.0  ;;  %v6521_v4 = vmax.f32 %v6073_v60, 0.0  ;;  %v8991_v46 = vld [vmem:[%s10751_s7 + $0x170] sm:$0xff] }
 0x2dd   : > { %v9910_v57 = vpack.c.bf16 %v6632_v55, %v6631_v53  ;;  %v10190_v58 = vpack.c.bf16 %v6744_v56, %v6743_v54  ;;  %8874 = vmatmul.msk.bf16.gmra.mxu2 %vm2736_vm0, %v9101_v51  ;;  %8930 = vmatmul.msk.bf16.gmra.mxu3 %vm2736_vm0, %v9157_v52  ;;  %v9103_v52 = vld [vmem:[%s10751_s7 + $0x4f0] sm:$0xff] }
 0x2de   : > { %v9159_v53 = vld [vmem:[%s10751_s7 + $0x6b0] sm:$0xff] }
 0x2df   : > { %10438 = vst [vmem:[%s10839_s18 + $0x498] sm:$0xff] %v9910_v57  }
 0x2e0   : > { %10494 = vst [vmem:[%s10839_s18 + $0x658] sm:$0xff] %v10190_v58   ;;  %v4158_v61 = vpop.f32.mrf.mxu2  ;;  %v4438_v62 = vpop.f32.mrf.mxu3 }
 0x2e1   : > { %v3600_v63 = vpop.f32.mrf.mxu0  ;;  %v3880_v0 = vpop.f32.mrf.mxu1  ;;  %v6185_v9 = vadd.f32 %v11363_v40, %v4158_v61  ;;  %v6297_v10 = vadd.f32 %v11363_v40, %v4438_v62 }
 0x2e2   : > { %v5962_v1 = vadd.f32 %v11363_v40, %v3600_v63  ;;  %v6074_v2 = vadd.f32 %v11363_v40, %v3880_v0 }
 0x2e3   : > { %v6633_v21 = vmax.f32 %v6185_v9, 0.0  ;;  %v6745_v22 = vmax.f32 %v6297_v10, 0.0 }
 0x2e4   : > { %v6410_v5 = vmax.f32 %v5962_v1, 0.0  ;;  %v6522_v6 = vmax.f32 %v6074_v2, 0.0 }
 0x2e6   : > { %v9355_v7 = vpack.c.bf16 %v6410_v5, %v6409_v3  ;;  %v9635_v8 = vpack.c.bf16 %v6522_v6, %v6521_v4 }
 0x2e8   : > { %10327 = vst [vmem:[%s10839_s18 + $0x120] sm:$0xff] %v9355_v7   ;;  %v4160_v11 = vpop.f32.mrf.mxu2  ;;  %v4440_v12 = vpop.f32.mrf.mxu3 }
 0x2e9   : > { %10383 = vst [vmem:[%s10839_s18 + $0x2e0] sm:$0xff] %v9635_v8   ;;  %v6186_v15 = vadd.f32 %v11363_v40, %v4160_v11  ;;  %v6298_v16 = vadd.f32 %v11363_v40, %v4440_v12  ;;  %v3603_v17 = vpop.f32.mrf.mxu0  ;;  %v3883_v18 = vpop.f32.mrf.mxu1 }
 0x2ea   : > { %v5963_v27 = vadd.f32 %v11363_v40, %v3603_v17  ;;  %v6075_v28 = vadd.f32 %v11363_v40, %v3883_v18 }
 0x2eb   : > { %v6634_v23 = vmax.f32 %v6186_v15, 0.0  ;;  %v6746_v24 = vmax.f32 %v6298_v16, 0.0  ;;  %v9048_v15 = vld [vmem:[%s10751_s7 + $0x338] sm:$0xff] }
 0x2ec   : > { %8763 = vmatmul.msk.bf16.gmra.mxu0 %vm2736_vm0, %v8990_v13  ;;  %8819 = vmatmul.msk.bf16.gmra.mxu1 %vm2736_vm0, %v9046_v14  ;;  %v6411_v35 = vmax.f32 %v5963_v27, 0.0  ;;  %v6523_v36 = vmax.f32 %v6075_v28, 0.0  ;;  %v8992_v14 = vld [vmem:[%s10751_s7 + $0x178] sm:$0xff] }
 0x2ed   : > { %v9915_v25 = vpack.c.bf16 %v6634_v23, %v6633_v21  ;;  %v10195_v26 = vpack.c.bf16 %v6746_v24, %v6745_v22  ;;  %8875 = vmatmul.msk.bf16.gmra.mxu2 %vm2736_vm0, %v9102_v19  ;;  %8931 = vmatmul.msk.bf16.gmra.mxu3 %vm2736_vm0, %v9158_v20  ;;  %v9104_v20 = vld [vmem:[%s10751_s7 + $0x4f8] sm:$0xff] }
 0x2ee   : > { %v9160_v21 = vld [vmem:[%s10751_s7 + $0x6b8] sm:$0xff] }
 0x2ef   : > { %10439 = vst [vmem:[%s10839_s18 + $0x4a0] sm:$0xff] %v9915_v25  }
 0x2f0   : > { %10495 = vst [vmem:[%s10839_s18 + $0x660] sm:$0xff] %v10195_v26   ;;  %v4163_v29 = vpop.f32.mrf.mxu2  ;;  %v4443_v30 = vpop.f32.mrf.mxu3 }
 0x2f1   : > { %v3605_v31 = vpop.f32.mrf.mxu0  ;;  %v3885_v32 = vpop.f32.mrf.mxu1  ;;  %v6187_v42 = vadd.f32 %v11363_v40, %v4163_v29  ;;  %v6299_v43 = vadd.f32 %v11363_v40, %v4443_v30 }
 0x2f2   : > { %v5964_v33 = vadd.f32 %v11363_v40, %v3605_v31  ;;  %v6076_v34 = vadd.f32 %v11363_v40, %v3885_v32 }
 0x2f3   : > { %v6635_v54 = vmax.f32 %v6187_v42, 0.0  ;;  %v6747_v55 = vmax.f32 %v6299_v43, 0.0 }
 0x2f4   : > { %v6412_v37 = vmax.f32 %v5964_v33, 0.0  ;;  %v6524_v38 = vmax.f32 %v6076_v34, 0.0 }
 0x2f6   : > { %v9360_v39 = vpack.c.bf16 %v6412_v37, %v6411_v35  ;;  %v9640_v41 = vpack.c.bf16 %v6524_v38, %v6523_v36 }
 0x2f8   : > { %10328 = vst [vmem:[%s10839_s18 + $0x128] sm:$0xff] %v9360_v39   ;;  %v4165_v44 = vpop.f32.mrf.mxu2  ;;  %v4445_v45 = vpop.f32.mrf.mxu3 }
 0x2f9   : > { %10384 = vst [vmem:[%s10839_s18 + $0x2e8] sm:$0xff] %v9640_v41   ;;  %v6188_v48 = vadd.f32 %v11363_v40, %v4165_v44  ;;  %v6300_v49 = vadd.f32 %v11363_v40, %v4445_v45  ;;  %v3608_v50 = vpop.f32.mrf.mxu0  ;;  %v3888_v51 = vpop.f32.mrf.mxu1 }
 0x2fa   : > { %v5965_v60 = vadd.f32 %v11363_v40, %v3608_v50  ;;  %v6077_v61 = vadd.f32 %v11363_v40, %v3888_v51 }
 0x2fb   : > { %v6636_v56 = vmax.f32 %v6188_v48, 0.0  ;;  %v6748_v57 = vmax.f32 %v6300_v49, 0.0  ;;  %v9049_v48 = vld [vmem:[%s10751_s7 + $0x340] sm:$0xff] }
 0x2fc   : > { %8764 = vmatmul.msk.bf16.gmra.mxu0 %vm2736_vm0, %v8991_v46  ;;  %8820 = vmatmul.msk.bf16.gmra.mxu1 %vm2736_vm0, %v9047_v47  ;;  %v6413_v4 = vmax.f32 %v5965_v60, 0.0  ;;  %v6525_v5 = vmax.f32 %v6077_v61, 0.0  ;;  %v8993_v47 = vld [vmem:[%s10751_s7 + $0x180] sm:$0xff] }
 0x2fd   : > { %v9920_v58 = vpack.c.bf16 %v6636_v56, %v6635_v54  ;;  %v10200_v59 = vpack.c.bf16 %v6748_v57, %v6747_v55  ;;  %8876 = vmatmul.msk.bf16.gmra.mxu2 %vm2736_vm0, %v9103_v52  ;;  %8932 = vmatmul.msk.bf16.gmra.mxu3 %vm2736_vm0, %v9159_v53  ;;  %v9105_v53 = vld [vmem:[%s10751_s7 + $0x500] sm:$0xff] }
 0x2fe   : > { %v9161_v54 = vld [vmem:[%s10751_s7 + $0x6c0] sm:$0xff] }
 0x2ff   : > { %10440 = vst [vmem:[%s10839_s18 + $0x4a8] sm:$0xff] %v9920_v58  }
 0x300   : > { %10496 = vst [vmem:[%s10839_s18 + $0x668] sm:$0xff] %v10200_v59   ;;  %v4168_v62 = vpop.f32.mrf.mxu2  ;;  %v4448_v63 = vpop.f32.mrf.mxu3 }
 0x301   : > { %v3610_v0 = vpop.f32.mrf.mxu0  ;;  %v3890_v1 = vpop.f32.mrf.mxu1  ;;  %v6189_v10 = vadd.f32 %v11363_v40, %v4168_v62  ;;  %v6301_v11 = vadd.f32 %v11363_v40, %v4448_v63 }
 0x302   : > { %v5966_v2 = vadd.f32 %v11363_v40, %v3610_v0  ;;  %v6078_v3 = vadd.f32 %v11363_v40, %v3890_v1 }
 0x303   : > { %v6637_v22 = vmax.f32 %v6189_v10, 0.0  ;;  %v6749_v23 = vmax.f32 %v6301_v11, 0.0 }
 0x304   : > { %v6414_v6 = vmax.f32 %v5966_v2, 0.0  ;;  %v6526_v7 = vmax.f32 %v6078_v3, 0.0 }
 0x306   : > { %v9365_v8 = vpack.c.bf16 %v6414_v6, %v6413_v4  ;;  %v9645_v9 = vpack.c.bf16 %v6526_v7, %v6525_v5 }
 0x308   : > { %10329 = vst [vmem:[%s10839_s18 + $0x130] sm:$0xff] %v9365_v8   ;;  %v4170_v12 = vpop.f32.mrf.mxu2  ;;  %v4450_v13 = vpop.f32.mrf.mxu3 }
 0x309   : > { %10385 = vst [vmem:[%s10839_s18 + $0x2f0] sm:$0xff] %v9645_v9   ;;  %v6190_v16 = vadd.f32 %v11363_v40, %v4170_v12  ;;  %v6302_v17 = vadd.f32 %v11363_v40, %v4450_v13  ;;  %v3613_v18 = vpop.f32.mrf.mxu0  ;;  %v3893_v19 = vpop.f32.mrf.mxu1  ;;  %v11628_v40 = vld [vmem:[%s11944_s2] ss:$0 sm:$0xff] }
 0x30a   : > { %v5967_v28 = vadd.f32 %v11628_v40, %v3613_v18  ;;  %v6079_v29 = vadd.f32 %v11628_v40, %v3893_v19 }
 0x30b   : > { %v6638_v24 = vmax.f32 %v6190_v16, 0.0  ;;  %v6750_v25 = vmax.f32 %v6302_v17, 0.0  ;;  %v9050_v16 = vld [vmem:[%s10751_s7 + $0x348] sm:$0xff] }
 0x30c   : > { %8765 = vmatmul.msk.bf16.gmra.mxu0 %vm2736_vm0, %v8992_v14  ;;  %8821 = vmatmul.msk.bf16.gmra.mxu1 %vm2736_vm0, %v9048_v15  ;;  %v6415_v36 = vmax.f32 %v5967_v28, 0.0  ;;  %v6527_v37 = vmax.f32 %v6079_v29, 0.0  ;;  %v8994_v15 = vld [vmem:[%s10751_s7 + $0x188] sm:$0xff] }
 0x30d   : > { %v9925_v26 = vpack.c.bf16 %v6638_v24, %v6637_v22  ;;  %v10205_v27 = vpack.c.bf16 %v6750_v25, %v6749_v23  ;;  %8877 = vmatmul.msk.bf16.gmra.mxu2 %vm2736_vm0, %v9104_v20  ;;  %8933 = vmatmul.msk.bf16.gmra.mxu3 %vm2736_vm0, %v9160_v21  ;;  %v9106_v21 = vld [vmem:[%s10751_s7 + $0x508] sm:$0xff] }
 0x30e   : > { %v9162_v22 = vld [vmem:[%s10751_s7 + $0x6c8] sm:$0xff] }
 0x30f   : > { %10441 = vst [vmem:[%s10839_s18 + $0x4b0] sm:$0xff] %v9925_v26  }
 0x310   : > { %10497 = vst [vmem:[%s10839_s18 + $0x670] sm:$0xff] %v10205_v27   ;;  %v4173_v30 = vpop.f32.mrf.mxu2  ;;  %v4453_v31 = vpop.f32.mrf.mxu3 }
 0x311   : > { %v3615_v32 = vpop.f32.mrf.mxu0  ;;  %v3895_v33 = vpop.f32.mrf.mxu1  ;;  %v6191_v43 = vadd.f32 %v11628_v40, %v4173_v30  ;;  %v6303_v44 = vadd.f32 %v11628_v40, %v4453_v31 }
 0x312   : > { %v5968_v34 = vadd.f32 %v11628_v40, %v3615_v32  ;;  %v6080_v35 = vadd.f32 %v11628_v40, %v3895_v33 }
 0x313   : > { %v6639_v55 = vmax.f32 %v6191_v43, 0.0  ;;  %v6751_v56 = vmax.f32 %v6303_v44, 0.0 }
 0x314   : > { %v6416_v38 = vmax.f32 %v5968_v34, 0.0  ;;  %v6528_v39 = vmax.f32 %v6080_v35, 0.0 }
 0x316   : > { %v9370_v41 = vpack.c.bf16 %v6416_v38, %v6415_v36  ;;  %v9650_v42 = vpack.c.bf16 %v6528_v39, %v6527_v37 }
 0x318   : > { %10330 = vst [vmem:[%s10839_s18 + $0x138] sm:$0xff] %v9370_v41   ;;  %v4175_v45 = vpop.f32.mrf.mxu2  ;;  %v4455_v46 = vpop.f32.mrf.mxu3 }
 0x319   : > { %10386 = vst [vmem:[%s10839_s18 + $0x2f8] sm:$0xff] %v9650_v42   ;;  %v6192_v49 = vadd.f32 %v11628_v40, %v4175_v45  ;;  %v6304_v50 = vadd.f32 %v11628_v40, %v4455_v46  ;;  %v3618_v51 = vpop.f32.mrf.mxu0  ;;  %v3898_v52 = vpop.f32.mrf.mxu1 }
 0x31a   : > { %v5969_v61 = vadd.f32 %v11628_v40, %v3618_v51  ;;  %v6081_v62 = vadd.f32 %v11628_v40, %v3898_v52 }
 0x31b   : > { %v6640_v57 = vmax.f32 %v6192_v49, 0.0  ;;  %v6752_v58 = vmax.f32 %v6304_v50, 0.0  ;;  %v9051_v49 = vld [vmem:[%s10751_s7 + $0x350] sm:$0xff] }
 0x31c   : > { %8766 = vmatmul.msk.bf16.gmra.mxu0 %vm2736_vm0, %v8993_v47  ;;  %8822 = vmatmul.msk.bf16.gmra.mxu1 %vm2736_vm0, %v9049_v48  ;;  %v6417_v5 = vmax.f32 %v5969_v61, 0.0  ;;  %v6529_v6 = vmax.f32 %v6081_v62, 0.0  ;;  %v8995_v48 = vld [vmem:[%s10751_s7 + $0x190] sm:$0xff] }
 0x31d   : > { %v9930_v59 = vpack.c.bf16 %v6640_v57, %v6639_v55  ;;  %v10210_v60 = vpack.c.bf16 %v6752_v58, %v6751_v56  ;;  %8878 = vmatmul.msk.bf16.gmra.mxu2 %vm2736_vm0, %v9105_v53  ;;  %8934 = vmatmul.msk.bf16.gmra.mxu3 %vm2736_vm0, %v9161_v54  ;;  %v9107_v54 = vld [vmem:[%s10751_s7 + $0x510] sm:$0xff] }
 0x31e   : > { %v9163_v55 = vld [vmem:[%s10751_s7 + $0x6d0] sm:$0xff] }
 0x31f   : > { %10442 = vst [vmem:[%s10839_s18 + $0x4b8] sm:$0xff] %v9930_v59  }
 0x320   : > { %10498 = vst [vmem:[%s10839_s18 + $0x678] sm:$0xff] %v10210_v60   ;;  %v4178_v63 = vpop.f32.mrf.mxu2  ;;  %v4458_v0 = vpop.f32.mrf.mxu3 }
 0x321   : > { %v3620_v1 = vpop.f32.mrf.mxu0  ;;  %v3900_v2 = vpop.f32.mrf.mxu1  ;;  %v6193_v11 = vadd.f32 %v11628_v40, %v4178_v63  ;;  %v6305_v12 = vadd.f32 %v11628_v40, %v4458_v0 }
 0x322   : > { %v5970_v3 = vadd.f32 %v11628_v40, %v3620_v1  ;;  %v6082_v4 = vadd.f32 %v11628_v40, %v3900_v2 }
 0x323   : > { %v6641_v23 = vmax.f32 %v6193_v11, 0.0  ;;  %v6753_v24 = vmax.f32 %v6305_v12, 0.0 }
 0x324   : > { %v6418_v7 = vmax.f32 %v5970_v3, 0.0  ;;  %v6530_v8 = vmax.f32 %v6082_v4, 0.0 }
 0x326   : > { %v9375_v9 = vpack.c.bf16 %v6418_v7, %v6417_v5  ;;  %v9655_v10 = vpack.c.bf16 %v6530_v8, %v6529_v6 }
 0x328   : > { %10331 = vst [vmem:[%s10839_s18 + $0x140] sm:$0xff] %v9375_v9   ;;  %v4180_v13 = vpop.f32.mrf.mxu2  ;;  %v4460_v14 = vpop.f32.mrf.mxu3 }
 0x329   : > { %10387 = vst [vmem:[%s10839_s18 + $0x300] sm:$0xff] %v9655_v10   ;;  %v6194_v17 = vadd.f32 %v11628_v40, %v4180_v13  ;;  %v6306_v18 = vadd.f32 %v11628_v40, %v4460_v14  ;;  %v3623_v19 = vpop.f32.mrf.mxu0  ;;  %v3903_v20 = vpop.f32.mrf.mxu1 }
 0x32a   : > { %v5971_v29 = vadd.f32 %v11628_v40, %v3623_v19  ;;  %v6083_v30 = vadd.f32 %v11628_v40, %v3903_v20 }
 0x32b   : > { %v6642_v25 = vmax.f32 %v6194_v17, 0.0  ;;  %v6754_v26 = vmax.f32 %v6306_v18, 0.0  ;;  %v9052_v17 = vld [vmem:[%s10751_s7 + $0x358] sm:$0xff] }
 0x32c   : > { %8767 = vmatmul.msk.bf16.gmra.mxu0 %vm2736_vm0, %v8994_v15  ;;  %8823 = vmatmul.msk.bf16.gmra.mxu1 %vm2736_vm0, %v9050_v16  ;;  %v6419_v37 = vmax.f32 %v5971_v29, 0.0  ;;  %v6531_v38 = vmax.f32 %v6083_v30, 0.0  ;;  %v8996_v16 = vld [vmem:[%s10751_s7 + $0x198] sm:$0xff] }
 0x32d   : > { %v9935_v27 = vpack.c.bf16 %v6642_v25, %v6641_v23  ;;  %v10215_v28 = vpack.c.bf16 %v6754_v26, %v6753_v24  ;;  %8879 = vmatmul.msk.bf16.gmra.mxu2 %vm2736_vm0, %v9106_v21  ;;  %8935 = vmatmul.msk.bf16.gmra.mxu3 %vm2736_vm0, %v9162_v22  ;;  %v9108_v22 = vld [vmem:[%s10751_s7 + $0x518] sm:$0xff] }
 0x32e   : > { %v9164_v23 = vld [vmem:[%s10751_s7 + $0x6d8] sm:$0xff] }
 0x32f   : > { %10443 = vst [vmem:[%s10839_s18 + $0x4c0] sm:$0xff] %v9935_v27  }
 0x330   : > { %10499 = vst [vmem:[%s10839_s18 + $0x680] sm:$0xff] %v10215_v28   ;;  %v4183_v31 = vpop.f32.mrf.mxu2  ;;  %v4463_v32 = vpop.f32.mrf.mxu3 }
 0x331   : > { %v3625_v33 = vpop.f32.mrf.mxu0  ;;  %v3905_v34 = vpop.f32.mrf.mxu1  ;;  %v6195_v44 = vadd.f32 %v11628_v40, %v4183_v31  ;;  %v6307_v45 = vadd.f32 %v11628_v40, %v4463_v32 }
 0x332   : > { %v5972_v35 = vadd.f32 %v11628_v40, %v3625_v33  ;;  %v6084_v36 = vadd.f32 %v11628_v40, %v3905_v34 }
 0x333   : > { %v6643_v56 = vmax.f32 %v6195_v44, 0.0  ;;  %v6755_v57 = vmax.f32 %v6307_v45, 0.0 }
 0x334   : > { %v6420_v39 = vmax.f32 %v5972_v35, 0.0  ;;  %v6532_v41 = vmax.f32 %v6084_v36, 0.0 }
 0x336   : > { %v9380_v42 = vpack.c.bf16 %v6420_v39, %v6419_v37  ;;  %v9660_v43 = vpack.c.bf16 %v6532_v41, %v6531_v38 }
 0x338   : > { %10332 = vst [vmem:[%s10839_s18 + $0x148] sm:$0xff] %v9380_v42   ;;  %v4185_v46 = vpop.f32.mrf.mxu2  ;;  %v4465_v47 = vpop.f32.mrf.mxu3 }
 0x339   : > { %10388 = vst [vmem:[%s10839_s18 + $0x308] sm:$0xff] %v9660_v43   ;;  %v6196_v50 = vadd.f32 %v11628_v40, %v4185_v46  ;;  %v6308_v51 = vadd.f32 %v11628_v40, %v4465_v47  ;;  %v3628_v52 = vpop.f32.mrf.mxu0  ;;  %v3908_v53 = vpop.f32.mrf.mxu1 }
 0x33a   : > { %v5973_v62 = vadd.f32 %v11628_v40, %v3628_v52  ;;  %v6085_v63 = vadd.f32 %v11628_v40, %v3908_v53 }
 0x33b   : > { %v6644_v58 = vmax.f32 %v6196_v50, 0.0  ;;  %v6756_v59 = vmax.f32 %v6308_v51, 0.0  ;;  %v9053_v50 = vld [vmem:[%s10751_s7 + $0x360] sm:$0xff] }
 0x33c   : > { %8768 = vmatmul.msk.bf16.gmra.mxu0 %vm2736_vm0, %v8995_v48  ;;  %8824 = vmatmul.msk.bf16.gmra.mxu1 %vm2736_vm0, %v9051_v49  ;;  %v6421_v6 = vmax.f32 %v5973_v62, 0.0  ;;  %v6533_v7 = vmax.f32 %v6085_v63, 0.0  ;;  %v8997_v49 = vld [vmem:[%s10751_s7 + $0x1a0] sm:$0xff] }
 0x33d   : > { %v9940_v60 = vpack.c.bf16 %v6644_v58, %v6643_v56  ;;  %v10220_v61 = vpack.c.bf16 %v6756_v59, %v6755_v57  ;;  %8880 = vmatmul.msk.bf16.gmra.mxu2 %vm2736_vm0, %v9107_v54  ;;  %8936 = vmatmul.msk.bf16.gmra.mxu3 %vm2736_vm0, %v9163_v55  ;;  %v9109_v55 = vld [vmem:[%s10751_s7 + $0x520] sm:$0xff] }
 0x33e   : > { %v9165_v56 = vld [vmem:[%s10751_s7 + $0x6e0] sm:$0xff] }
 0x33f   : > { %10444 = vst [vmem:[%s10839_s18 + $0x4c8] sm:$0xff] %v9940_v60  }
 0x340   : > { %10500 = vst [vmem:[%s10839_s18 + $0x688] sm:$0xff] %v10220_v61   ;;  %v4188_v0 = vpop.f32.mrf.mxu2  ;;  %v4468_v1 = vpop.f32.mrf.mxu3 }
 0x341   : > { %v3630_v2 = vpop.f32.mrf.mxu0  ;;  %v3910_v3 = vpop.f32.mrf.mxu1  ;;  %v6197_v12 = vadd.f32 %v11628_v40, %v4188_v0  ;;  %v6309_v13 = vadd.f32 %v11628_v40, %v4468_v1 }
 0x342   : > { %v5974_v4 = vadd.f32 %v11628_v40, %v3630_v2  ;;  %v6086_v5 = vadd.f32 %v11628_v40, %v3910_v3 }
 0x343   : > { %v6645_v24 = vmax.f32 %v6197_v12, 0.0  ;;  %v6757_v25 = vmax.f32 %v6309_v13, 0.0 }
 0x344   : > { %v6422_v8 = vmax.f32 %v5974_v4, 0.0  ;;  %v6534_v9 = vmax.f32 %v6086_v5, 0.0 }
 0x346   : > { %v9385_v10 = vpack.c.bf16 %v6422_v8, %v6421_v6  ;;  %v9665_v11 = vpack.c.bf16 %v6534_v9, %v6533_v7 }
 0x348   : > { %10333 = vst [vmem:[%s10839_s18 + $0x150] sm:$0xff] %v9385_v10   ;;  %v4190_v14 = vpop.f32.mrf.mxu2  ;;  %v4470_v15 = vpop.f32.mrf.mxu3 }
 0x349   : > { %10389 = vst [vmem:[%s10839_s18 + $0x310] sm:$0xff] %v9665_v11   ;;  %v6198_v18 = vadd.f32 %v11628_v40, %v4190_v14  ;;  %v6310_v19 = vadd.f32 %v11628_v40, %v4470_v15  ;;  %v3633_v20 = vpop.f32.mrf.mxu0  ;;  %v3913_v21 = vpop.f32.mrf.mxu1 }
 0x34a   : > { %v5975_v30 = vadd.f32 %v11628_v40, %v3633_v20  ;;  %v6087_v31 = vadd.f32 %v11628_v40, %v3913_v21 }
 0x34b   : > { %v6646_v26 = vmax.f32 %v6198_v18, 0.0  ;;  %v6758_v27 = vmax.f32 %v6310_v19, 0.0  ;;  %v9054_v18 = vld [vmem:[%s10751_s7 + $0x368] sm:$0xff] }
 0x34c   : > { %8769 = vmatmul.msk.bf16.gmra.mxu0 %vm2736_vm0, %v8996_v16  ;;  %8825 = vmatmul.msk.bf16.gmra.mxu1 %vm2736_vm0, %v9052_v17  ;;  %v6423_v38 = vmax.f32 %v5975_v30, 0.0  ;;  %v6535_v39 = vmax.f32 %v6087_v31, 0.0  ;;  %v8998_v17 = vld [vmem:[%s10751_s7 + $0x1a8] sm:$0xff] }
 0x34d   : > { %v9945_v28 = vpack.c.bf16 %v6646_v26, %v6645_v24  ;;  %v10225_v29 = vpack.c.bf16 %v6758_v27, %v6757_v25  ;;  %8881 = vmatmul.msk.bf16.gmra.mxu2 %vm2736_vm0, %v9108_v22  ;;  %8937 = vmatmul.msk.bf16.gmra.mxu3 %vm2736_vm0, %v9164_v23  ;;  %v9110_v23 = vld [vmem:[%s10751_s7 + $0x528] sm:$0xff] }
 0x34e   : > { %v9166_v24 = vld [vmem:[%s10751_s7 + $0x6e8] sm:$0xff] }
 0x34f   : > { %10445 = vst [vmem:[%s10839_s18 + $0x4d0] sm:$0xff] %v9945_v28  }
 0x350   : > { %10501 = vst [vmem:[%s10839_s18 + $0x690] sm:$0xff] %v10225_v29   ;;  %v4193_v32 = vpop.f32.mrf.mxu2  ;;  %v4473_v33 = vpop.f32.mrf.mxu3 }
 0x351   : > { %v3635_v34 = vpop.f32.mrf.mxu0  ;;  %v3915_v35 = vpop.f32.mrf.mxu1  ;;  %v6199_v45 = vadd.f32 %v11628_v40, %v4193_v32  ;;  %v6311_v46 = vadd.f32 %v11628_v40, %v4473_v33 }
 0x352   : > { %v5976_v36 = vadd.f32 %v11628_v40, %v3635_v34  ;;  %v6088_v37 = vadd.f32 %v11628_v40, %v3915_v35 }
 0x353   : > { %v6647_v57 = vmax.f32 %v6199_v45, 0.0  ;;  %v6759_v58 = vmax.f32 %v6311_v46, 0.0 }
 0x354   : > { %v6424_v41 = vmax.f32 %v5976_v36, 0.0  ;;  %v6536_v42 = vmax.f32 %v6088_v37, 0.0 }
 0x356   : > { %v9390_v43 = vpack.c.bf16 %v6424_v41, %v6423_v38  ;;  %v9670_v44 = vpack.c.bf16 %v6536_v42, %v6535_v39 }
 0x358   : > { %10334 = vst [vmem:[%s10839_s18 + $0x158] sm:$0xff] %v9390_v43   ;;  %v4195_v47 = vpop.f32.mrf.mxu2  ;;  %v4475_v48 = vpop.f32.mrf.mxu3 }
 0x359   : > { %10390 = vst [vmem:[%s10839_s18 + $0x318] sm:$0xff] %v9670_v44   ;;  %v6200_v51 = vadd.f32 %v11628_v40, %v4195_v47  ;;  %v6312_v52 = vadd.f32 %v11628_v40, %v4475_v48  ;;  %v3638_v53 = vpop.f32.mrf.mxu0  ;;  %v3918_v54 = vpop.f32.mrf.mxu1 }
 0x35a   : > { %v5977_v63 = vadd.f32 %v11628_v40, %v3638_v53  ;;  %v6089_v0 = vadd.f32 %v11628_v40, %v3918_v54 }
 0x35b   : > { %v6648_v59 = vmax.f32 %v6200_v51, 0.0  ;;  %v6760_v60 = vmax.f32 %v6312_v52, 0.0  ;;  %v9055_v51 = vld [vmem:[%s10751_s7 + $0x370] sm:$0xff] }
 0x35c   : > { %8770 = vmatmul.msk.bf16.gmra.mxu0 %vm2736_vm0, %v8997_v49  ;;  %8826 = vmatmul.msk.bf16.gmra.mxu1 %vm2736_vm0, %v9053_v50  ;;  %v6425_v7 = vmax.f32 %v5977_v63, 0.0  ;;  %v6537_v8 = vmax.f32 %v6089_v0, 0.0  ;;  %v8999_v50 = vld [vmem:[%s10751_s7 + $0x1b0] sm:$0xff] }
 0x35d   : > { %v9950_v61 = vpack.c.bf16 %v6648_v59, %v6647_v57  ;;  %v10230_v62 = vpack.c.bf16 %v6760_v60, %v6759_v58  ;;  %8882 = vmatmul.msk.bf16.gmra.mxu2 %vm2736_vm0, %v9109_v55  ;;  %8938 = vmatmul.msk.bf16.gmra.mxu3 %vm2736_vm0, %v9165_v56  ;;  %v9111_v56 = vld [vmem:[%s10751_s7 + $0x530] sm:$0xff] }
 0x35e   : > { %v9167_v57 = vld [vmem:[%s10751_s7 + $0x6f0] sm:$0xff] }
 0x35f   : > { %10446 = vst [vmem:[%s10839_s18 + $0x4d8] sm:$0xff] %v9950_v61  }
 0x360   : > { %10502 = vst [vmem:[%s10839_s18 + $0x698] sm:$0xff] %v10230_v62   ;;  %v4198_v1 = vpop.f32.mrf.mxu2  ;;  %v4478_v2 = vpop.f32.mrf.mxu3 }
 0x361   : > { %v3640_v3 = vpop.f32.mrf.mxu0  ;;  %v3920_v4 = vpop.f32.mrf.mxu1  ;;  %v6201_v13 = vadd.f32 %v11628_v40, %v4198_v1  ;;  %v6313_v14 = vadd.f32 %v11628_v40, %v4478_v2 }
 0x362   : > { %v5978_v5 = vadd.f32 %v11628_v40, %v3640_v3  ;;  %v6090_v6 = vadd.f32 %v11628_v40, %v3920_v4 }
 0x363   : > { %v6649_v25 = vmax.f32 %v6201_v13, 0.0  ;;  %v6761_v26 = vmax.f32 %v6313_v14, 0.0 }
 0x364   : > { %v6426_v9 = vmax.f32 %v5978_v5, 0.0  ;;  %v6538_v10 = vmax.f32 %v6090_v6, 0.0 }
 0x366   : > { %v9395_v11 = vpack.c.bf16 %v6426_v9, %v6425_v7  ;;  %v9675_v12 = vpack.c.bf16 %v6538_v10, %v6537_v8 }
 0x368   : > { %10335 = vst [vmem:[%s10839_s18 + $0x160] sm:$0xff] %v9395_v11   ;;  %v4200_v15 = vpop.f32.mrf.mxu2  ;;  %v4480_v16 = vpop.f32.mrf.mxu3 }
 0x369   : > { %10391 = vst [vmem:[%s10839_s18 + $0x320] sm:$0xff] %v9675_v12   ;;  %v6202_v19 = vadd.f32 %v11628_v40, %v4200_v15  ;;  %v6314_v20 = vadd.f32 %v11628_v40, %v4480_v16  ;;  %v3643_v21 = vpop.f32.mrf.mxu0  ;;  %v3923_v22 = vpop.f32.mrf.mxu1 }
 0x36a   : > { %v5979_v31 = vadd.f32 %v11628_v40, %v3643_v21  ;;  %v6091_v32 = vadd.f32 %v11628_v40, %v3923_v22 }
 0x36b   : > { %v6650_v27 = vmax.f32 %v6202_v19, 0.0  ;;  %v6762_v28 = vmax.f32 %v6314_v20, 0.0  ;;  %v9056_v19 = vld [vmem:[%s10751_s7 + $0x378] sm:$0xff] }
 0x36c   : > { %8771 = vmatmul.msk.bf16.gmra.mxu0 %vm2736_vm0, %v8998_v17  ;;  %8827 = vmatmul.msk.bf16.gmra.mxu1 %vm2736_vm0, %v9054_v18  ;;  %v6427_v39 = vmax.f32 %v5979_v31, 0.0  ;;  %v6539_v41 = vmax.f32 %v6091_v32, 0.0  ;;  %v9000_v18 = vld [vmem:[%s10751_s7 + $0x1b8] sm:$0xff] }
 0x36d   : > { %v9955_v29 = vpack.c.bf16 %v6650_v27, %v6649_v25  ;;  %v10235_v30 = vpack.c.bf16 %v6762_v28, %v6761_v26  ;;  %8883 = vmatmul.msk.bf16.gmra.mxu2 %vm2736_vm0, %v9110_v23  ;;  %8939 = vmatmul.msk.bf16.gmra.mxu3 %vm2736_vm0, %v9166_v24  ;;  %v9112_v24 = vld [vmem:[%s10751_s7 + $0x538] sm:$0xff] }
 0x36e   : > { %v9168_v25 = vld [vmem:[%s10751_s7 + $0x6f8] sm:$0xff]  ;;  %s7694_s7 = scalar_lea.hbm %s11945_s3, %s9171_s4 }
 0x36f   : > { %10447 = vst [vmem:[%s10839_s18 + $0x4e0] sm:$0xff] %v9955_v29   ;;  %s7697_s8 = sshll.u32 %s7694_s7, 4  ;;  %s7698_s8 = int_to_ptr.hbm [resolvable:$true] %s7697_s8 }
 0x370   : > { %10503 = vst [vmem:[%s10839_s18 + $0x6a0] sm:$0xff] %v10235_v30   ;;  %v4203_v33 = vpop.f32.mrf.mxu2  ;;  %v4483_v34 = vpop.f32.mrf.mxu3  ;;  %s10598_s11 = sshra.s32 %s7698_s8, 4  ;;  %s10599_s11 = int_to_ptr.hbm [resolvable:$true] %s10598_s11 }
 0x371   : > { %v3645_v35 = vpop.f32.mrf.mxu0  ;;  %v3925_v36 = vpop.f32.mrf.mxu1  ;;  %v6203_v46 = vadd.f32 %v11628_v40, %v4203_v33  ;;  %v6315_v47 = vadd.f32 %v11628_v40, %v4483_v34  ;;  %s10600_s19 = scalar_lea.hbm %s10599_s11, 1792  ;;  %p10605_p1 = scmp.lt.s32.totalorder %s10599_s11, %s11945_s3 }
 0x372   : > { %v5980_v37 = vadd.f32 %v11628_v40, %v3645_v35  ;;  %v6092_v38 = vadd.f32 %v11628_v40, %v3925_v36  ;;  %p10601_p12 = scmp.ne.s32.totalorder %s10599_s11, %s10600_s19  ;;  %p10606_p2 = scmp.lt.s32.totalorder %s10604_s26, %s10600_s19 }
 0x373   : > { %v6651_v58 = vmax.f32 %v6203_v46, 0.0  ;;  %v6763_v59 = vmax.f32 %v6315_v47, 0.0 }
 0x374   : > { %v6428_v42 = vmax.f32 %v5980_v37, 0.0  ;;  %v6540_v43 = vmax.f32 %v6092_v38, 0.0  ;;  %p10602_p13 = pnand %p10601_p12, %p10726_p4  ;;  %p10607_p3 = por %p10606_p2, %p10605_p1 }
 0x376   : > { %v9400_v44 = vpack.c.bf16 %v6428_v42, %v6427_v39  ;;  %v9680_v45 = vpack.c.bf16 %v6540_v43, %v6539_v41  ;;  %p10603_p0 = pneg %p10602_p13 }
 0x378   : > { %10336 = vst [vmem:[%s10839_s18 + $0x168] sm:$0xff] %v9400_v44   ;;  %v4205_v48 = vpop.f32.mrf.mxu2  ;;  %v4485_v49 = vpop.f32.mrf.mxu3  ;;  %p10608_p5 = pnand %p10607_p3, %p10603_p0 }
 0x379   : > { %10392 = vst [vmem:[%s10839_s18 + $0x328] sm:$0xff] %v9680_v45   ;;  %v6204_v52 = vadd.f32 %v11628_v40, %v4205_v48  ;;  %v6316_v53 = vadd.f32 %v11628_v40, %v4485_v49  ;;  %v3648_v54 = vpop.f32.mrf.mxu0  ;;  %v3928_v55 = vpop.f32.mrf.mxu1 }
 0x37a   : > { %v5981_v0 = vadd.f32 %v11628_v40, %v3648_v54  ;;  %v6093_v1 = vadd.f32 %v11628_v40, %v3928_v55 }
 0x37b   : > { %v6652_v60 = vmax.f32 %v6204_v52, 0.0  ;;  %v6764_v61 = vmax.f32 %v6316_v53, 0.0 }
 0x37c   : > { %8772 = vmatmul.msk.bf16.gmra.mxu0 %vm2736_vm0, %v8999_v50  ;;  %8828 = vmatmul.msk.bf16.gmra.mxu1 %vm2736_vm0, %v9055_v51  ;;  %v6429_v8 = vmax.f32 %v5981_v0, 0.0  ;;  %v6541_v9 = vmax.f32 %v6093_v1, 0.0 }
 0x37d   : > { %v9960_v62 = vpack.c.bf16 %v6652_v60, %v6651_v58  ;;  %v10240_v63 = vpack.c.bf16 %v6764_v61, %v6763_v59  ;;  %8884 = vmatmul.msk.bf16.gmra.mxu2 %vm2736_vm0, %v9111_v56  ;;  %8940 = vmatmul.msk.bf16.gmra.mxu3 %vm2736_vm0, %v9167_v57 }
 0x37f   : > { %10448 = vst [vmem:[%s10839_s18 + $0x4e8] sm:$0xff] %v9960_v62  }
 0x380   : > { %10504 = vst [vmem:[%s10839_s18 + $0x6a8] sm:$0xff] %v10240_v63   ;;  %v4208_v2 = vpop.f32.mrf.mxu2  ;;  %v4488_v3 = vpop.f32.mrf.mxu3 }
 0x381   : > { %v3650_v4 = vpop.f32.mrf.mxu0  ;;  %v3930_v5 = vpop.f32.mrf.mxu1  ;;  %v6205_v14 = vadd.f32 %v11628_v40, %v4208_v2  ;;  %v6317_v15 = vadd.f32 %v11628_v40, %v4488_v3 }
 0x382   : > { %v5982_v6 = vadd.f32 %v11628_v40, %v3650_v4  ;;  %v6094_v7 = vadd.f32 %v11628_v40, %v3930_v5 }
 0x383   : > { %v6653_v26 = vmax.f32 %v6205_v14, 0.0  ;;  %v6765_v27 = vmax.f32 %v6317_v15, 0.0 }
 0x384   : > { %v6430_v10 = vmax.f32 %v5982_v6, 0.0  ;;  %v6542_v11 = vmax.f32 %v6094_v7, 0.0 }
 0x386   : > { %v9405_v12 = vpack.c.bf16 %v6430_v10, %v6429_v8  ;;  %v9685_v13 = vpack.c.bf16 %v6542_v11, %v6541_v9 }
 0x388   : > { %10337 = vst [vmem:[%s10839_s18 + $0x170] sm:$0xff] %v9405_v12   ;;  %v4210_v16 = vpop.f32.mrf.mxu2  ;;  %v4490_v17 = vpop.f32.mrf.mxu3 }
 0x389   : > { %10393 = vst [vmem:[%s10839_s18 + $0x330] sm:$0xff] %v9685_v13   ;;  %v6206_v20 = vadd.f32 %v11628_v40, %v4210_v16  ;;  %v6318_v21 = vadd.f32 %v11628_v40, %v4490_v17  ;;  %v3653_v22 = vpop.f32.mrf.mxu0  ;;  %v3933_v23 = vpop.f32.mrf.mxu1 }
 0x38a   : > { %v5983_v32 = vadd.f32 %v11628_v40, %v3653_v22  ;;  %v6095_v33 = vadd.f32 %v11628_v40, %v3933_v23 }
 0x38b   : > { %v6654_v28 = vmax.f32 %v6206_v20, 0.0  ;;  %v6766_v29 = vmax.f32 %v6318_v21, 0.0 }
 0x38c   : > { %8773 = vmatmul.msk.bf16.gmra.mxu0 %vm2736_vm0, %v9000_v18  ;;  %8829 = vmatmul.msk.bf16.gmra.mxu1 %vm2736_vm0, %v9056_v19  ;;  %v6431_v41 = vmax.f32 %v5983_v32, 0.0  ;;  %v6543_v42 = vmax.f32 %v6095_v33, 0.0 }
 0x38d   : > { %v9965_v30 = vpack.c.bf16 %v6654_v28, %v6653_v26  ;;  %v10245_v31 = vpack.c.bf16 %v6766_v29, %v6765_v27  ;;  %8885 = vmatmul.msk.bf16.gmra.mxu2 %vm2736_vm0, %v9112_v24  ;;  %8941 = vmatmul.msk.bf16.gmra.mxu3 %vm2736_vm0, %v9168_v25 }
 0x38f   : > { %10449 = vst [vmem:[%s10839_s18 + $0x4f0] sm:$0xff] %v9965_v30  }
 0x390   : > { %10505 = vst [vmem:[%s10839_s18 + $0x6b0] sm:$0xff] %v10245_v31   ;;  %v4213_v34 = vpop.f32.mrf.mxu2  ;;  %v4493_v35 = vpop.f32.mrf.mxu3 }
 0x391   : > { %v3655_v36 = vpop.f32.mrf.mxu0  ;;  %v3935_v37 = vpop.f32.mrf.mxu1  ;;  %v6207_v47 = vadd.f32 %v11628_v40, %v4213_v34  ;;  %v6319_v48 = vadd.f32 %v11628_v40, %v4493_v35 }
 0x392   : > { %v5984_v38 = vadd.f32 %v11628_v40, %v3655_v36  ;;  %v6096_v39 = vadd.f32 %v11628_v40, %v3935_v37 }
 0x393   : > { %v6655_v55 = vmax.f32 %v6207_v47, 0.0  ;;  %v6767_v56 = vmax.f32 %v6319_v48, 0.0 }
 0x394   : > { %v6432_v43 = vmax.f32 %v5984_v38, 0.0  ;;  %v6544_v44 = vmax.f32 %v6096_v39, 0.0 }
 0x396   : > { %v9410_v45 = vpack.c.bf16 %v6432_v43, %v6431_v41  ;;  %v9690_v46 = vpack.c.bf16 %v6544_v44, %v6543_v42 }
 0x398   : > { %10338 = vst [vmem:[%s10839_s18 + $0x178] sm:$0xff] %v9410_v45   ;;  %v4215_v49 = vpop.f32.mrf.mxu2  ;;  %v4495_v50 = vpop.f32.mrf.mxu3 }
 0x399   : > { %10394 = vst [vmem:[%s10839_s18 + $0x338] sm:$0xff] %v9690_v46   ;;  %v6208_v51 = vadd.f32 %v11628_v40, %v4215_v49  ;;  %v6320_v52 = vadd.f32 %v11628_v40, %v4495_v50  ;;  %v3658_v53 = vpop.f32.mrf.mxu0  ;;  %v3938_v54 = vpop.f32.mrf.mxu1 }
 0x39a   : > { %v5985_v61 = vadd.f32 %v11628_v40, %v3658_v53  ;;  %v6097_v62 = vadd.f32 %v11628_v40, %v3938_v54 }
 0x39b   : > { %v6656_v57 = vmax.f32 %v6208_v51, 0.0  ;;  %v6768_v58 = vmax.f32 %v6320_v52, 0.0 }
 0x39c   : > { %v6433_v5 = vmax.f32 %v5985_v61, 0.0  ;;  %v6545_v6 = vmax.f32 %v6097_v62, 0.0 }
 0x39d   : > { %v9970_v59 = vpack.c.bf16 %v6656_v57, %v6655_v55  ;;  %v10250_v60 = vpack.c.bf16 %v6768_v58, %v6767_v56 }
 0x39f   : > { %10450 = vst [vmem:[%s10839_s18 + $0x4f8] sm:$0xff] %v9970_v59  }
 0x3a0   : > { %10506 = vst [vmem:[%s10839_s18 + $0x6b8] sm:$0xff] %v10250_v60   ;;  %v4218_v63 = vpop.f32.mrf.mxu2  ;;  %v4498_v0 = vpop.f32.mrf.mxu3 }
 0x3a1   : > { %v3660_v1 = vpop.f32.mrf.mxu0  ;;  %v3940_v2 = vpop.f32.mrf.mxu1  ;;  %v6209_v11 = vadd.f32 %v11628_v40, %v4218_v63  ;;  %v6321_v12 = vadd.f32 %v11628_v40, %v4498_v0 }
 0x3a2   : > { %v5986_v3 = vadd.f32 %v11628_v40, %v3660_v1  ;;  %v6098_v4 = vadd.f32 %v11628_v40, %v3940_v2 }
 0x3a3   : > { %v6657_v19 = vmax.f32 %v6209_v11, 0.0  ;;  %v6769_v20 = vmax.f32 %v6321_v12, 0.0 }
 0x3a4   : > { %v6434_v7 = vmax.f32 %v5986_v3, 0.0  ;;  %v6546_v8 = vmax.f32 %v6098_v4, 0.0 }
 0x3a6   : > { %v9415_v9 = vpack.c.bf16 %v6434_v7, %v6433_v5  ;;  %v9695_v10 = vpack.c.bf16 %v6546_v8, %v6545_v6 }
 0x3a8   : > { %10339 = vst [vmem:[%s10839_s18 + $0x180] sm:$0xff] %v9415_v9   ;;  %v4220_v13 = vpop.f32.mrf.mxu2  ;;  %v4500_v14 = vpop.f32.mrf.mxu3 }
 0x3a9   : > { %10395 = vst [vmem:[%s10839_s18 + $0x340] sm:$0xff] %v9695_v10   ;;  %v6210_v15 = vadd.f32 %v11628_v40, %v4220_v13  ;;  %v6322_v16 = vadd.f32 %v11628_v40, %v4500_v14  ;;  %v3663_v17 = vpop.f32.mrf.mxu0  ;;  %v3943_v18 = vpop.f32.mrf.mxu1 }
 0x3aa   : > { %v5987_v25 = vadd.f32 %v11628_v40, %v3663_v17  ;;  %v6099_v26 = vadd.f32 %v11628_v40, %v3943_v18 }
 0x3ab   : > { %v6658_v21 = vmax.f32 %v6210_v15, 0.0  ;;  %v6770_v22 = vmax.f32 %v6322_v16, 0.0 }
 0x3ac   : > { %v6435_v33 = vmax.f32 %v5987_v25, 0.0  ;;  %v6547_v34 = vmax.f32 %v6099_v26, 0.0 }
 0x3ad   : > { %v9975_v23 = vpack.c.bf16 %v6658_v21, %v6657_v19  ;;  %v10255_v24 = vpack.c.bf16 %v6770_v22, %v6769_v20 }
 0x3af   : > { %10451 = vst [vmem:[%s10839_s18 + $0x500] sm:$0xff] %v9975_v23  }
 0x3b0   : > { %10507 = vst [vmem:[%s10839_s18 + $0x6c0] sm:$0xff] %v10255_v24   ;;  %v4223_v27 = vpop.f32.mrf.mxu2  ;;  %v4503_v28 = vpop.f32.mrf.mxu3 }
 0x3b1   : > { %v3665_v29 = vpop.f32.mrf.mxu0  ;;  %v3945_v30 = vpop.f32.mrf.mxu1  ;;  %v6211_v39 = vadd.f32 %v11628_v40, %v4223_v27  ;;  %v6323_v41 = vadd.f32 %v11628_v40, %v4503_v28 }
 0x3b2   : > { %v5988_v31 = vadd.f32 %v11628_v40, %v3665_v29  ;;  %v6100_v32 = vadd.f32 %v11628_v40, %v3945_v30 }
 0x3b3   : > { %v6659_v48 = vmax.f32 %v6211_v39, 0.0  ;;  %v6771_v49 = vmax.f32 %v6323_v41, 0.0 }
 0x3b4   : > { %v6436_v35 = vmax.f32 %v5988_v31, 0.0  ;;  %v6548_v36 = vmax.f32 %v6100_v32, 0.0 }
 0x3b6   : > { %v9420_v37 = vpack.c.bf16 %v6436_v35, %v6435_v33  ;;  %v9700_v38 = vpack.c.bf16 %v6548_v36, %v6547_v34 }
 0x3b8   : > { %10340 = vst [vmem:[%s10839_s18 + $0x188] sm:$0xff] %v9420_v37   ;;  %v4225_v42 = vpop.f32.mrf.mxu2  ;;  %v4505_v43 = vpop.f32.mrf.mxu3 }
 0x3b9   : > { %10396 = vst [vmem:[%s10839_s18 + $0x348] sm:$0xff] %v9700_v38   ;;  %v6212_v44 = vadd.f32 %v11628_v40, %v4225_v42  ;;  %v6324_v45 = vadd.f32 %v11628_v40, %v4505_v43  ;;  %v3668_v46 = vpop.f32.mrf.mxu0  ;;  %v3948_v47 = vpop.f32.mrf.mxu1 }
 0x3ba   : > { %v5989_v54 = vadd.f32 %v11628_v40, %v3668_v46  ;;  %v6101_v55 = vadd.f32 %v11628_v40, %v3948_v47 }
 0x3bb   : > { %v6660_v50 = vmax.f32 %v6212_v44, 0.0  ;;  %v6772_v51 = vmax.f32 %v6324_v45, 0.0 }
 0x3bc   : > { %v6437_v62 = vmax.f32 %v5989_v54, 0.0  ;;  %v6549_v63 = vmax.f32 %v6101_v55, 0.0 }
 0x3bd   : > { %v9980_v52 = vpack.c.bf16 %v6660_v50, %v6659_v48  ;;  %v10260_v53 = vpack.c.bf16 %v6772_v51, %v6771_v49 }
 0x3bf   : > { %10452 = vst [vmem:[%s10839_s18 + $0x508] sm:$0xff] %v9980_v52  }
 0x3c0   : > { %10508 = vst [vmem:[%s10839_s18 + $0x6c8] sm:$0xff] %v10260_v53   ;;  %v4228_v56 = vpop.f32.mrf.mxu2  ;;  %v4508_v57 = vpop.f32.mrf.mxu3 }
 0x3c1   : > { %v3670_v58 = vpop.f32.mrf.mxu0  ;;  %v3950_v59 = vpop.f32.mrf.mxu1  ;;  %v6213_v4 = vadd.f32 %v11628_v40, %v4228_v56  ;;  %v6325_v5 = vadd.f32 %v11628_v40, %v4508_v57 }
 0x3c2   : > { %v5990_v60 = vadd.f32 %v11628_v40, %v3670_v58  ;;  %v6102_v61 = vadd.f32 %v11628_v40, %v3950_v59 }
 0x3c3   : > { %v6661_v12 = vmax.f32 %v6213_v4, 0.0  ;;  %v6773_v13 = vmax.f32 %v6325_v5, 0.0 }
 0x3c4   : > { %v6438_v0 = vmax.f32 %v5990_v60, 0.0  ;;  %v6550_v1 = vmax.f32 %v6102_v61, 0.0 }
 0x3c6   : > { %v9425_v2 = vpack.c.bf16 %v6438_v0, %v6437_v62  ;;  %v9705_v3 = vpack.c.bf16 %v6550_v1, %v6549_v63 }
 0x3c8   : > { %10341 = vst [vmem:[%s10839_s18 + $0x190] sm:$0xff] %v9425_v2   ;;  %v4230_v6 = vpop.f32.mrf.mxu2  ;;  %v4510_v7 = vpop.f32.mrf.mxu3 }
 0x3c9   : > { %10397 = vst [vmem:[%s10839_s18 + $0x350] sm:$0xff] %v9705_v3   ;;  %v6214_v8 = vadd.f32 %v11628_v40, %v4230_v6  ;;  %v6326_v9 = vadd.f32 %v11628_v40, %v4510_v7  ;;  %v3673_v10 = vpop.f32.mrf.mxu0  ;;  %v3953_v11 = vpop.f32.mrf.mxu1 }
 0x3ca   : > { %v5991_v18 = vadd.f32 %v11628_v40, %v3673_v10  ;;  %v6103_v19 = vadd.f32 %v11628_v40, %v3953_v11  ;;  %v11865_v11 = vld [vmem:[%s11944_s2] ss:$0 sm:$0xff] }
 0x3cb   : > { %v6662_v14 = vmax.f32 %v6214_v8, 0.0  ;;  %v6774_v15 = vmax.f32 %v6326_v9, 0.0 }
 0x3cc   : > { %v6439_v26 = vmax.f32 %v5991_v18, 0.0  ;;  %v6551_v27 = vmax.f32 %v6103_v19, 0.0 }
 0x3cd   : > { %v9985_v16 = vpack.c.bf16 %v6662_v14, %v6661_v12  ;;  %v10265_v17 = vpack.c.bf16 %v6774_v15, %v6773_v13 }
 0x3cf   : > { %10453 = vst [vmem:[%s10839_s18 + $0x510] sm:$0xff] %v9985_v16  }
 0x3d0   : > { %10509 = vst [vmem:[%s10839_s18 + $0x6d0] sm:$0xff] %v10265_v17   ;;  %v4233_v20 = vpop.f32.mrf.mxu2  ;;  %v4513_v21 = vpop.f32.mrf.mxu3 }
 0x3d1   : > { %v3675_v22 = vpop.f32.mrf.mxu0  ;;  %v3955_v23 = vpop.f32.mrf.mxu1  ;;  %v6215_v32 = vadd.f32 %v11628_v40, %v4233_v20  ;;  %v6327_v33 = vadd.f32 %v11628_v40, %v4513_v21 }
 0x3d2   : > { %v5992_v24 = vadd.f32 %v11628_v40, %v3675_v22  ;;  %v6104_v25 = vadd.f32 %v11628_v40, %v3955_v23 }
 0x3d3   : > { %v6663_v41 = vmax.f32 %v6215_v32, 0.0  ;;  %v6775_v42 = vmax.f32 %v6327_v33, 0.0 }
 0x3d4   : > { %v6440_v28 = vmax.f32 %v5992_v24, 0.0  ;;  %v6552_v29 = vmax.f32 %v6104_v25, 0.0 }
 0x3d6   : > { %v9430_v30 = vpack.c.bf16 %v6440_v28, %v6439_v26  ;;  %v9710_v31 = vpack.c.bf16 %v6552_v29, %v6551_v27 }
 0x3d8   : > { %10342 = vst [vmem:[%s10839_s18 + $0x198] sm:$0xff] %v9430_v30   ;;  %v4235_v34 = vpop.f32.mrf.mxu2  ;;  %v4515_v35 = vpop.f32.mrf.mxu3 }
 0x3d9   : > { %10398 = vst [vmem:[%s10839_s18 + $0x358] sm:$0xff] %v9710_v31   ;;  %v6216_v36 = vadd.f32 %v11628_v40, %v4235_v34  ;;  %v6328_v37 = vadd.f32 %v11628_v40, %v4515_v35  ;;  %v3678_v38 = vpop.f32.mrf.mxu0  ;;  %v3958_v39 = vpop.f32.mrf.mxu1 }
 0x3da   : > { %v5993_v47 = vadd.f32 %v11628_v40, %v3678_v38  ;;  %v6105_v48 = vadd.f32 %v11628_v40, %v3958_v39 }
 0x3db   : > { %v6664_v43 = vmax.f32 %v6216_v36, 0.0  ;;  %v6776_v44 = vmax.f32 %v6328_v37, 0.0 }
 0x3dc   : > { %v6441_v55 = vmax.f32 %v5993_v47, 0.0  ;;  %v6553_v56 = vmax.f32 %v6105_v48, 0.0 }
 0x3dd   : > { %v9990_v45 = vpack.c.bf16 %v6664_v43, %v6663_v41  ;;  %v10270_v46 = vpack.c.bf16 %v6776_v44, %v6775_v42 }
 0x3df   : > { %10454 = vst [vmem:[%s10839_s18 + $0x518] sm:$0xff] %v9990_v45  }
 0x3e0   : > { %10510 = vst [vmem:[%s10839_s18 + $0x6d8] sm:$0xff] %v10270_v46   ;;  %v4238_v49 = vpop.f32.mrf.mxu2  ;;  %v4518_v50 = vpop.f32.mrf.mxu3 }
 0x3e1   : > { %v3680_v51 = vpop.f32.mrf.mxu0  ;;  %v3960_v52 = vpop.f32.mrf.mxu1  ;;  %v6217_v61 = vadd.f32 %v11628_v40, %v4238_v49  ;;  %v6329_v62 = vadd.f32 %v11628_v40, %v4518_v50 }
 0x3e2   : > { %v5994_v53 = vadd.f32 %v11628_v40, %v3680_v51  ;;  %v6106_v54 = vadd.f32 %v11628_v40, %v3960_v52 }
 0x3e3   : > { %v6665_v5 = vmax.f32 %v6217_v61, 0.0  ;;  %v6777_v6 = vmax.f32 %v6329_v62, 0.0 }
 0x3e4   : > { %v6442_v57 = vmax.f32 %v5994_v53, 0.0  ;;  %v6554_v58 = vmax.f32 %v6106_v54, 0.0 }
 0x3e6   : > { %v9435_v59 = vpack.c.bf16 %v6442_v57, %v6441_v55  ;;  %v9715_v60 = vpack.c.bf16 %v6554_v58, %v6553_v56 }
 0x3e8   : > { %10343 = vst [vmem:[%s10839_s18 + $0x1a0] sm:$0xff] %v9435_v59   ;;  %v4240_v63 = vpop.f32.mrf.mxu2  ;;  %v4520_v0 = vpop.f32.mrf.mxu3 }
 0x3e9   : > { %10399 = vst [vmem:[%s10839_s18 + $0x360] sm:$0xff] %v9715_v60   ;;  %v6218_v1 = vadd.f32 %v11628_v40, %v4240_v63  ;;  %v6330_v2 = vadd.f32 %v11628_v40, %v4520_v0  ;;  %v3683_v3 = vpop.f32.mrf.mxu0  ;;  %v3963_v4 = vpop.f32.mrf.mxu1 }
 0x3ea   : > { %v5995_v12 = vadd.f32 %v11865_v11, %v3683_v3  ;;  %v6107_v40 = vadd.f32 %v11865_v11, %v3963_v4 }
 0x3eb   : > { %v6666_v7 = vmax.f32 %v6218_v1, 0.0  ;;  %v6778_v8 = vmax.f32 %v6330_v2, 0.0 }
 0x3ec   : > { %v6443_v19 = vmax.f32 %v5995_v12, 0.0  ;;  %v6555_v20 = vmax.f32 %v6107_v40, 0.0 }
 0x3ed   : > { %v9995_v9 = vpack.c.bf16 %v6666_v7, %v6665_v5  ;;  %v10275_v10 = vpack.c.bf16 %v6778_v8, %v6777_v6 }
 0x3ef   : > { %10455 = vst [vmem:[%s10839_s18 + $0x520] sm:$0xff] %v9995_v9  }
 0x3f0   : > { %10511 = vst [vmem:[%s10839_s18 + $0x6e0] sm:$0xff] %v10275_v10   ;;  %v4243_v13 = vpop.f32.mrf.mxu2  ;;  %v4523_v14 = vpop.f32.mrf.mxu3 }
 0x3f1   : > { %v3685_v15 = vpop.f32.mrf.mxu0  ;;  %v3965_v16 = vpop.f32.mrf.mxu1  ;;  %v6219_v25 = vadd.f32 %v11865_v11, %v4243_v13  ;;  %v6331_v26 = vadd.f32 %v11865_v11, %v4523_v14 }
 0x3f2   : > { %v5996_v17 = vadd.f32 %v11865_v11, %v3685_v15  ;;  %v6108_v18 = vadd.f32 %v11865_v11, %v3965_v16 }
 0x3f3   : > { %v6667_v33 = vmax.f32 %v6219_v25, 0.0  ;;  %v6779_v34 = vmax.f32 %v6331_v26, 0.0 }
 0x3f4   : > { %v6444_v21 = vmax.f32 %v5996_v17, 0.0  ;;  %v6556_v22 = vmax.f32 %v6108_v18, 0.0 }
 0x3f6   : > { %v9440_v23 = vpack.c.bf16 %v6444_v21, %v6443_v19  ;;  %v9720_v24 = vpack.c.bf16 %v6556_v22, %v6555_v20 }
 0x3f8   : > { %10344 = vst [vmem:[%s10839_s18 + $0x1a8] sm:$0xff] %v9440_v23   ;;  %v4245_v27 = vpop.f32.mrf.mxu2  ;;  %v4525_v28 = vpop.f32.mrf.mxu3 }
 0x3f9   : > { %10400 = vst [vmem:[%s10839_s18 + $0x368] sm:$0xff] %v9720_v24   ;;  %v6220_v29 = vadd.f32 %v11865_v11, %v4245_v27  ;;  %v6332_v30 = vadd.f32 %v11865_v11, %v4525_v28  ;;  %v3688_v31 = vpop.f32.mrf.mxu0  ;;  %v3968_v32 = vpop.f32.mrf.mxu1 }
 0x3fa   : > { %v5997_v39 = vadd.f32 %v11865_v11, %v3688_v31  ;;  %v6109_v41 = vadd.f32 %v11865_v11, %v3968_v32 }
 0x3fb   : > { %v6668_v35 = vmax.f32 %v6220_v29, 0.0  ;;  %v6780_v36 = vmax.f32 %v6332_v30, 0.0 }
 0x3fc   : > { %v6445_v48 = vmax.f32 %v5997_v39, 0.0  ;;  %v6557_v49 = vmax.f32 %v6109_v41, 0.0 }
 0x3fd   : > { %v10000_v37 = vpack.c.bf16 %v6668_v35, %v6667_v33  ;;  %v10280_v38 = vpack.c.bf16 %v6780_v36, %v6779_v34 }
 0x3ff   : > { %10456 = vst [vmem:[%s10839_s18 + $0x528] sm:$0xff] %v10000_v37  }
 0x400   : > { %10512 = vst [vmem:[%s10839_s18 + $0x6e8] sm:$0xff] %v10280_v38   ;;  %v4248_v42 = vpop.f32.mrf.mxu2  ;;  %v4528_v43 = vpop.f32.mrf.mxu3 }
 0x401   : > { %v3690_v44 = vpop.f32.mrf.mxu0  ;;  %v3970_v45 = vpop.f32.mrf.mxu1  ;;  %v6221_v54 = vadd.f32 %v11865_v11, %v4248_v42  ;;  %v6333_v55 = vadd.f32 %v11865_v11, %v4528_v43 }
 0x402   : > { %v5998_v46 = vadd.f32 %v11865_v11, %v3690_v44  ;;  %v6110_v47 = vadd.f32 %v11865_v11, %v3970_v45 }
 0x403   : > { %v6669_v62 = vmax.f32 %v6221_v54, 0.0  ;;  %v6781_v63 = vmax.f32 %v6333_v55, 0.0 }
 0x404   : > { %v6446_v50 = vmax.f32 %v5998_v46, 0.0  ;;  %v6558_v51 = vmax.f32 %v6110_v47, 0.0 }
 0x406   : > { %v9445_v52 = vpack.c.bf16 %v6446_v50, %v6445_v48  ;;  %v9725_v53 = vpack.c.bf16 %v6558_v51, %v6557_v49 }
 0x408   : > { %10345 = vst [vmem:[%s10839_s18 + $0x1b0] sm:$0xff] %v9445_v52   ;;  %v4250_v56 = vpop.f32.mrf.mxu2  ;;  %v4530_v57 = vpop.f32.mrf.mxu3 }
 0x409   : > { %10401 = vst [vmem:[%s10839_s18 + $0x370] sm:$0xff] %v9725_v53   ;;  %v6222_v58 = vadd.f32 %v11865_v11, %v4250_v56  ;;  %v6334_v59 = vadd.f32 %v11865_v11, %v4530_v57  ;;  %v3693_v60 = vpop.f32.mrf.mxu0  ;;  %v3973_v61 = vpop.f32.mrf.mxu1 }
 0x40a   : > { %v5999_v4 = vadd.f32 %v11865_v11, %v3693_v60  ;;  %v6111_v5 = vadd.f32 %v11865_v11, %v3973_v61 }
 0x40b   : > { %v6670_v0 = vmax.f32 %v6222_v58, 0.0  ;;  %v6782_v1 = vmax.f32 %v6334_v59, 0.0 }
 0x40c   : > { %v6447_v40 = vmax.f32 %v5999_v4, 0.0  ;;  %v6559_v13 = vmax.f32 %v6111_v5, 0.0 }
 0x40d   : > { %v10005_v2 = vpack.c.bf16 %v6670_v0, %v6669_v62  ;;  %v10285_v3 = vpack.c.bf16 %v6782_v1, %v6781_v63 }
 0x40f   : > { %10457 = vst [vmem:[%s10839_s18 + $0x530] sm:$0xff] %v10005_v2  }
 0x410   : > { %10513 = vst [vmem:[%s10839_s18 + $0x6f0] sm:$0xff] %v10285_v3   ;;  %v4253_v6 = vpop.f32.mrf.mxu2  ;;  %v4533_v7 = vpop.f32.mrf.mxu3 }
 0x411   : > { %v3695_v8 = vpop.f32.mrf.mxu0  ;;  %v3975_v9 = vpop.f32.mrf.mxu1  ;;  %v6223_v18 = vadd.f32 %v11865_v11, %v4253_v6  ;;  %v6335_v19 = vadd.f32 %v11865_v11, %v4533_v7 }
 0x412   : > { %v6000_v10 = vadd.f32 %v11865_v11, %v3695_v8  ;;  %v6112_v12 = vadd.f32 %v11865_v11, %v3975_v9 }
 0x413   : > { %v6671_v24 = vmax.f32 %v6223_v18, 0.0  ;;  %v6783_v25 = vmax.f32 %v6335_v19, 0.0 }
 0x414   : > { %v6448_v14 = vmax.f32 %v6000_v10, 0.0  ;;  %v6560_v15 = vmax.f32 %v6112_v12, 0.0 }
 0x416   : > { %v9450_v16 = vpack.c.bf16 %v6448_v14, %v6447_v40  ;;  %v9730_v17 = vpack.c.bf16 %v6560_v15, %v6559_v13 }
 0x418   : > { %10346 = vst [vmem:[%s10839_s18 + $0x1b8] sm:$0xff] %v9450_v16   ;;  %v4255_v20 = vpop.f32.mrf.mxu2  ;;  %v4535_v21 = vpop.f32.mrf.mxu3 }
 0x419   : > { %10402 = vst [vmem:[%s10839_s18 + $0x378] sm:$0xff] %v9730_v17   ;;  %v6224_v22 = vadd.f32 %v11865_v11, %v4255_v20  ;;  %v6336_v23 = vadd.f32 %v11865_v11, %v4535_v21 }
 0x41b   : > { %v6672_v26 = vmax.f32 %v6224_v22, 0.0  ;;  %v6784_v27 = vmax.f32 %v6336_v23, 0.0 }
 0x41d   : > { %v10010_v28 = vpack.c.bf16 %v6672_v26, %v6671_v24  ;;  %v10290_v29 = vpack.c.bf16 %v6784_v27, %v6783_v25 }
 0x41f   : > { %10458 = vst [vmem:[%s10839_s18 + $0x538] sm:$0xff] %v10010_v28  }
 0x420   : > { %10514 = vst [vmem:[%s10839_s18 + $0x6f8] sm:$0xff] %v10290_v29  }
 0x421   : > { %10611 = shalt.err (!%p10608_p5)
}
 0x422   : > { %s10664_s10 = smov 64   ;;  %s10665_s18 = smov 4  }
 0x423   : > { %10522 = dma.vmem_to_hbm [thread:$0]  (%p10726_p4), %s7696_s15, 28672, %s7698_s8, %s7682_s9, %s10664_s10, %s10664_s10, %s10665_s18  }
 0x424 PF: > { %p10528_p6 = scmp.ge.s32.totalorder %s10662_s17, 2  ;;  %s7712_s29 = sand.u32 1, %s10642_s12  }
 0x425   : > { %s7713_s30 = scalar_lea.sflag [#allocation4], %s7712_s29 }
 0x426   : > { %p10525_p7 = pnand %p10528_p6, %p10733_p8 }
 0x428   : > { %p10526_p9 = pneg %p10525_p7 }
 0x42a   : > { %10637 = dma.done.wait (%p10526_p9), %s7713_s30, 28672  }
 0x42b   : > { %10639 = vsyncadd (%p10526_p9), %s7713_s30, 4294938624  ;;  %s16_s17 = sadd.s32 1, %s10662_s17   ;;  %s11948_s12 = smov %s10646_s13 }
 0x42c   : > { %p13_p10 = scmp.ge.s32.totalorder %s16_s17, 16   ;;  %s11949_s13 = smov %s10650_s14 }
 0x42d   : > { %s11950_s14 = smov %s10739_s25  ;;  %s11951_s15 = smov %s10658_s16 }
 0x42e   : > { %s11952_s16 = smov %s11954_s20  ;;  %15 = sbr.rel (!%p13_p10) target bundleno = 4 (0x4), region = 81 }
 0x433   :  { %7719 = vsyncpa [#allocation4], 1 }
 0x434   :  { %7721 = vsyncpa [#allocation4 + $0x1], 1 }

</bundles_post_ra>
